<compile_context>
chip_gen: v7x
topology: tpu7x:2x2x1
jax: 0.10.0
libtpu: 0.0.40
codegen_flags: <defaults>
</compile_context>

<pallas_src>
import functools
import math

import numpy as np
import jax
import jax.numpy as jnp
from jax import lax
from jax.experimental import pallas as pl
from jax.experimental.pallas import tpu as pltpu

LN_EPS = 1e-5
BN_EPS = 1e-5


# ----------------------------------------------------------------------------
# In-kernel helpers (all f32 elementwise math)
# ----------------------------------------------------------------------------
def _layernorm(x, g, b):
    mu = jnp.mean(x, axis=-1, keepdims=True)
    var = jnp.mean((x - mu) ** 2, axis=-1, keepdims=True)
    return (x - mu) * lax.rsqrt(var + LN_EPS) * g + b


def _softmax_last(x):
    m = jnp.max(x, axis=-1, keepdims=True)
    e = jnp.exp(x - m)
    return e * pl.reciprocal(jnp.sum(e, axis=-1, keepdims=True), approx=True)


def _erf(x):
    # Abramowitz & Stegun 7.1.26, |error| < 1.5e-7 (exact-GELU parity).
    a1, a2, a3, a4, a5 = 0.254829592, -0.284496736, 1.421413741, -1.453152027, 1.061405429
    p = 0.3275911
    z = jnp.abs(x)
    t = 1.0 / (1.0 + p * z)
    poly = ((((a5 * t + a4) * t + a3) * t + a2) * t + a1) * t
    y = 1.0 - poly * jnp.exp(-z * z)
    return jnp.where(x >= 0, y, -y)


def _gelu_exact(x):
    return 0.5 * x * (1.0 + _erf(x * (1.0 / math.sqrt(2.0))))


# ----------------------------------------------------------------------------
# Fused whole-network kernel (whole batch-block per grid step)
# ----------------------------------------------------------------------------
def _subnet_kernel(x_ref, c32_ref, c18_ref, b512_ref,
                   wqkv_ref, wpw_ref, w1_ref, w2_ref, o_ref,
                   *, depth, heads, dim_head, batch, n_tok, dim):
    B, N, D = batch, n_tok, dim
    BN = B * N
    BH = B * heads
    inner = heads * dim_head
    f32 = jnp.float32
    b16 = jnp.bfloat16

    # constant-slab offsets (must match pack_params)
    c32_lbase = BN + BH
    c32_lstride = 7 + inner + N * N
    c18_ms_base = 2 * BH + B

    pos = c32_ref[0:BN, :]                         # (BN, D)  tiled pos embedding
    head_sel = c32_ref[BN:BN + BH, :]              # (BH, inner) 0/1 head mask
    neg_mask = c18_ref[0:BH, :]                    # (BH, BN)  0 / -1e9 cross-batch
    seg_mask = c18_ref[BH:BH + B, :]               # (B, BN)   0/1 batch segments
    rep_sel = c18_ref[BH + B:2 * BH + B, :]        # (BH, BN)  picks the center row

    x = x_ref[...] + pos                           # (BN, D) pos-embedding add (f32)

    for l in range(depth):
        base = c32_lbase + l * c32_lstride
        ln1_g = c32_ref[base + 0:base + 1, :]
        ln1_b = c32_ref[base + 1:base + 2, :]
        bout = c32_ref[base + 2:base + 3, :]
        ln2_g = c32_ref[base + 3:base + 4, :]
        ln2_b = c32_ref[base + 4:base + 5, :]
        dw_b = c32_ref[base + 5:base + 6, :]
        b2v = c32_ref[base + 6:base + 7, :]
        wout = c32_ref[base + 7:base + 7 + inner, :]                 # (inner, D)
        w3 = c32_ref[base + 7 + inner:base + 7 + inner + N * N, :]   # (N*N, D)
        mspec = c18_ref[c18_ms_base + l * BN:c18_ms_base + (l + 1) * BN, :]  # (BN, BN)
        b1v = b512_ref[2 * l:2 * l + 1, :]                           # (1, 512)
        bpw = b512_ref[2 * l + 1:2 * l + 2, :wpw_ref.shape[-1]]      # (1, 256)

        # ---------------- PreNorm + CenterAttention + residual ----------------
        xn = _layernorm(x, ln1_g, ln1_b)                             # (BN, D) f32
        qkv = jnp.dot(xn.astype(b16), wqkv_ref[l],
                      preferred_element_type=f32)                    # (BN, 3*inner)
        q_all = qkv[:, :inner]
        k_all = qkv[:, inner:2 * inner]
        v_all = qkv[:, 2 * inner:3 * inner]

        # All queries are the identical center token -> one query row per
        # (batch, head), built by a tiny 0/1 selection matmul + head mask.
        q2d = jnp.dot(rep_sel, q_all, preferred_element_type=f32) * head_sel   # (BH, inner)
        scores = lax.dot_general(q2d, k_all, (((1,), (1,)), ((), ())),
                                 preferred_element_type=f32)          # (BH, BN)
        a = _softmax_last(scores + neg_mask)                          # cross-batch -> exactly 0

        # Fold per-head A@V and the head concat through 0/1 masks:
        #   p[m, d] = a[batch(m)*heads + head(d), m]
        p = jnp.dot(a.T, head_sel, preferred_element_type=f32)        # (BN, inner)
        o_rows = jnp.dot(seg_mask, p * v_all, preferred_element_type=f32)       # (B, inner)
        spatial_rows = jnp.dot(o_rows, wout, preferred_element_type=f32) + bout  # (B, D)

        # Spectral branch: logits_b = xn_b^T @ (scale * Wqs @ Wks^T) @ xn_b
        t_all = jnp.dot(mspec, xn, preferred_element_type=f32)        # (BN, D), block-diag
        attn_blocks = []
        for b in range(B):
            xb = xn[b * N:(b + 1) * N, :]
            tb = t_all[b * N:(b + 1) * N, :]
            sw = _softmax_last(jnp.dot(xb.T, tb, preferred_element_type=f32))   # (D, D)
            row_b = jnp.dot(spatial_rows[b:b + 1, :], sw, preferred_element_type=f32)
            # identical rows per token -> broadcast == full attention output
            attn_blocks.append(jnp.broadcast_to(row_b, (N, D)))
        x = x + jnp.concatenate(attn_blocks, axis=0)

        # ---------------- PreNorm + FeedForward (conv MLP) + residual ---------
        xn2 = _layernorm(x, ln2_g, ln2_b)                             # (BN, D)

        # 3x3 depthwise conv as pure-VPU broadcast multiply-adds:
        #   acc_b[n, c] = sum_m W3[m, n, c] * xn2_b[m, c]
        conv_blocks = []
        for b in range(B):
            acc = jnp.zeros((N, D), f32)
            for m in range(N):
                acc = acc + w3[m * N:(m + 1) * N, :] * xn2[b * N + m:b * N + m + 1, :]
            conv_blocks.append(acc)
        conv = jnp.concatenate(conv_blocks, axis=0) + dw_b            # (BN, D)

        # pointwise 1x1 convs; BatchNorm2d (eval) folded into wpw/bpw at pack time
        h1 = jnp.dot(conv.astype(b16), wpw_ref[l], preferred_element_type=f32) + bpw
        h2 = _gelu_exact(jnp.dot(h1.astype(b16), w1_ref[l], preferred_element_type=f32) + b1v)
        h3 = _gelu_exact(jnp.dot(h2.astype(b16), w2_ref[l], preferred_element_type=f32) + b2v)
        x = x + h3

    o_ref[...] = x


# ----------------------------------------------------------------------------
# Wrapper
# ----------------------------------------------------------------------------
def _rep_spec(a):
    nd = a.ndim
    return pl.BlockSpec(a.shape, lambda i, _z=(0,) * nd: _z)


def subnet_forward(packed, x, *, depth, heads, dim_head, batch_block=None):
    """x: (B, N, D) -> (B, N, D).  One fused pallas_call; whole batch folded
    into the sublane dimension (single grid step by default)."""
    B, N, D = x.shape
    bt = B if batch_block is None else batch_block
    assert B % bt == 0
    # packed constants must have been built for the same per-step batch size
    assert packed["col18"].shape[1] == bt * N, "pack_params batch_block mismatch"

    x2d = x.reshape(B * N, D)
    weights = (packed["col32"], packed["col18"], packed["bias512"],
               packed["wqkv"], packed["wpw"], packed["w1"], packed["w2"])
    kernel = functools.partial(_subnet_kernel, depth=depth, heads=heads,
                               dim_head=dim_head, batch=bt, n_tok=N, dim=D)
    out = pl.pallas_call(
        kernel,
        out_shape=jax.ShapeDtypeStruct((B * N, D), jnp.float32),
        grid=(B // bt,),
        in_specs=[pl.BlockSpec((bt * N, D), lambda i: (i, 0))] +
                 [_rep_spec(a) for a in weights],
        out_specs=pl.BlockSpec((bt * N, D), lambda i: (i, 0)),
        compiler_params=pltpu.CompilerParams(dimension_semantics=("parallel",)),
    )(x2d, *weights)
    return out.reshape(B, N, D)


# ----------------------------------------------------------------------------
# Parameter packing: module-layout params -> kernel-layout slabs
# ----------------------------------------------------------------------------
def _make_shift_mats_np(H):
    """(9, N, N) 0/1 shift matrices: tap k gathers neighbor (i+dy, j+dx)."""
    N = H * H
    mats = np.zeros((9, N, N), np.float32)
    for tap in range(9):
        dy, dx = tap // 3 - 1, tap % 3 - 1
        for i in range(H):
            for j in range(H):
                ii, jj = i + dy, j + dx
                if 0 <= ii < H and 0 <= jj < H:
                    mats[tap, i * H + j, ii * H + jj] = 1.0
    return mats


def pack_params(params, heads, dim_head, batch_block):
    layers = params["layers"]
    depth = len(layers)
    pos = np.asarray(params["pos_embedding"][0], np.float32)   # (N, D)
    N, D = pos.shape
    inner = heads * dim_head
    assert inner == D, "slab packing assumes heads*dim_head == dim"
    B = batch_block
    BN, BH = B * N, B * heads
    scale = dim_head ** (-0.5)
    H = int(round(math.sqrt(N)))
    shift = _make_shift_mats_np(H)

    # batched-attention constant masks
    head_sel = np.zeros((BH, inner), np.float32)
    rep_sel = np.zeros((BH, BN), np.float32)
    neg_mask = np.full((BH, BN), -1e9, np.float32)
    for r in range(BH):
        b, h = divmod(r, heads)
        head_sel[r, h * dim_head:(h + 1) * dim_head] = 1.0
        rep_sel[r, b * N + N // 2] = 1.0
        neg_mask[r, b * N:(b + 1) * N] = 0.0
    seg_mask = np.zeros((B, BN), np.float32)
    for b in range(B):
        seg_mask[b, b * N:(b + 1) * N] = 1.0

    col32 = [np.tile(pos, (B, 1)), head_sel]
    col18 = [neg_mask, seg_mask, rep_sel]
    b512 = []
    wqkv_l, wpw_l, w1_l, w2_l = [], [], [], []

    for p in layers:
        def g(k):
            return np.asarray(p[k], np.float32)

        # packed [q | k | v] projection, attention scale folded into Wq
        wqkv_l.append(np.concatenate([g("wq") * scale, g("wkv")], axis=1))
        # spectral: M = scale * Wqs @ Wks^T (v_spec is dead compute -> dropped),
        # block-diagonal over the folded batch
        wspec = g("wspec")
        mspec = scale * (wspec[:, :N] @ wspec[:, N:2 * N].T)
        col18.append(np.kron(np.eye(B, dtype=np.float32), mspec))
        # depthwise 3x3 conv: combined tap tensor W3[m*N+n, c] = sum_t S_t[n,m]*dw_w[t,c]
        w3 = np.einsum("tnm,tc->mnc", shift, g("dw_w")).reshape(N * N, D)
        # BatchNorm2d (eval running stats) folded into the pointwise conv
        wpw_l.append(g("wpw") * g("bn_scale"))
        bpw = g("bpw") * g("bn_scale") + g("bn_shift")
        w1_l.append(g("w1"))
        w2_l.append(g("w2"))
        col32 += [g("ln1_g"), g("ln1_b"), g("bout"), g("ln2_g"), g("ln2_b"),
                  g("dw_b"), g("b2"), g("wout"), w3]
        b1 = g("b1")
        b512 += [b1, np.concatenate(
            [bpw, np.zeros((1, b1.shape[1] - bpw.shape[1]), np.float32)], axis=1)]

    col32 = np.concatenate(col32, axis=0)
    col18 = np.concatenate(col18, axis=0)
    b512 = np.concatenate(b512, axis=0)
    assert col32.shape == (BN + BH + depth * (7 + inner + N * N), D)
    assert col18.shape == (2 * BH + B + depth * BN, BN)

    return dict(
        col32=jnp.asarray(col32),
        col18=jnp.asarray(col18),
        bias512=jnp.asarray(b512),
        wqkv=jnp.asarray(np.stack(wqkv_l)).astype(jnp.bfloat16),
        wpw=jnp.asarray(np.stack(wpw_l)).astype(jnp.bfloat16),
        w1=jnp.asarray(np.stack(w1_l)).astype(jnp.bfloat16),
        w2=jnp.asarray(np.stack(w2_l)).astype(jnp.bfloat16),
    )


# ----------------------------------------------------------------------------
# Deterministic synthetic parameters (module layout)
# ----------------------------------------------------------------------------
def init_params(key, num_patches, dim, depth, heads, dim_head):
    inner = heads * dim_head
    k = key

    def nxt():
        nonlocal k
        k, sub = jax.random.split(k)
        return sub

    def w(shape, scale=0.1):
        return scale * jax.random.normal(nxt(), shape, jnp.float32)

    params = {"pos_embedding": 0.02 * jax.random.normal(nxt(), (1, num_patches, dim), jnp.float32)}
    layers = []
    for _ in range(depth):
        bn_gamma = jnp.ones((1, 256), jnp.float32)
        bn_beta = jnp.zeros((1, 256), jnp.float32)
        bn_mean = jnp.zeros((1, 256), jnp.float32)
        bn_var = jnp.ones((1, 256), jnp.float32)
        bn_scale = bn_gamma / jnp.sqrt(bn_var + BN_EPS)
        bn_shift = bn_beta - bn_mean * bn_scale
        layers.append(dict(
            ln1_g=jnp.ones((1, dim), jnp.float32), ln1_b=jnp.zeros((1, dim), jnp.float32),
            wq=w((dim, inner)), wkv=w((dim, 2 * inner)),
            wout=w((inner, dim)), bout=w((1, dim)),
            wspec=w((num_patches, 3 * num_patches)),
            ln2_g=jnp.ones((1, dim), jnp.float32), ln2_b=jnp.zeros((1, dim), jnp.float32),
            dw_w=w((9, dim)), dw_b=w((1, dim)),
            wpw=w((dim, 256)), bpw=w((1, 256)),
            bn_scale=bn_scale, bn_shift=bn_shift,
            w1=w((256, 512)), b1=w((1, 512)),
            w2=w((512, dim)), b2=w((1, dim)),
        ))
    params["layers"] = layers
    return params


# ----------------------------------------------------------------------------
# Pure-JAX reference (mirrors the PyTorch forward) for a sanity check
# ----------------------------------------------------------------------------
def _ref_layernorm(x, g, b):
    mu = jnp.mean(x, axis=-1, keepdims=True)
    var = jnp.mean((x - mu) ** 2, axis=-1, keepdims=True)
    return (x - mu) / jnp.sqrt(var + LN_EPS) * g + b


def _ref_gelu(x):
    return 0.5 * x * (1.0 + jax.scipy.special.erf(x / math.sqrt(2.0)))


def _ref_attn(x, p, heads, dim_head):
    B, N, D = x.shape
    inner = heads * dim_head
    scale = dim_head ** (-0.5)
    xn = _ref_layernorm(x, p["ln1_g"], p["ln1_b"])
    m = N // 2
    x_center = jnp.broadcast_to(xn[:, m:m + 1, :], xn.shape)
    q = x_center @ p["wq"]
    kv = xn @ p["wkv"]
    kk, vv = kv[..., :inner], kv[..., inner:]

    def split_heads(t):
        return t.reshape(B, N, heads, dim_head).transpose(0, 2, 1, 3)

    qh, kh, vh = map(split_heads, (q, kk, vv))
    attn = jax.nn.softmax(jnp.einsum("bhid,bhjd->bhij", qh, kh) * scale, axis=-1)
    out = jnp.einsum("bhij,bhjd->bhid", attn, vh).transpose(0, 2, 1, 3).reshape(B, N, inner)
    spatial = out @ p["wout"] + p["bout"]
    xt = jnp.swapaxes(xn, -1, -2)                    # (B, D, N)
    qkv_s = xt @ p["wspec"]                          # (B, D, 3N)  (v_spec computed, unused)
    q_s, k_s = qkv_s[..., :N], qkv_s[..., N:2 * N]
    sw = jax.nn.softmax(jnp.einsum("bdn,ben->bde", q_s, k_s) * scale, axis=-1)
    return jnp.matmul(spatial, sw)


def _ref_ffn(x, p):
    B, N, D = x.shape
    H = int(round(math.sqrt(N)))
    xn = _ref_layernorm(x, p["ln2_g"], p["ln2_b"])
    xsp = xn.reshape(B, H, H, D)
    xpad = jnp.pad(xsp, ((0, 0), (1, 1), (1, 1), (0, 0)))
    dw = jnp.zeros_like(xsp)
    for k in range(9):
        dy, dx = divmod(k, 3)
        dw = dw + xpad[:, dy:dy + H, dx:dx + H, :] * p["dw_w"][k]
    dw = dw + p["dw_b"][0]
    h = dw.reshape(B, N, D) @ p["wpw"] + p["bpw"]
    h = h * p["bn_scale"] + p["bn_shift"]
    h = _ref_gelu(h @ p["w1"] + p["b1"])
    h = _ref_gelu(h @ p["w2"] + p["b2"])
    return h


def reference_forward(params, x, heads, dim_head):
    x = x + params["pos_embedding"]
    for p in params["layers"]:
        x = _ref_attn(x, p, heads, dim_head) + x
        x = _ref_ffn(x, p) + x
    return x


# ----------------------------------------------------------------------------
if __name__ == "__main__":
    NUM_PATCHES, DIM, DEPTH, HEADS, DIM_HEAD = 9, 32, 2, 2, 16
    BATCH = 2

    key = jax.random.PRNGKey(0)
    kp, kx = jax.random.split(key)
    params = init_params(kp, NUM_PATCHES, DIM, DEPTH, HEADS, DIM_HEAD)
    packed = pack_params(params, HEADS, DIM_HEAD, batch_block=BATCH)
    x = jax.random.normal(kx, (BATCH, NUM_PATCHES, DIM), jnp.float32)

    fwd = jax.jit(functools.partial(subnet_forward, depth=DEPTH, heads=HEADS,
                                    dim_head=DIM_HEAD))
    out = jax.block_until_ready(fwd(packed, x))
    assert out.shape == (BATCH, NUM_PATCHES, DIM)

    with jax.default_matmul_precision("highest"):
        ref = reference_forward(params, x, HEADS, DIM_HEAD)
    max_err = float(jnp.max(jnp.abs(out - ref)))
    # bf16 MXU operands (f32 accumulation) vs an f32 "highest"-precision
    # reference: expected max-abs drift ~1e-2 at |x| up to ~4 -> 3e-2 bound.
    assert max_err < 3e-2, f"max abs diff vs reference: {max_err}"

    # TODO(synk): BatchNorm2d is modeled with eval-mode running statistics
    # (default init) folded to a scale/shift; training-mode batch stats and
    # dropout RNG are not modeled (dropout/emb_dropout p=0 -> identity).
    print("KERNEL_OK")
</pallas_src>

<mosaic_0001>
module attributes {stable_mosaic.version = 11 : i64} {
  func.func @_subnet_kernel(%arg0: i32, %arg1: memref<18x32xf32, #tpu.memory_space<vmem>>, %arg2: memref<262x32xf32, #tpu.memory_space<vmem>>, %arg3: memref<46x18xf32, #tpu.memory_space<vmem>>, %arg4: memref<4x512xf32, #tpu.memory_space<vmem>>, %arg5: memref<2x32x96xbf16, #tpu.memory_space<vmem>>, %arg6: memref<2x32x256xbf16, #tpu.memory_space<vmem>>, %arg7: memref<2x256x512xbf16, #tpu.memory_space<vmem>>, %arg8: memref<2x512x32xbf16, #tpu.memory_space<vmem>>, %arg9: memref<18x32xf32, #tpu.memory_space<vmem>>) attributes {dimension_semantics = [#tpu.dimension_semantics<parallel>], iteration_bounds = array<i64: 1>, scalar_prefetch = 0 : i64, scratch_operands = 0 : i64, tpu.core_type = #tpu.core_type<tc>, window_params = [{transform_indices = @transform_0, window_bounds = array<i64: 18, 32>}, {pipeline_mode = #tpu.pipeline_mode<synchronous>, transform_indices = @transform_1, window_bounds = array<i64: 262, 32>}, {pipeline_mode = #tpu.pipeline_mode<synchronous>, transform_indices = @transform_2, window_bounds = array<i64: 46, 18>}, {pipeline_mode = #tpu.pipeline_mode<synchronous>, transform_indices = @transform_3, window_bounds = array<i64: 4, 512>}, {pipeline_mode = #tpu.pipeline_mode<synchronous>, transform_indices = @transform_4, window_bounds = array<i64: 2, 32, 96>}, {pipeline_mode = #tpu.pipeline_mode<synchronous>, transform_indices = @transform_5, window_bounds = array<i64: 2, 32, 256>}, {pipeline_mode = #tpu.pipeline_mode<synchronous>, transform_indices = @transform_6, window_bounds = array<i64: 2, 256, 512>}, {pipeline_mode = #tpu.pipeline_mode<synchronous>, transform_indices = @transform_7, window_bounds = array<i64: 2, 512, 32>}, {transform_indices = @transform_8, window_bounds = array<i64: 18, 32>}]} {
    %c0 = arith.constant 0 : index
    %c0_0 = arith.constant 0 : index
    %0 = vector.load %arg2[%c0, %c0_0] : memref<262x32xf32, #tpu.memory_space<vmem>>, vector<18x32xf32>
    %c18 = arith.constant 18 : index
    %c0_1 = arith.constant 0 : index
    %1 = vector.load %arg2[%c18, %c0_1] : memref<262x32xf32, #tpu.memory_space<vmem>>, vector<4x32xf32>
    %c0_2 = arith.constant 0 : index
    %c0_3 = arith.constant 0 : index
    %2 = vector.load %arg3[%c0_2, %c0_3] : memref<46x18xf32, #tpu.memory_space<vmem>>, vector<4x18xf32>
    %c4 = arith.constant 4 : index
    %c0_4 = arith.constant 0 : index
    %3 = vector.load %arg3[%c4, %c0_4] : memref<46x18xf32, #tpu.memory_space<vmem>>, vector<2x18xf32>
    %c6 = arith.constant 6 : index
    %c0_5 = arith.constant 0 : index
    %4 = vector.load %arg3[%c6, %c0_5] : memref<46x18xf32, #tpu.memory_space<vmem>>, vector<4x18xf32>
    %c0_6 = arith.constant 0 : index
    %c0_7 = arith.constant 0 : index
    %5 = vector.load %arg1[%c0_6, %c0_7] : memref<18x32xf32, #tpu.memory_space<vmem>>, vector<18x32xf32>
    %6 = arith.addf %5, %0 : vector<18x32xf32>
    %c22 = arith.constant 22 : index
    %c0_8 = arith.constant 0 : index
    %7 = vector.load %arg2[%c22, %c0_8] : memref<262x32xf32, #tpu.memory_space<vmem>>, vector<1x32xf32>
    %c23 = arith.constant 23 : index
    %c0_9 = arith.constant 0 : index
    %8 = vector.load %arg2[%c23, %c0_9] : memref<262x32xf32, #tpu.memory_space<vmem>>, vector<1x32xf32>
    %c24 = arith.constant 24 : index
    %c0_10 = arith.constant 0 : index
    %9 = vector.load %arg2[%c24, %c0_10] : memref<262x32xf32, #tpu.memory_space<vmem>>, vector<1x32xf32>
    %c25 = arith.constant 25 : index
    %c0_11 = arith.constant 0 : index
    %10 = vector.load %arg2[%c25, %c0_11] : memref<262x32xf32, #tpu.memory_space<vmem>>, vector<1x32xf32>
    %c26 = arith.constant 26 : index
    %c0_12 = arith.constant 0 : index
    %11 = vector.load %arg2[%c26, %c0_12] : memref<262x32xf32, #tpu.memory_space<vmem>>, vector<1x32xf32>
    %c27 = arith.constant 27 : index
    %c0_13 = arith.constant 0 : index
    %12 = vector.load %arg2[%c27, %c0_13] : memref<262x32xf32, #tpu.memory_space<vmem>>, vector<1x32xf32>
    %c28 = arith.constant 28 : index
    %c0_14 = arith.constant 0 : index
    %13 = vector.load %arg2[%c28, %c0_14] : memref<262x32xf32, #tpu.memory_space<vmem>>, vector<1x32xf32>
    %c29 = arith.constant 29 : index
    %c0_15 = arith.constant 0 : index
    %14 = vector.load %arg2[%c29, %c0_15] : memref<262x32xf32, #tpu.memory_space<vmem>>, vector<32x32xf32>
    %c61 = arith.constant 61 : index
    %c0_16 = arith.constant 0 : index
    %15 = vector.load %arg2[%c61, %c0_16] : memref<262x32xf32, #tpu.memory_space<vmem>>, vector<81x32xf32>
    %c10 = arith.constant 10 : index
    %c0_17 = arith.constant 0 : index
    %16 = vector.load %arg3[%c10, %c0_17] : memref<46x18xf32, #tpu.memory_space<vmem>>, vector<18x18xf32>
    %c0_18 = arith.constant 0 : index
    %c0_19 = arith.constant 0 : index
    %17 = vector.load %arg4[%c0_18, %c0_19] : memref<4x512xf32, #tpu.memory_space<vmem>>, vector<1x512xf32>
    %c1 = arith.constant 1 : index
    %c0_20 = arith.constant 0 : index
    %18 = vector.load %arg4[%c1, %c0_20] : memref<4x512xf32, #tpu.memory_space<vmem>>, vector<1x256xf32>
    %cst = arith.constant dense<0.000000e+00> : vector<18xf32>
    %19 = vector.multi_reduction <add>, %6, %cst [1] : vector<18x32xf32> to vector<18xf32>
    %20 = vector.shape_cast %19 : vector<18xf32> to vector<18x1xf32>
    %cst_21 = arith.constant 3.200000e+01 : f32
    %21 = vector.broadcast %cst_21 : f32 to vector<18x1xf32>
    %22 = arith.divf %20, %21 : vector<18x1xf32>
    %23 = vector.broadcast %22 : vector<18x1xf32> to vector<18x32xf32>
    %24 = arith.subf %6, %23 : vector<18x32xf32>
    %25 = arith.mulf %24, %24 : vector<18x32xf32>
    %cst_22 = arith.constant dense<0.000000e+00> : vector<18xf32>
    %26 = vector.multi_reduction <add>, %25, %cst_22 [1] : vector<18x32xf32> to vector<18xf32>
    %27 = vector.shape_cast %26 : vector<18xf32> to vector<18x1xf32>
    %cst_23 = arith.constant 3.200000e+01 : f32
    %28 = vector.broadcast %cst_23 : f32 to vector<18x1xf32>
    %29 = arith.divf %27, %28 : vector<18x1xf32>
    %30 = vector.broadcast %22 : vector<18x1xf32> to vector<18x32xf32>
    %31 = arith.subf %6, %30 : vector<18x32xf32>
    %cst_24 = arith.constant 9.99999974E-6 : f32
    %32 = vector.broadcast %cst_24 : f32 to vector<18x1xf32>
    %33 = arith.addf %29, %32 : vector<18x1xf32>
    %34 = math.rsqrt %33 : vector<18x1xf32>
    %35 = vector.broadcast %34 : vector<18x1xf32> to vector<18x32xf32>
    %36 = arith.mulf %31, %35 : vector<18x32xf32>
    %37 = vector.broadcast %7 : vector<1x32xf32> to vector<18x32xf32>
    %38 = arith.mulf %36, %37 : vector<18x32xf32>
    %39 = vector.broadcast %8 : vector<1x32xf32> to vector<18x32xf32>
    %40 = arith.addf %38, %39 : vector<18x32xf32>
    %41 = arith.truncf %40 : vector<18x32xf32> to vector<18x32xbf16>
    %c0_25 = arith.constant 0 : index
    %c0_26 = arith.constant 0 : index
    %c0_27 = arith.constant 0 : index
    %42 = vector.load %arg5[%c0_25, %c0_26, %c0_27] : memref<2x32x96xbf16, #tpu.memory_space<vmem>>, vector<1x32x96xbf16>
    %43 = vector.shape_cast %42 : vector<1x32x96xbf16> to vector<32x96xbf16>
    %cst_28 = arith.constant dense<0.000000e+00> : vector<18x96xf32>
    %44 = tpu.matmul %41, %43, %cst_28 {dimension_numbers = #tpu.dot_dimension_numbers<[1], [0], [0], [1], [0, 0, 1, 1], [], []>} : vector<18x32xbf16>, vector<32x96xbf16>, vector<18x96xf32> -> vector<18x96xf32>
    %45 = vector.extract_strided_slice %44 {offsets = [0, 0], sizes = [18, 32], strides = [1, 1]} : vector<18x96xf32> to vector<18x32xf32>
    %46 = vector.extract_strided_slice %44 {offsets = [0, 32], sizes = [18, 32], strides = [1, 1]} : vector<18x96xf32> to vector<18x32xf32>
    %47 = vector.extract_strided_slice %44 {offsets = [0, 64], sizes = [18, 32], strides = [1, 1]} : vector<18x96xf32> to vector<18x32xf32>
    %cst_29 = arith.constant dense<0.000000e+00> : vector<4x32xf32>
    %48 = tpu.matmul %4, %45, %cst_29 {dimension_numbers = #tpu.dot_dimension_numbers<[1], [0], [0], [1], [0, 0, 1, 1], [], []>} : vector<4x18xf32>, vector<18x32xf32>, vector<4x32xf32> -> vector<4x32xf32>
    %49 = arith.mulf %48, %1 : vector<4x32xf32>
    %cst_30 = arith.constant dense<0.000000e+00> : vector<4x18xf32>
    %50 = tpu.matmul %49, %46, %cst_30 {dimension_numbers = #tpu.dot_dimension_numbers<[1], [1], [0], [0], [0, 0, 1, 0], [], []>} : vector<4x32xf32>, vector<18x32xf32>, vector<4x18xf32> -> vector<4x18xf32>
    %51 = arith.addf %50, %2 : vector<4x18xf32>
    %cst_31 = arith.constant dense<0xFF800000> : vector<4xf32>
    %52 = vector.multi_reduction <maximumf>, %51, %cst_31 [1] : vector<4x18xf32> to vector<4xf32>
    %53 = vector.shape_cast %52 : vector<4xf32> to vector<4x1xf32>
    %54 = vector.broadcast %53 : vector<4x1xf32> to vector<4x18xf32>
    %55 = arith.subf %51, %54 : vector<4x18xf32>
    %56 = math.exp %55 : vector<4x18xf32>
    %cst_32 = arith.constant dense<0.000000e+00> : vector<4xf32>
    %57 = vector.multi_reduction <add>, %56, %cst_32 [1] : vector<4x18xf32> to vector<4xf32>
    %58 = vector.shape_cast %57 : vector<4xf32> to vector<4x1xf32>
    %59 = tpu.reciprocal %58 {approx = true} : vector<4x1xf32> -> vector<4x1xf32>
    %60 = vector.broadcast %59 : vector<4x1xf32> to vector<4x18xf32>
    %61 = arith.mulf %56, %60 : vector<4x18xf32>
    %62 = tpu.transpose %61, [1, 0] : vector<4x18xf32> -> vector<18x4xf32>
    %cst_33 = arith.constant dense<0.000000e+00> : vector<18x32xf32>
    %63 = tpu.matmul %62, %1, %cst_33 {dimension_numbers = #tpu.dot_dimension_numbers<[1], [0], [0], [1], [0, 0, 1, 1], [], []>} : vector<18x4xf32>, vector<4x32xf32>, vector<18x32xf32> -> vector<18x32xf32>
    %64 = arith.mulf %63, %47 : vector<18x32xf32>
    %cst_34 = arith.constant dense<0.000000e+00> : vector<2x32xf32>
    %65 = tpu.matmul %3, %64, %cst_34 {dimension_numbers = #tpu.dot_dimension_numbers<[1], [0], [0], [1], [0, 0, 1, 1], [], []>} : vector<2x18xf32>, vector<18x32xf32>, vector<2x32xf32> -> vector<2x32xf32>
    %cst_35 = arith.constant dense<0.000000e+00> : vector<2x32xf32>
    %66 = tpu.matmul %65, %14, %cst_35 {dimension_numbers = #tpu.dot_dimension_numbers<[1], [0], [0], [1], [0, 0, 1, 1], [], []>} : vector<2x32xf32>, vector<32x32xf32>, vector<2x32xf32> -> vector<2x32xf32>
    %67 = vector.broadcast %9 : vector<1x32xf32> to vector<2x32xf32>
    %68 = arith.addf %66, %67 : vector<2x32xf32>
    %cst_36 = arith.constant dense<0.000000e+00> : vector<18x32xf32>
    %69 = tpu.matmul %16, %40, %cst_36 {dimension_numbers = #tpu.dot_dimension_numbers<[1], [0], [0], [1], [0, 0, 1, 1], [], []>} : vector<18x18xf32>, vector<18x32xf32>, vector<18x32xf32> -> vector<18x32xf32>
    %70 = vector.extract_strided_slice %40 {offsets = [0, 0], sizes = [9, 32], strides = [1, 1]} : vector<18x32xf32> to vector<9x32xf32>
    %71 = vector.extract_strided_slice %69 {offsets = [0, 0], sizes = [9, 32], strides = [1, 1]} : vector<18x32xf32> to vector<9x32xf32>
    %72 = tpu.transpose %70, [1, 0] : vector<9x32xf32> -> vector<32x9xf32>
    %cst_37 = arith.constant dense<0.000000e+00> : vector<32x32xf32>
    %73 = tpu.matmul %72, %71, %cst_37 {dimension_numbers = #tpu.dot_dimension_numbers<[1], [0], [0], [1], [0, 0, 1, 1], [], []>} : vector<32x9xf32>, vector<9x32xf32>, vector<32x32xf32> -> vector<32x32xf32>
    %cst_38 = arith.constant dense<0xFF800000> : vector<32xf32>
    %74 = vector.multi_reduction <maximumf>, %73, %cst_38 [1] : vector<32x32xf32> to vector<32xf32>
    %75 = vector.shape_cast %74 : vector<32xf32> to vector<32x1xf32>
    %76 = vector.broadcast %75 : vector<32x1xf32> to vector<32x32xf32>
    %77 = arith.subf %73, %76 : vector<32x32xf32>
    %78 = math.exp %77 : vector<32x32xf32>
    %cst_39 = arith.constant dense<0.000000e+00> : vector<32xf32>
    %79 = vector.multi_reduction <add>, %78, %cst_39 [1] : vector<32x32xf32> to vector<32xf32>
    %80 = vector.shape_cast %79 : vector<32xf32> to vector<32x1xf32>
    %81 = tpu.reciprocal %80 {approx = true} : vector<32x1xf32> -> vector<32x1xf32>
    %82 = vector.broadcast %81 : vector<32x1xf32> to vector<32x32xf32>
    %83 = arith.mulf %78, %82 : vector<32x32xf32>
    %84 = vector.extract_strided_slice %68 {offsets = [0, 0], sizes = [1, 32], strides = [1, 1]} : vector<2x32xf32> to vector<1x32xf32>
    %cst_40 = arith.constant dense<0.000000e+00> : vector<1x32xf32>
    %85 = tpu.matmul %84, %83, %cst_40 {dimension_numbers = #tpu.dot_dimension_numbers<[1], [0], [0], [1], [0, 0, 1, 1], [], []>} : vector<1x32xf32>, vector<32x32xf32>, vector<1x32xf32> -> vector<1x32xf32>
    %86 = vector.shape_cast %85 : vector<1x32xf32> to vector<1x32xf32>
    %87 = vector.broadcast %86 : vector<1x32xf32> to vector<9x32xf32>
    %88 = vector.extract_strided_slice %40 {offsets = [9, 0], sizes = [9, 32], strides = [1, 1]} : vector<18x32xf32> to vector<9x32xf32>
    %89 = vector.extract_strided_slice %69 {offsets = [9, 0], sizes = [9, 32], strides = [1, 1]} : vector<18x32xf32> to vector<9x32xf32>
    %90 = tpu.transpose %88, [1, 0] : vector<9x32xf32> -> vector<32x9xf32>
    %cst_41 = arith.constant dense<0.000000e+00> : vector<32x32xf32>
    %91 = tpu.matmul %90, %89, %cst_41 {dimension_numbers = #tpu.dot_dimension_numbers<[1], [0], [0], [1], [0, 0, 1, 1], [], []>} : vector<32x9xf32>, vector<9x32xf32>, vector<32x32xf32> -> vector<32x32xf32>
    %cst_42 = arith.constant dense<0xFF800000> : vector<32xf32>
    %92 = vector.multi_reduction <maximumf>, %91, %cst_42 [1] : vector<32x32xf32> to vector<32xf32>
    %93 = vector.shape_cast %92 : vector<32xf32> to vector<32x1xf32>
    %94 = vector.broadcast %93 : vector<32x1xf32> to vector<32x32xf32>
    %95 = arith.subf %91, %94 : vector<32x32xf32>
    %96 = math.exp %95 : vector<32x32xf32>
    %cst_43 = arith.constant dense<0.000000e+00> : vector<32xf32>
    %97 = vector.multi_reduction <add>, %96, %cst_43 [1] : vector<32x32xf32> to vector<32xf32>
    %98 = vector.shape_cast %97 : vector<32xf32> to vector<32x1xf32>
    %99 = tpu.reciprocal %98 {approx = true} : vector<32x1xf32> -> vector<32x1xf32>
    %100 = vector.broadcast %99 : vector<32x1xf32> to vector<32x32xf32>
    %101 = arith.mulf %96, %100 : vector<32x32xf32>
    %102 = vector.extract_strided_slice %68 {offsets = [1, 0], sizes = [1, 32], strides = [1, 1]} : vector<2x32xf32> to vector<1x32xf32>
    %cst_44 = arith.constant dense<0.000000e+00> : vector<1x32xf32>
    %103 = tpu.matmul %102, %101, %cst_44 {dimension_numbers = #tpu.dot_dimension_numbers<[1], [0], [0], [1], [0, 0, 1, 1], [], []>} : vector<1x32xf32>, vector<32x32xf32>, vector<1x32xf32> -> vector<1x32xf32>
    %104 = vector.shape_cast %103 : vector<1x32xf32> to vector<1x32xf32>
    %105 = vector.broadcast %104 : vector<1x32xf32> to vector<9x32xf32>
    %106 = tpu.concatenate %87, %105 in 0 : vector<9x32xf32>, vector<9x32xf32> -> vector<18x32xf32>
    %107 = arith.addf %6, %106 : vector<18x32xf32>
    %cst_45 = arith.constant dense<0.000000e+00> : vector<18xf32>
    %108 = vector.multi_reduction <add>, %107, %cst_45 [1] : vector<18x32xf32> to vector<18xf32>
    %109 = vector.shape_cast %108 : vector<18xf32> to vector<18x1xf32>
    %cst_46 = arith.constant 3.200000e+01 : f32
    %110 = vector.broadcast %cst_46 : f32 to vector<18x1xf32>
    %111 = arith.divf %109, %110 : vector<18x1xf32>
    %112 = vector.broadcast %111 : vector<18x1xf32> to vector<18x32xf32>
    %113 = arith.subf %107, %112 : vector<18x32xf32>
    %114 = arith.mulf %113, %113 : vector<18x32xf32>
    %cst_47 = arith.constant dense<0.000000e+00> : vector<18xf32>
    %115 = vector.multi_reduction <add>, %114, %cst_47 [1] : vector<18x32xf32> to vector<18xf32>
    %116 = vector.shape_cast %115 : vector<18xf32> to vector<18x1xf32>
    %cst_48 = arith.constant 3.200000e+01 : f32
    %117 = vector.broadcast %cst_48 : f32 to vector<18x1xf32>
    %118 = arith.divf %116, %117 : vector<18x1xf32>
    %119 = vector.broadcast %111 : vector<18x1xf32> to vector<18x32xf32>
    %120 = arith.subf %107, %119 : vector<18x32xf32>
    %cst_49 = arith.constant 9.99999974E-6 : f32
    %121 = vector.broadcast %cst_49 : f32 to vector<18x1xf32>
    %122 = arith.addf %118, %121 : vector<18x1xf32>
    %123 = math.rsqrt %122 : vector<18x1xf32>
    %124 = vector.broadcast %123 : vector<18x1xf32> to vector<18x32xf32>
    %125 = arith.mulf %120, %124 : vector<18x32xf32>
    %126 = vector.broadcast %10 : vector<1x32xf32> to vector<18x32xf32>
    %127 = arith.mulf %125, %126 : vector<18x32xf32>
    %128 = vector.broadcast %11 : vector<1x32xf32> to vector<18x32xf32>
    %129 = arith.addf %127, %128 : vector<18x32xf32>
    %cst_50 = arith.constant 0.000000e+00 : f32
    %130 = vector.broadcast %cst_50 : f32 to vector<9x32xf32>
    %131 = vector.extract_strided_slice %15 {offsets = [0, 0], sizes = [9, 32], strides = [1, 1]} : vector<81x32xf32> to vector<9x32xf32>
    %132 = vector.extract_strided_slice %129 {offsets = [0, 0], sizes = [1, 32], strides = [1, 1]} : vector<18x32xf32> to vector<1x32xf32>
    %133 = vector.broadcast %132 : vector<1x32xf32> to vector<9x32xf32>
    %134 = arith.mulf %131, %133 : vector<9x32xf32>
    %135 = arith.addf %130, %134 : vector<9x32xf32>
    %136 = vector.extract_strided_slice %15 {offsets = [9, 0], sizes = [9, 32], strides = [1, 1]} : vector<81x32xf32> to vector<9x32xf32>
    %137 = vector.extract_strided_slice %129 {offsets = [1, 0], sizes = [1, 32], strides = [1, 1]} : vector<18x32xf32> to vector<1x32xf32>
    %138 = vector.broadcast %137 : vector<1x32xf32> to vector<9x32xf32>
    %139 = arith.mulf %136, %138 : vector<9x32xf32>
    %140 = arith.addf %135, %139 : vector<9x32xf32>
    %141 = vector.extract_strided_slice %15 {offsets = [18, 0], sizes = [9, 32], strides = [1, 1]} : vector<81x32xf32> to vector<9x32xf32>
    %142 = vector.extract_strided_slice %129 {offsets = [2, 0], sizes = [1, 32], strides = [1, 1]} : vector<18x32xf32> to vector<1x32xf32>
    %143 = vector.broadcast %142 : vector<1x32xf32> to vector<9x32xf32>
    %144 = arith.mulf %141, %143 : vector<9x32xf32>
    %145 = arith.addf %140, %144 : vector<9x32xf32>
    %146 = vector.extract_strided_slice %15 {offsets = [27, 0], sizes = [9, 32], strides = [1, 1]} : vector<81x32xf32> to vector<9x32xf32>
    %147 = vector.extract_strided_slice %129 {offsets = [3, 0], sizes = [1, 32], strides = [1, 1]} : vector<18x32xf32> to vector<1x32xf32>
    %148 = vector.broadcast %147 : vector<1x32xf32> to vector<9x32xf32>
    %149 = arith.mulf %146, %148 : vector<9x32xf32>
    %150 = arith.addf %145, %149 : vector<9x32xf32>
    %151 = vector.extract_strided_slice %15 {offsets = [36, 0], sizes = [9, 32], strides = [1, 1]} : vector<81x32xf32> to vector<9x32xf32>
    %152 = vector.extract_strided_slice %129 {offsets = [4, 0], sizes = [1, 32], strides = [1, 1]} : vector<18x32xf32> to vector<1x32xf32>
    %153 = vector.broadcast %152 : vector<1x32xf32> to vector<9x32xf32>
    %154 = arith.mulf %151, %153 : vector<9x32xf32>
    %155 = arith.addf %150, %154 : vector<9x32xf32>
    %156 = vector.extract_strided_slice %15 {offsets = [45, 0], sizes = [9, 32], strides = [1, 1]} : vector<81x32xf32> to vector<9x32xf32>
    %157 = vector.extract_strided_slice %129 {offsets = [5, 0], sizes = [1, 32], strides = [1, 1]} : vector<18x32xf32> to vector<1x32xf32>
    %158 = vector.broadcast %157 : vector<1x32xf32> to vector<9x32xf32>
    %159 = arith.mulf %156, %158 : vector<9x32xf32>
    %160 = arith.addf %155, %159 : vector<9x32xf32>
    %161 = vector.extract_strided_slice %15 {offsets = [54, 0], sizes = [9, 32], strides = [1, 1]} : vector<81x32xf32> to vector<9x32xf32>
    %162 = vector.extract_strided_slice %129 {offsets = [6, 0], sizes = [1, 32], strides = [1, 1]} : vector<18x32xf32> to vector<1x32xf32>
    %163 = vector.broadcast %162 : vector<1x32xf32> to vector<9x32xf32>
    %164 = arith.mulf %161, %163 : vector<9x32xf32>
    %165 = arith.addf %160, %164 : vector<9x32xf32>
    %166 = vector.extract_strided_slice %15 {offsets = [63, 0], sizes = [9, 32], strides = [1, 1]} : vector<81x32xf32> to vector<9x32xf32>
    %167 = vector.extract_strided_slice %129 {offsets = [7, 0], sizes = [1, 32], strides = [1, 1]} : vector<18x32xf32> to vector<1x32xf32>
    %168 = vector.broadcast %167 : vector<1x32xf32> to vector<9x32xf32>
    %169 = arith.mulf %166, %168 : vector<9x32xf32>
    %170 = arith.addf %165, %169 : vector<9x32xf32>
    %171 = vector.extract_strided_slice %15 {offsets = [72, 0], sizes = [9, 32], strides = [1, 1]} : vector<81x32xf32> to vector<9x32xf32>
    %172 = vector.extract_strided_slice %129 {offsets = [8, 0], sizes = [1, 32], strides = [1, 1]} : vector<18x32xf32> to vector<1x32xf32>
    %173 = vector.broadcast %172 : vector<1x32xf32> to vector<9x32xf32>
    %174 = arith.mulf %171, %173 : vector<9x32xf32>
    %175 = arith.addf %170, %174 : vector<9x32xf32>
    %cst_51 = arith.constant 0.000000e+00 : f32
    %176 = vector.broadcast %cst_51 : f32 to vector<9x32xf32>
    %177 = vector.extract_strided_slice %15 {offsets = [0, 0], sizes = [9, 32], strides = [1, 1]} : vector<81x32xf32> to vector<9x32xf32>
    %178 = vector.extract_strided_slice %129 {offsets = [9, 0], sizes = [1, 32], strides = [1, 1]} : vector<18x32xf32> to vector<1x32xf32>
    %179 = vector.broadcast %178 : vector<1x32xf32> to vector<9x32xf32>
    %180 = arith.mulf %177, %179 : vector<9x32xf32>
    %181 = arith.addf %176, %180 : vector<9x32xf32>
    %182 = vector.extract_strided_slice %15 {offsets = [9, 0], sizes = [9, 32], strides = [1, 1]} : vector<81x32xf32> to vector<9x32xf32>
    %183 = vector.extract_strided_slice %129 {offsets = [10, 0], sizes = [1, 32], strides = [1, 1]} : vector<18x32xf32> to vector<1x32xf32>
    %184 = vector.broadcast %183 : vector<1x32xf32> to vector<9x32xf32>
    %185 = arith.mulf %182, %184 : vector<9x32xf32>
    %186 = arith.addf %181, %185 : vector<9x32xf32>
    %187 = vector.extract_strided_slice %15 {offsets = [18, 0], sizes = [9, 32], strides = [1, 1]} : vector<81x32xf32> to vector<9x32xf32>
    %188 = vector.extract_strided_slice %129 {offsets = [11, 0], sizes = [1, 32], strides = [1, 1]} : vector<18x32xf32> to vector<1x32xf32>
    %189 = vector.broadcast %188 : vector<1x32xf32> to vector<9x32xf32>
    %190 = arith.mulf %187, %189 : vector<9x32xf32>
    %191 = arith.addf %186, %190 : vector<9x32xf32>
    %192 = vector.extract_strided_slice %15 {offsets = [27, 0], sizes = [9, 32], strides = [1, 1]} : vector<81x32xf32> to vector<9x32xf32>
    %193 = vector.extract_strided_slice %129 {offsets = [12, 0], sizes = [1, 32], strides = [1, 1]} : vector<18x32xf32> to vector<1x32xf32>
    %194 = vector.broadcast %193 : vector<1x32xf32> to vector<9x32xf32>
    %195 = arith.mulf %192, %194 : vector<9x32xf32>
    %196 = arith.addf %191, %195 : vector<9x32xf32>
    %197 = vector.extract_strided_slice %15 {offsets = [36, 0], sizes = [9, 32], strides = [1, 1]} : vector<81x32xf32> to vector<9x32xf32>
    %198 = vector.extract_strided_slice %129 {offsets = [13, 0], sizes = [1, 32], strides = [1, 1]} : vector<18x32xf32> to vector<1x32xf32>
    %199 = vector.broadcast %198 : vector<1x32xf32> to vector<9x32xf32>
    %200 = arith.mulf %197, %199 : vector<9x32xf32>
    %201 = arith.addf %196, %200 : vector<9x32xf32>
    %202 = vector.extract_strided_slice %15 {offsets = [45, 0], sizes = [9, 32], strides = [1, 1]} : vector<81x32xf32> to vector<9x32xf32>
    %203 = vector.extract_strided_slice %129 {offsets = [14, 0], sizes = [1, 32], strides = [1, 1]} : vector<18x32xf32> to vector<1x32xf32>
    %204 = vector.broadcast %203 : vector<1x32xf32> to vector<9x32xf32>
    %205 = arith.mulf %202, %204 : vector<9x32xf32>
    %206 = arith.addf %201, %205 : vector<9x32xf32>
    %207 = vector.extract_strided_slice %15 {offsets = [54, 0], sizes = [9, 32], strides = [1, 1]} : vector<81x32xf32> to vector<9x32xf32>
    %208 = vector.extract_strided_slice %129 {offsets = [15, 0], sizes = [1, 32], strides = [1, 1]} : vector<18x32xf32> to vector<1x32xf32>
    %209 = vector.broadcast %208 : vector<1x32xf32> to vector<9x32xf32>
    %210 = arith.mulf %207, %209 : vector<9x32xf32>
    %211 = arith.addf %206, %210 : vector<9x32xf32>
    %212 = vector.extract_strided_slice %15 {offsets = [63, 0], sizes = [9, 32], strides = [1, 1]} : vector<81x32xf32> to vector<9x32xf32>
    %213 = vector.extract_strided_slice %129 {offsets = [16, 0], sizes = [1, 32], strides = [1, 1]} : vector<18x32xf32> to vector<1x32xf32>
    %214 = vector.broadcast %213 : vector<1x32xf32> to vector<9x32xf32>
    %215 = arith.mulf %212, %214 : vector<9x32xf32>
    %216 = arith.addf %211, %215 : vector<9x32xf32>
    %217 = vector.extract_strided_slice %15 {offsets = [72, 0], sizes = [9, 32], strides = [1, 1]} : vector<81x32xf32> to vector<9x32xf32>
    %218 = vector.extract_strided_slice %129 {offsets = [17, 0], sizes = [1, 32], strides = [1, 1]} : vector<18x32xf32> to vector<1x32xf32>
    %219 = vector.broadcast %218 : vector<1x32xf32> to vector<9x32xf32>
    %220 = arith.mulf %217, %219 : vector<9x32xf32>
    %221 = arith.addf %216, %220 : vector<9x32xf32>
    %222 = tpu.concatenate %175, %221 in 0 : vector<9x32xf32>, vector<9x32xf32> -> vector<18x32xf32>
    %223 = vector.broadcast %12 : vector<1x32xf32> to vector<18x32xf32>
    %224 = arith.addf %222, %223 : vector<18x32xf32>
    %225 = arith.truncf %224 : vector<18x32xf32> to vector<18x32xbf16>
    %c0_52 = arith.constant 0 : index
    %c0_53 = arith.constant 0 : index
    %c0_54 = arith.constant 0 : index
    %226 = vector.load %arg6[%c0_52, %c0_53, %c0_54] : memref<2x32x256xbf16, #tpu.memory_space<vmem>>, vector<1x32x256xbf16>
    %227 = vector.shape_cast %226 : vector<1x32x256xbf16> to vector<32x256xbf16>
    %cst_55 = arith.constant dense<0.000000e+00> : vector<18x256xf32>
    %228 = tpu.matmul %225, %227, %cst_55 {dimension_numbers = #tpu.dot_dimension_numbers<[1], [0], [0], [1], [0, 0, 1, 1], [], []>} : vector<18x32xbf16>, vector<32x256xbf16>, vector<18x256xf32> -> vector<18x256xf32>
    %229 = vector.broadcast %18 : vector<1x256xf32> to vector<18x256xf32>
    %230 = arith.addf %228, %229 : vector<18x256xf32>
    %231 = arith.truncf %230 : vector<18x256xf32> to vector<18x256xbf16>
    %c0_56 = arith.constant 0 : index
    %c0_57 = arith.constant 0 : index
    %c0_58 = arith.constant 0 : index
    %232 = vector.load %arg7[%c0_56, %c0_57, %c0_58] : memref<2x256x512xbf16, #tpu.memory_space<vmem>>, vector<1x256x512xbf16>
    %233 = vector.shape_cast %232 : vector<1x256x512xbf16> to vector<256x512xbf16>
    %cst_59 = arith.constant dense<0.000000e+00> : vector<18x512xf32>
    %234 = tpu.matmul %231, %233, %cst_59 {dimension_numbers = #tpu.dot_dimension_numbers<[1], [0], [0], [1], [0, 0, 1, 1], [], []>} : vector<18x256xbf16>, vector<256x512xbf16>, vector<18x512xf32> -> vector<18x512xf32>
    %235 = vector.broadcast %17 : vector<1x512xf32> to vector<18x512xf32>
    %236 = arith.addf %234, %235 : vector<18x512xf32>
    %cst_60 = arith.constant 5.000000e-01 : f32
    %237 = vector.broadcast %cst_60 : f32 to vector<18x512xf32>
    %238 = arith.mulf %237, %236 : vector<18x512xf32>
    %cst_61 = arith.constant 0.707106769 : f32
    %239 = vector.broadcast %cst_61 : f32 to vector<18x512xf32>
    %240 = arith.mulf %236, %239 : vector<18x512xf32>
    %241 = math.absf %240 : vector<18x512xf32>
    %cst_62 = arith.constant 0.327591091 : f32
    %242 = vector.broadcast %cst_62 : f32 to vector<18x512xf32>
    %243 = arith.mulf %242, %241 : vector<18x512xf32>
    %cst_63 = arith.constant 1.000000e+00 : f32
    %244 = vector.broadcast %cst_63 : f32 to vector<18x512xf32>
    %245 = arith.addf %244, %243 : vector<18x512xf32>
    %cst_64 = arith.constant 1.000000e+00 : f32
    %246 = vector.broadcast %cst_64 : f32 to vector<18x512xf32>
    %247 = arith.divf %246, %245 : vector<18x512xf32>
    %cst_65 = arith.constant 1.06140542 : f32
    %248 = vector.broadcast %cst_65 : f32 to vector<18x512xf32>
    %249 = arith.mulf %248, %247 : vector<18x512xf32>
    %cst_66 = arith.constant -1.45315206 : f32
    %250 = vector.broadcast %cst_66 : f32 to vector<18x512xf32>
    %251 = arith.addf %249, %250 : vector<18x512xf32>
    %252 = arith.mulf %251, %247 : vector<18x512xf32>
    %cst_67 = arith.constant 1.42141378 : f32
    %253 = vector.broadcast %cst_67 : f32 to vector<18x512xf32>
    %254 = arith.addf %252, %253 : vector<18x512xf32>
    %255 = arith.mulf %254, %247 : vector<18x512xf32>
    %cst_68 = arith.constant -0.284496725 : f32
    %256 = vector.broadcast %cst_68 : f32 to vector<18x512xf32>
    %257 = arith.addf %255, %256 : vector<18x512xf32>
    %258 = arith.mulf %257, %247 : vector<18x512xf32>
    %cst_69 = arith.constant 0.254829586 : f32
    %259 = vector.broadcast %cst_69 : f32 to vector<18x512xf32>
    %260 = arith.addf %258, %259 : vector<18x512xf32>
    %261 = arith.mulf %260, %247 : vector<18x512xf32>
    %cst_70 = arith.constant 0.000000e+00 : f32
    %262 = vector.broadcast %cst_70 : f32 to vector<18x512xf32>
    %263 = arith.subf %262, %241 : vector<18x512xf32>
    %264 = arith.mulf %263, %241 : vector<18x512xf32>
    %265 = math.exp %264 : vector<18x512xf32>
    %266 = arith.mulf %261, %265 : vector<18x512xf32>
    %cst_71 = arith.constant 1.000000e+00 : f32
    %267 = vector.broadcast %cst_71 : f32 to vector<18x512xf32>
    %268 = arith.subf %267, %266 : vector<18x512xf32>
    %cst_72 = arith.constant 0.000000e+00 : f32
    %269 = vector.broadcast %cst_72 : f32 to vector<18x512xf32>
    %270 = arith.cmpf oge, %240, %269 : vector<18x512xf32>
    %cst_73 = arith.constant 0.000000e+00 : f32
    %271 = vector.broadcast %cst_73 : f32 to vector<18x512xf32>
    %272 = arith.subf %271, %268 : vector<18x512xf32>
    %273 = arith.select %270, %268, %272 : vector<18x512xi1>, vector<18x512xf32>
    %cst_74 = arith.constant 1.000000e+00 : f32
    %274 = vector.broadcast %cst_74 : f32 to vector<18x512xf32>
    %275 = arith.addf %274, %273 : vector<18x512xf32>
    %276 = arith.mulf %238, %275 : vector<18x512xf32>
    %277 = arith.truncf %276 : vector<18x512xf32> to vector<18x512xbf16>
    %c0_75 = arith.constant 0 : index
    %c0_76 = arith.constant 0 : index
    %c0_77 = arith.constant 0 : index
    %278 = vector.load %arg8[%c0_75, %c0_76, %c0_77] : memref<2x512x32xbf16, #tpu.memory_space<vmem>>, vector<1x512x32xbf16>
    %279 = vector.shape_cast %278 : vector<1x512x32xbf16> to vector<512x32xbf16>
    %cst_78 = arith.constant dense<0.000000e+00> : vector<18x32xf32>
    %280 = tpu.matmul %277, %279, %cst_78 {dimension_numbers = #tpu.dot_dimension_numbers<[1], [0], [0], [1], [0, 0, 1, 1], [], []>} : vector<18x512xbf16>, vector<512x32xbf16>, vector<18x32xf32> -> vector<18x32xf32>
    %281 = vector.broadcast %13 : vector<1x32xf32> to vector<18x32xf32>
    %282 = arith.addf %280, %281 : vector<18x32xf32>
    %cst_79 = arith.constant 5.000000e-01 : f32
    %283 = vector.broadcast %cst_79 : f32 to vector<18x32xf32>
    %284 = arith.mulf %283, %282 : vector<18x32xf32>
    %cst_80 = arith.constant 0.707106769 : f32
    %285 = vector.broadcast %cst_80 : f32 to vector<18x32xf32>
    %286 = arith.mulf %282, %285 : vector<18x32xf32>
    %287 = math.absf %286 : vector<18x32xf32>
    %cst_81 = arith.constant 0.327591091 : f32
    %288 = vector.broadcast %cst_81 : f32 to vector<18x32xf32>
    %289 = arith.mulf %288, %287 : vector<18x32xf32>
    %cst_82 = arith.constant 1.000000e+00 : f32
    %290 = vector.broadcast %cst_82 : f32 to vector<18x32xf32>
    %291 = arith.addf %290, %289 : vector<18x32xf32>
    %cst_83 = arith.constant 1.000000e+00 : f32
    %292 = vector.broadcast %cst_83 : f32 to vector<18x32xf32>
    %293 = arith.divf %292, %291 : vector<18x32xf32>
    %cst_84 = arith.constant 1.06140542 : f32
    %294 = vector.broadcast %cst_84 : f32 to vector<18x32xf32>
    %295 = arith.mulf %294, %293 : vector<18x32xf32>
    %cst_85 = arith.constant -1.45315206 : f32
    %296 = vector.broadcast %cst_85 : f32 to vector<18x32xf32>
    %297 = arith.addf %295, %296 : vector<18x32xf32>
    %298 = arith.mulf %297, %293 : vector<18x32xf32>
    %cst_86 = arith.constant 1.42141378 : f32
    %299 = vector.broadcast %cst_86 : f32 to vector<18x32xf32>
    %300 = arith.addf %298, %299 : vector<18x32xf32>
    %301 = arith.mulf %300, %293 : vector<18x32xf32>
    %cst_87 = arith.constant -0.284496725 : f32
    %302 = vector.broadcast %cst_87 : f32 to vector<18x32xf32>
    %303 = arith.addf %301, %302 : vector<18x32xf32>
    %304 = arith.mulf %303, %293 : vector<18x32xf32>
    %cst_88 = arith.constant 0.254829586 : f32
    %305 = vector.broadcast %cst_88 : f32 to vector<18x32xf32>
    %306 = arith.addf %304, %305 : vector<18x32xf32>
    %307 = arith.mulf %306, %293 : vector<18x32xf32>
    %cst_89 = arith.constant 0.000000e+00 : f32
    %308 = vector.broadcast %cst_89 : f32 to vector<18x32xf32>
    %309 = arith.subf %308, %287 : vector<18x32xf32>
    %310 = arith.mulf %309, %287 : vector<18x32xf32>
    %311 = math.exp %310 : vector<18x32xf32>
    %312 = arith.mulf %307, %311 : vector<18x32xf32>
    %cst_90 = arith.constant 1.000000e+00 : f32
    %313 = vector.broadcast %cst_90 : f32 to vector<18x32xf32>
    %314 = arith.subf %313, %312 : vector<18x32xf32>
    %cst_91 = arith.constant 0.000000e+00 : f32
    %315 = vector.broadcast %cst_91 : f32 to vector<18x32xf32>
    %316 = arith.cmpf oge, %286, %315 : vector<18x32xf32>
    %cst_92 = arith.constant 0.000000e+00 : f32
    %317 = vector.broadcast %cst_92 : f32 to vector<18x32xf32>
    %318 = arith.subf %317, %314 : vector<18x32xf32>
    %319 = arith.select %316, %314, %318 : vector<18x32xi1>, vector<18x32xf32>
    %cst_93 = arith.constant 1.000000e+00 : f32
    %320 = vector.broadcast %cst_93 : f32 to vector<18x32xf32>
    %321 = arith.addf %320, %319 : vector<18x32xf32>
    %322 = arith.mulf %284, %321 : vector<18x32xf32>
    %323 = arith.addf %107, %322 : vector<18x32xf32>
    %c142 = arith.constant 142 : index
    %c0_94 = arith.constant 0 : index
    %324 = vector.load %arg2[%c142, %c0_94] : memref<262x32xf32, #tpu.memory_space<vmem>>, vector<1x32xf32>
    %c143 = arith.constant 143 : index
    %c0_95 = arith.constant 0 : index
    %325 = vector.load %arg2[%c143, %c0_95] : memref<262x32xf32, #tpu.memory_space<vmem>>, vector<1x32xf32>
    %c144 = arith.constant 144 : index
    %c0_96 = arith.constant 0 : index
    %326 = vector.load %arg2[%c144, %c0_96] : memref<262x32xf32, #tpu.memory_space<vmem>>, vector<1x32xf32>
    %c145 = arith.constant 145 : index
    %c0_97 = arith.constant 0 : index
    %327 = vector.load %arg2[%c145, %c0_97] : memref<262x32xf32, #tpu.memory_space<vmem>>, vector<1x32xf32>
    %c146 = arith.constant 146 : index
    %c0_98 = arith.constant 0 : index
    %328 = vector.load %arg2[%c146, %c0_98] : memref<262x32xf32, #tpu.memory_space<vmem>>, vector<1x32xf32>
    %c147 = arith.constant 147 : index
    %c0_99 = arith.constant 0 : index
    %329 = vector.load %arg2[%c147, %c0_99] : memref<262x32xf32, #tpu.memory_space<vmem>>, vector<1x32xf32>
    %c148 = arith.constant 148 : index
    %c0_100 = arith.constant 0 : index
    %330 = vector.load %arg2[%c148, %c0_100] : memref<262x32xf32, #tpu.memory_space<vmem>>, vector<1x32xf32>
    %c149 = arith.constant 149 : index
    %c0_101 = arith.constant 0 : index
    %331 = vector.load %arg2[%c149, %c0_101] : memref<262x32xf32, #tpu.memory_space<vmem>>, vector<32x32xf32>
    %c181 = arith.constant 181 : index
    %c0_102 = arith.constant 0 : index
    %332 = vector.load %arg2[%c181, %c0_102] : memref<262x32xf32, #tpu.memory_space<vmem>>, vector<81x32xf32>
    %c28_103 = arith.constant 28 : index
    %c0_104 = arith.constant 0 : index
    %333 = vector.load %arg3[%c28_103, %c0_104] : memref<46x18xf32, #tpu.memory_space<vmem>>, vector<18x18xf32>
    %c2 = arith.constant 2 : index
    %c0_105 = arith.constant 0 : index
    %334 = vector.load %arg4[%c2, %c0_105] : memref<4x512xf32, #tpu.memory_space<vmem>>, vector<1x512xf32>
    %c3 = arith.constant 3 : index
    %c0_106 = arith.constant 0 : index
    %335 = vector.load %arg4[%c3, %c0_106] : memref<4x512xf32, #tpu.memory_space<vmem>>, vector<1x256xf32>
    %cst_107 = arith.constant dense<0.000000e+00> : vector<18xf32>
    %336 = vector.multi_reduction <add>, %323, %cst_107 [1] : vector<18x32xf32> to vector<18xf32>
    %337 = vector.shape_cast %336 : vector<18xf32> to vector<18x1xf32>
    %cst_108 = arith.constant 3.200000e+01 : f32
    %338 = vector.broadcast %cst_108 : f32 to vector<18x1xf32>
    %339 = arith.divf %337, %338 : vector<18x1xf32>
    %340 = vector.broadcast %339 : vector<18x1xf32> to vector<18x32xf32>
    %341 = arith.subf %323, %340 : vector<18x32xf32>
    %342 = arith.mulf %341, %341 : vector<18x32xf32>
    %cst_109 = arith.constant dense<0.000000e+00> : vector<18xf32>
    %343 = vector.multi_reduction <add>, %342, %cst_109 [1] : vector<18x32xf32> to vector<18xf32>
    %344 = vector.shape_cast %343 : vector<18xf32> to vector<18x1xf32>
    %cst_110 = arith.constant 3.200000e+01 : f32
    %345 = vector.broadcast %cst_110 : f32 to vector<18x1xf32>
    %346 = arith.divf %344, %345 : vector<18x1xf32>
    %347 = vector.broadcast %339 : vector<18x1xf32> to vector<18x32xf32>
    %348 = arith.subf %323, %347 : vector<18x32xf32>
    %cst_111 = arith.constant 9.99999974E-6 : f32
    %349 = vector.broadcast %cst_111 : f32 to vector<18x1xf32>
    %350 = arith.addf %346, %349 : vector<18x1xf32>
    %351 = math.rsqrt %350 : vector<18x1xf32>
    %352 = vector.broadcast %351 : vector<18x1xf32> to vector<18x32xf32>
    %353 = arith.mulf %348, %352 : vector<18x32xf32>
    %354 = vector.broadcast %324 : vector<1x32xf32> to vector<18x32xf32>
    %355 = arith.mulf %353, %354 : vector<18x32xf32>
    %356 = vector.broadcast %325 : vector<1x32xf32> to vector<18x32xf32>
    %357 = arith.addf %355, %356 : vector<18x32xf32>
    %358 = arith.truncf %357 : vector<18x32xf32> to vector<18x32xbf16>
    %c1_112 = arith.constant 1 : index
    %c0_113 = arith.constant 0 : index
    %c0_114 = arith.constant 0 : index
    %359 = vector.load %arg5[%c1_112, %c0_113, %c0_114] : memref<2x32x96xbf16, #tpu.memory_space<vmem>>, vector<1x32x96xbf16>
    %360 = vector.shape_cast %359 : vector<1x32x96xbf16> to vector<32x96xbf16>
    %cst_115 = arith.constant dense<0.000000e+00> : vector<18x96xf32>
    %361 = tpu.matmul %358, %360, %cst_115 {dimension_numbers = #tpu.dot_dimension_numbers<[1], [0], [0], [1], [0, 0, 1, 1], [], []>} : vector<18x32xbf16>, vector<32x96xbf16>, vector<18x96xf32> -> vector<18x96xf32>
    %362 = vector.extract_strided_slice %361 {offsets = [0, 0], sizes = [18, 32], strides = [1, 1]} : vector<18x96xf32> to vector<18x32xf32>
    %363 = vector.extract_strided_slice %361 {offsets = [0, 32], sizes = [18, 32], strides = [1, 1]} : vector<18x96xf32> to vector<18x32xf32>
    %364 = vector.extract_strided_slice %361 {offsets = [0, 64], sizes = [18, 32], strides = [1, 1]} : vector<18x96xf32> to vector<18x32xf32>
    %cst_116 = arith.constant dense<0.000000e+00> : vector<4x32xf32>
    %365 = tpu.matmul %4, %362, %cst_116 {dimension_numbers = #tpu.dot_dimension_numbers<[1], [0], [0], [1], [0, 0, 1, 1], [], []>} : vector<4x18xf32>, vector<18x32xf32>, vector<4x32xf32> -> vector<4x32xf32>
    %366 = arith.mulf %365, %1 : vector<4x32xf32>
    %cst_117 = arith.constant dense<0.000000e+00> : vector<4x18xf32>
    %367 = tpu.matmul %366, %363, %cst_117 {dimension_numbers = #tpu.dot_dimension_numbers<[1], [1], [0], [0], [0, 0, 1, 0], [], []>} : vector<4x32xf32>, vector<18x32xf32>, vector<4x18xf32> -> vector<4x18xf32>
    %368 = arith.addf %367, %2 : vector<4x18xf32>
    %cst_118 = arith.constant dense<0xFF800000> : vector<4xf32>
    %369 = vector.multi_reduction <maximumf>, %368, %cst_118 [1] : vector<4x18xf32> to vector<4xf32>
    %370 = vector.shape_cast %369 : vector<4xf32> to vector<4x1xf32>
    %371 = vector.broadcast %370 : vector<4x1xf32> to vector<4x18xf32>
    %372 = arith.subf %368, %371 : vector<4x18xf32>
    %373 = math.exp %372 : vector<4x18xf32>
    %cst_119 = arith.constant dense<0.000000e+00> : vector<4xf32>
    %374 = vector.multi_reduction <add>, %373, %cst_119 [1] : vector<4x18xf32> to vector<4xf32>
    %375 = vector.shape_cast %374 : vector<4xf32> to vector<4x1xf32>
    %376 = tpu.reciprocal %375 {approx = true} : vector<4x1xf32> -> vector<4x1xf32>
    %377 = vector.broadcast %376 : vector<4x1xf32> to vector<4x18xf32>
    %378 = arith.mulf %373, %377 : vector<4x18xf32>
    %379 = tpu.transpose %378, [1, 0] : vector<4x18xf32> -> vector<18x4xf32>
    %cst_120 = arith.constant dense<0.000000e+00> : vector<18x32xf32>
    %380 = tpu.matmul %379, %1, %cst_120 {dimension_numbers = #tpu.dot_dimension_numbers<[1], [0], [0], [1], [0, 0, 1, 1], [], []>} : vector<18x4xf32>, vector<4x32xf32>, vector<18x32xf32> -> vector<18x32xf32>
    %381 = arith.mulf %380, %364 : vector<18x32xf32>
    %cst_121 = arith.constant dense<0.000000e+00> : vector<2x32xf32>
    %382 = tpu.matmul %3, %381, %cst_121 {dimension_numbers = #tpu.dot_dimension_numbers<[1], [0], [0], [1], [0, 0, 1, 1], [], []>} : vector<2x18xf32>, vector<18x32xf32>, vector<2x32xf32> -> vector<2x32xf32>
    %cst_122 = arith.constant dense<0.000000e+00> : vector<2x32xf32>
    %383 = tpu.matmul %382, %331, %cst_122 {dimension_numbers = #tpu.dot_dimension_numbers<[1], [0], [0], [1], [0, 0, 1, 1], [], []>} : vector<2x32xf32>, vector<32x32xf32>, vector<2x32xf32> -> vector<2x32xf32>
    %384 = vector.broadcast %326 : vector<1x32xf32> to vector<2x32xf32>
    %385 = arith.addf %383, %384 : vector<2x32xf32>
    %cst_123 = arith.constant dense<0.000000e+00> : vector<18x32xf32>
    %386 = tpu.matmul %333, %357, %cst_123 {dimension_numbers = #tpu.dot_dimension_numbers<[1], [0], [0], [1], [0, 0, 1, 1], [], []>} : vector<18x18xf32>, vector<18x32xf32>, vector<18x32xf32> -> vector<18x32xf32>
    %387 = vector.extract_strided_slice %357 {offsets = [0, 0], sizes = [9, 32], strides = [1, 1]} : vector<18x32xf32> to vector<9x32xf32>
    %388 = vector.extract_strided_slice %386 {offsets = [0, 0], sizes = [9, 32], strides = [1, 1]} : vector<18x32xf32> to vector<9x32xf32>
    %389 = tpu.transpose %387, [1, 0] : vector<9x32xf32> -> vector<32x9xf32>
    %cst_124 = arith.constant dense<0.000000e+00> : vector<32x32xf32>
    %390 = tpu.matmul %389, %388, %cst_124 {dimension_numbers = #tpu.dot_dimension_numbers<[1], [0], [0], [1], [0, 0, 1, 1], [], []>} : vector<32x9xf32>, vector<9x32xf32>, vector<32x32xf32> -> vector<32x32xf32>
    %cst_125 = arith.constant dense<0xFF800000> : vector<32xf32>
    %391 = vector.multi_reduction <maximumf>, %390, %cst_125 [1] : vector<32x32xf32> to vector<32xf32>
    %392 = vector.shape_cast %391 : vector<32xf32> to vector<32x1xf32>
    %393 = vector.broadcast %392 : vector<32x1xf32> to vector<32x32xf32>
    %394 = arith.subf %390, %393 : vector<32x32xf32>
    %395 = math.exp %394 : vector<32x32xf32>
    %cst_126 = arith.constant dense<0.000000e+00> : vector<32xf32>
    %396 = vector.multi_reduction <add>, %395, %cst_126 [1] : vector<32x32xf32> to vector<32xf32>
    %397 = vector.shape_cast %396 : vector<32xf32> to vector<32x1xf32>
    %398 = tpu.reciprocal %397 {approx = true} : vector<32x1xf32> -> vector<32x1xf32>
    %399 = vector.broadcast %398 : vector<32x1xf32> to vector<32x32xf32>
    %400 = arith.mulf %395, %399 : vector<32x32xf32>
    %401 = vector.extract_strided_slice %385 {offsets = [0, 0], sizes = [1, 32], strides = [1, 1]} : vector<2x32xf32> to vector<1x32xf32>
    %cst_127 = arith.constant dense<0.000000e+00> : vector<1x32xf32>
    %402 = tpu.matmul %401, %400, %cst_127 {dimension_numbers = #tpu.dot_dimension_numbers<[1], [0], [0], [1], [0, 0, 1, 1], [], []>} : vector<1x32xf32>, vector<32x32xf32>, vector<1x32xf32> -> vector<1x32xf32>
    %403 = vector.shape_cast %402 : vector<1x32xf32> to vector<1x32xf32>
    %404 = vector.broadcast %403 : vector<1x32xf32> to vector<9x32xf32>
    %405 = vector.extract_strided_slice %357 {offsets = [9, 0], sizes = [9, 32], strides = [1, 1]} : vector<18x32xf32> to vector<9x32xf32>
    %406 = vector.extract_strided_slice %386 {offsets = [9, 0], sizes = [9, 32], strides = [1, 1]} : vector<18x32xf32> to vector<9x32xf32>
    %407 = tpu.transpose %405, [1, 0] : vector<9x32xf32> -> vector<32x9xf32>
    %cst_128 = arith.constant dense<0.000000e+00> : vector<32x32xf32>
    %408 = tpu.matmul %407, %406, %cst_128 {dimension_numbers = #tpu.dot_dimension_numbers<[1], [0], [0], [1], [0, 0, 1, 1], [], []>} : vector<32x9xf32>, vector<9x32xf32>, vector<32x32xf32> -> vector<32x32xf32>
    %cst_129 = arith.constant dense<0xFF800000> : vector<32xf32>
    %409 = vector.multi_reduction <maximumf>, %408, %cst_129 [1] : vector<32x32xf32> to vector<32xf32>
    %410 = vector.shape_cast %409 : vector<32xf32> to vector<32x1xf32>
    %411 = vector.broadcast %410 : vector<32x1xf32> to vector<32x32xf32>
    %412 = arith.subf %408, %411 : vector<32x32xf32>
    %413 = math.exp %412 : vector<32x32xf32>
    %cst_130 = arith.constant dense<0.000000e+00> : vector<32xf32>
    %414 = vector.multi_reduction <add>, %413, %cst_130 [1] : vector<32x32xf32> to vector<32xf32>
    %415 = vector.shape_cast %414 : vector<32xf32> to vector<32x1xf32>
    %416 = tpu.reciprocal %415 {approx = true} : vector<32x1xf32> -> vector<32x1xf32>
    %417 = vector.broadcast %416 : vector<32x1xf32> to vector<32x32xf32>
    %418 = arith.mulf %413, %417 : vector<32x32xf32>
    %419 = vector.extract_strided_slice %385 {offsets = [1, 0], sizes = [1, 32], strides = [1, 1]} : vector<2x32xf32> to vector<1x32xf32>
    %cst_131 = arith.constant dense<0.000000e+00> : vector<1x32xf32>
    %420 = tpu.matmul %419, %418, %cst_131 {dimension_numbers = #tpu.dot_dimension_numbers<[1], [0], [0], [1], [0, 0, 1, 1], [], []>} : vector<1x32xf32>, vector<32x32xf32>, vector<1x32xf32> -> vector<1x32xf32>
    %421 = vector.shape_cast %420 : vector<1x32xf32> to vector<1x32xf32>
    %422 = vector.broadcast %421 : vector<1x32xf32> to vector<9x32xf32>
    %423 = tpu.concatenate %404, %422 in 0 : vector<9x32xf32>, vector<9x32xf32> -> vector<18x32xf32>
    %424 = arith.addf %323, %423 : vector<18x32xf32>
    %cst_132 = arith.constant dense<0.000000e+00> : vector<18xf32>
    %425 = vector.multi_reduction <add>, %424, %cst_132 [1] : vector<18x32xf32> to vector<18xf32>
    %426 = vector.shape_cast %425 : vector<18xf32> to vector<18x1xf32>
    %cst_133 = arith.constant 3.200000e+01 : f32
    %427 = vector.broadcast %cst_133 : f32 to vector<18x1xf32>
    %428 = arith.divf %426, %427 : vector<18x1xf32>
    %429 = vector.broadcast %428 : vector<18x1xf32> to vector<18x32xf32>
    %430 = arith.subf %424, %429 : vector<18x32xf32>
    %431 = arith.mulf %430, %430 : vector<18x32xf32>
    %cst_134 = arith.constant dense<0.000000e+00> : vector<18xf32>
    %432 = vector.multi_reduction <add>, %431, %cst_134 [1] : vector<18x32xf32> to vector<18xf32>
    %433 = vector.shape_cast %432 : vector<18xf32> to vector<18x1xf32>
    %cst_135 = arith.constant 3.200000e+01 : f32
    %434 = vector.broadcast %cst_135 : f32 to vector<18x1xf32>
    %435 = arith.divf %433, %434 : vector<18x1xf32>
    %436 = vector.broadcast %428 : vector<18x1xf32> to vector<18x32xf32>
    %437 = arith.subf %424, %436 : vector<18x32xf32>
    %cst_136 = arith.constant 9.99999974E-6 : f32
    %438 = vector.broadcast %cst_136 : f32 to vector<18x1xf32>
    %439 = arith.addf %435, %438 : vector<18x1xf32>
    %440 = math.rsqrt %439 : vector<18x1xf32>
    %441 = vector.broadcast %440 : vector<18x1xf32> to vector<18x32xf32>
    %442 = arith.mulf %437, %441 : vector<18x32xf32>
    %443 = vector.broadcast %327 : vector<1x32xf32> to vector<18x32xf32>
    %444 = arith.mulf %442, %443 : vector<18x32xf32>
    %445 = vector.broadcast %328 : vector<1x32xf32> to vector<18x32xf32>
    %446 = arith.addf %444, %445 : vector<18x32xf32>
    %cst_137 = arith.constant 0.000000e+00 : f32
    %447 = vector.broadcast %cst_137 : f32 to vector<9x32xf32>
    %448 = vector.extract_strided_slice %332 {offsets = [0, 0], sizes = [9, 32], strides = [1, 1]} : vector<81x32xf32> to vector<9x32xf32>
    %449 = vector.extract_strided_slice %446 {offsets = [0, 0], sizes = [1, 32], strides = [1, 1]} : vector<18x32xf32> to vector<1x32xf32>
    %450 = vector.broadcast %449 : vector<1x32xf32> to vector<9x32xf32>
    %451 = arith.mulf %448, %450 : vector<9x32xf32>
    %452 = arith.addf %447, %451 : vector<9x32xf32>
    %453 = vector.extract_strided_slice %332 {offsets = [9, 0], sizes = [9, 32], strides = [1, 1]} : vector<81x32xf32> to vector<9x32xf32>
    %454 = vector.extract_strided_slice %446 {offsets = [1, 0], sizes = [1, 32], strides = [1, 1]} : vector<18x32xf32> to vector<1x32xf32>
    %455 = vector.broadcast %454 : vector<1x32xf32> to vector<9x32xf32>
    %456 = arith.mulf %453, %455 : vector<9x32xf32>
    %457 = arith.addf %452, %456 : vector<9x32xf32>
    %458 = vector.extract_strided_slice %332 {offsets = [18, 0], sizes = [9, 32], strides = [1, 1]} : vector<81x32xf32> to vector<9x32xf32>
    %459 = vector.extract_strided_slice %446 {offsets = [2, 0], sizes = [1, 32], strides = [1, 1]} : vector<18x32xf32> to vector<1x32xf32>
    %460 = vector.broadcast %459 : vector<1x32xf32> to vector<9x32xf32>
    %461 = arith.mulf %458, %460 : vector<9x32xf32>
    %462 = arith.addf %457, %461 : vector<9x32xf32>
    %463 = vector.extract_strided_slice %332 {offsets = [27, 0], sizes = [9, 32], strides = [1, 1]} : vector<81x32xf32> to vector<9x32xf32>
    %464 = vector.extract_strided_slice %446 {offsets = [3, 0], sizes = [1, 32], strides = [1, 1]} : vector<18x32xf32> to vector<1x32xf32>
    %465 = vector.broadcast %464 : vector<1x32xf32> to vector<9x32xf32>
    %466 = arith.mulf %463, %465 : vector<9x32xf32>
    %467 = arith.addf %462, %466 : vector<9x32xf32>
    %468 = vector.extract_strided_slice %332 {offsets = [36, 0], sizes = [9, 32], strides = [1, 1]} : vector<81x32xf32> to vector<9x32xf32>
    %469 = vector.extract_strided_slice %446 {offsets = [4, 0], sizes = [1, 32], strides = [1, 1]} : vector<18x32xf32> to vector<1x32xf32>
    %470 = vector.broadcast %469 : vector<1x32xf32> to vector<9x32xf32>
    %471 = arith.mulf %468, %470 : vector<9x32xf32>
    %472 = arith.addf %467, %471 : vector<9x32xf32>
    %473 = vector.extract_strided_slice %332 {offsets = [45, 0], sizes = [9, 32], strides = [1, 1]} : vector<81x32xf32> to vector<9x32xf32>
    %474 = vector.extract_strided_slice %446 {offsets = [5, 0], sizes = [1, 32], strides = [1, 1]} : vector<18x32xf32> to vector<1x32xf32>
    %475 = vector.broadcast %474 : vector<1x32xf32> to vector<9x32xf32>
    %476 = arith.mulf %473, %475 : vector<9x32xf32>
    %477 = arith.addf %472, %476 : vector<9x32xf32>
    %478 = vector.extract_strided_slice %332 {offsets = [54, 0], sizes = [9, 32], strides = [1, 1]} : vector<81x32xf32> to vector<9x32xf32>
    %479 = vector.extract_strided_slice %446 {offsets = [6, 0], sizes = [1, 32], strides = [1, 1]} : vector<18x32xf32> to vector<1x32xf32>
    %480 = vector.broadcast %479 : vector<1x32xf32> to vector<9x32xf32>
    %481 = arith.mulf %478, %480 : vector<9x32xf32>
    %482 = arith.addf %477, %481 : vector<9x32xf32>
    %483 = vector.extract_strided_slice %332 {offsets = [63, 0], sizes = [9, 32], strides = [1, 1]} : vector<81x32xf32> to vector<9x32xf32>
    %484 = vector.extract_strided_slice %446 {offsets = [7, 0], sizes = [1, 32], strides = [1, 1]} : vector<18x32xf32> to vector<1x32xf32>
    %485 = vector.broadcast %484 : vector<1x32xf32> to vector<9x32xf32>
    %486 = arith.mulf %483, %485 : vector<9x32xf32>
    %487 = arith.addf %482, %486 : vector<9x32xf32>
    %488 = vector.extract_strided_slice %332 {offsets = [72, 0], sizes = [9, 32], strides = [1, 1]} : vector<81x32xf32> to vector<9x32xf32>
    %489 = vector.extract_strided_slice %446 {offsets = [8, 0], sizes = [1, 32], strides = [1, 1]} : vector<18x32xf32> to vector<1x32xf32>
    %490 = vector.broadcast %489 : vector<1x32xf32> to vector<9x32xf32>
    %491 = arith.mulf %488, %490 : vector<9x32xf32>
    %492 = arith.addf %487, %491 : vector<9x32xf32>
    %cst_138 = arith.constant 0.000000e+00 : f32
    %493 = vector.broadcast %cst_138 : f32 to vector<9x32xf32>
    %494 = vector.extract_strided_slice %332 {offsets = [0, 0], sizes = [9, 32], strides = [1, 1]} : vector<81x32xf32> to vector<9x32xf32>
    %495 = vector.extract_strided_slice %446 {offsets = [9, 0], sizes = [1, 32], strides = [1, 1]} : vector<18x32xf32> to vector<1x32xf32>
    %496 = vector.broadcast %495 : vector<1x32xf32> to vector<9x32xf32>
    %497 = arith.mulf %494, %496 : vector<9x32xf32>
    %498 = arith.addf %493, %497 : vector<9x32xf32>
    %499 = vector.extract_strided_slice %332 {offsets = [9, 0], sizes = [9, 32], strides = [1, 1]} : vector<81x32xf32> to vector<9x32xf32>
    %500 = vector.extract_strided_slice %446 {offsets = [10, 0], sizes = [1, 32], strides = [1, 1]} : vector<18x32xf32> to vector<1x32xf32>
    %501 = vector.broadcast %500 : vector<1x32xf32> to vector<9x32xf32>
    %502 = arith.mulf %499, %501 : vector<9x32xf32>
    %503 = arith.addf %498, %502 : vector<9x32xf32>
    %504 = vector.extract_strided_slice %332 {offsets = [18, 0], sizes = [9, 32], strides = [1, 1]} : vector<81x32xf32> to vector<9x32xf32>
    %505 = vector.extract_strided_slice %446 {offsets = [11, 0], sizes = [1, 32], strides = [1, 1]} : vector<18x32xf32> to vector<1x32xf32>
    %506 = vector.broadcast %505 : vector<1x32xf32> to vector<9x32xf32>
    %507 = arith.mulf %504, %506 : vector<9x32xf32>
    %508 = arith.addf %503, %507 : vector<9x32xf32>
    %509 = vector.extract_strided_slice %332 {offsets = [27, 0], sizes = [9, 32], strides = [1, 1]} : vector<81x32xf32> to vector<9x32xf32>
    %510 = vector.extract_strided_slice %446 {offsets = [12, 0], sizes = [1, 32], strides = [1, 1]} : vector<18x32xf32> to vector<1x32xf32>
    %511 = vector.broadcast %510 : vector<1x32xf32> to vector<9x32xf32>
    %512 = arith.mulf %509, %511 : vector<9x32xf32>
    %513 = arith.addf %508, %512 : vector<9x32xf32>
    %514 = vector.extract_strided_slice %332 {offsets = [36, 0], sizes = [9, 32], strides = [1, 1]} : vector<81x32xf32> to vector<9x32xf32>
    %515 = vector.extract_strided_slice %446 {offsets = [13, 0], sizes = [1, 32], strides = [1, 1]} : vector<18x32xf32> to vector<1x32xf32>
    %516 = vector.broadcast %515 : vector<1x32xf32> to vector<9x32xf32>
    %517 = arith.mulf %514, %516 : vector<9x32xf32>
    %518 = arith.addf %513, %517 : vector<9x32xf32>
    %519 = vector.extract_strided_slice %332 {offsets = [45, 0], sizes = [9, 32], strides = [1, 1]} : vector<81x32xf32> to vector<9x32xf32>
    %520 = vector.extract_strided_slice %446 {offsets = [14, 0], sizes = [1, 32], strides = [1, 1]} : vector<18x32xf32> to vector<1x32xf32>
    %521 = vector.broadcast %520 : vector<1x32xf32> to vector<9x32xf32>
    %522 = arith.mulf %519, %521 : vector<9x32xf32>
    %523 = arith.addf %518, %522 : vector<9x32xf32>
    %524 = vector.extract_strided_slice %332 {offsets = [54, 0], sizes = [9, 32], strides = [1, 1]} : vector<81x32xf32> to vector<9x32xf32>
    %525 = vector.extract_strided_slice %446 {offsets = [15, 0], sizes = [1, 32], strides = [1, 1]} : vector<18x32xf32> to vector<1x32xf32>
    %526 = vector.broadcast %525 : vector<1x32xf32> to vector<9x32xf32>
    %527 = arith.mulf %524, %526 : vector<9x32xf32>
    %528 = arith.addf %523, %527 : vector<9x32xf32>
    %529 = vector.extract_strided_slice %332 {offsets = [63, 0], sizes = [9, 32], strides = [1, 1]} : vector<81x32xf32> to vector<9x32xf32>
    %530 = vector.extract_strided_slice %446 {offsets = [16, 0], sizes = [1, 32], strides = [1, 1]} : vector<18x32xf32> to vector<1x32xf32>
    %531 = vector.broadcast %530 : vector<1x32xf32> to vector<9x32xf32>
    %532 = arith.mulf %529, %531 : vector<9x32xf32>
    %533 = arith.addf %528, %532 : vector<9x32xf32>
    %534 = vector.extract_strided_slice %332 {offsets = [72, 0], sizes = [9, 32], strides = [1, 1]} : vector<81x32xf32> to vector<9x32xf32>
    %535 = vector.extract_strided_slice %446 {offsets = [17, 0], sizes = [1, 32], strides = [1, 1]} : vector<18x32xf32> to vector<1x32xf32>
    %536 = vector.broadcast %535 : vector<1x32xf32> to vector<9x32xf32>
    %537 = arith.mulf %534, %536 : vector<9x32xf32>
    %538 = arith.addf %533, %537 : vector<9x32xf32>
    %539 = tpu.concatenate %492, %538 in 0 : vector<9x32xf32>, vector<9x32xf32> -> vector<18x32xf32>
    %540 = vector.broadcast %329 : vector<1x32xf32> to vector<18x32xf32>
    %541 = arith.addf %539, %540 : vector<18x32xf32>
    %542 = arith.truncf %541 : vector<18x32xf32> to vector<18x32xbf16>
    %c1_139 = arith.constant 1 : index
    %c0_140 = arith.constant 0 : index
    %c0_141 = arith.constant 0 : index
    %543 = vector.load %arg6[%c1_139, %c0_140, %c0_141] : memref<2x32x256xbf16, #tpu.memory_space<vmem>>, vector<1x32x256xbf16>
    %544 = vector.shape_cast %543 : vector<1x32x256xbf16> to vector<32x256xbf16>
    %cst_142 = arith.constant dense<0.000000e+00> : vector<18x256xf32>
    %545 = tpu.matmul %542, %544, %cst_142 {dimension_numbers = #tpu.dot_dimension_numbers<[1], [0], [0], [1], [0, 0, 1, 1], [], []>} : vector<18x32xbf16>, vector<32x256xbf16>, vector<18x256xf32> -> vector<18x256xf32>
    %546 = vector.broadcast %335 : vector<1x256xf32> to vector<18x256xf32>
    %547 = arith.addf %545, %546 : vector<18x256xf32>
    %548 = arith.truncf %547 : vector<18x256xf32> to vector<18x256xbf16>
    %c1_143 = arith.constant 1 : index
    %c0_144 = arith.constant 0 : index
    %c0_145 = arith.constant 0 : index
    %549 = vector.load %arg7[%c1_143, %c0_144, %c0_145] : memref<2x256x512xbf16, #tpu.memory_space<vmem>>, vector<1x256x512xbf16>
    %550 = vector.shape_cast %549 : vector<1x256x512xbf16> to vector<256x512xbf16>
    %cst_146 = arith.constant dense<0.000000e+00> : vector<18x512xf32>
    %551 = tpu.matmul %548, %550, %cst_146 {dimension_numbers = #tpu.dot_dimension_numbers<[1], [0], [0], [1], [0, 0, 1, 1], [], []>} : vector<18x256xbf16>, vector<256x512xbf16>, vector<18x512xf32> -> vector<18x512xf32>
    %552 = vector.broadcast %334 : vector<1x512xf32> to vector<18x512xf32>
    %553 = arith.addf %551, %552 : vector<18x512xf32>
    %cst_147 = arith.constant 5.000000e-01 : f32
    %554 = vector.broadcast %cst_147 : f32 to vector<18x512xf32>
    %555 = arith.mulf %554, %553 : vector<18x512xf32>
    %cst_148 = arith.constant 0.707106769 : f32
    %556 = vector.broadcast %cst_148 : f32 to vector<18x512xf32>
    %557 = arith.mulf %553, %556 : vector<18x512xf32>
    %558 = math.absf %557 : vector<18x512xf32>
    %cst_149 = arith.constant 0.327591091 : f32
    %559 = vector.broadcast %cst_149 : f32 to vector<18x512xf32>
    %560 = arith.mulf %559, %558 : vector<18x512xf32>
    %cst_150 = arith.constant 1.000000e+00 : f32
    %561 = vector.broadcast %cst_150 : f32 to vector<18x512xf32>
    %562 = arith.addf %561, %560 : vector<18x512xf32>
    %cst_151 = arith.constant 1.000000e+00 : f32
    %563 = vector.broadcast %cst_151 : f32 to vector<18x512xf32>
    %564 = arith.divf %563, %562 : vector<18x512xf32>
    %cst_152 = arith.constant 1.06140542 : f32
    %565 = vector.broadcast %cst_152 : f32 to vector<18x512xf32>
    %566 = arith.mulf %565, %564 : vector<18x512xf32>
    %cst_153 = arith.constant -1.45315206 : f32
    %567 = vector.broadcast %cst_153 : f32 to vector<18x512xf32>
    %568 = arith.addf %566, %567 : vector<18x512xf32>
    %569 = arith.mulf %568, %564 : vector<18x512xf32>
    %cst_154 = arith.constant 1.42141378 : f32
    %570 = vector.broadcast %cst_154 : f32 to vector<18x512xf32>
    %571 = arith.addf %569, %570 : vector<18x512xf32>
    %572 = arith.mulf %571, %564 : vector<18x512xf32>
    %cst_155 = arith.constant -0.284496725 : f32
    %573 = vector.broadcast %cst_155 : f32 to vector<18x512xf32>
    %574 = arith.addf %572, %573 : vector<18x512xf32>
    %575 = arith.mulf %574, %564 : vector<18x512xf32>
    %cst_156 = arith.constant 0.254829586 : f32
    %576 = vector.broadcast %cst_156 : f32 to vector<18x512xf32>
    %577 = arith.addf %575, %576 : vector<18x512xf32>
    %578 = arith.mulf %577, %564 : vector<18x512xf32>
    %cst_157 = arith.constant 0.000000e+00 : f32
    %579 = vector.broadcast %cst_157 : f32 to vector<18x512xf32>
    %580 = arith.subf %579, %558 : vector<18x512xf32>
    %581 = arith.mulf %580, %558 : vector<18x512xf32>
    %582 = math.exp %581 : vector<18x512xf32>
    %583 = arith.mulf %578, %582 : vector<18x512xf32>
    %cst_158 = arith.constant 1.000000e+00 : f32
    %584 = vector.broadcast %cst_158 : f32 to vector<18x512xf32>
    %585 = arith.subf %584, %583 : vector<18x512xf32>
    %cst_159 = arith.constant 0.000000e+00 : f32
    %586 = vector.broadcast %cst_159 : f32 to vector<18x512xf32>
    %587 = arith.cmpf oge, %557, %586 : vector<18x512xf32>
    %cst_160 = arith.constant 0.000000e+00 : f32
    %588 = vector.broadcast %cst_160 : f32 to vector<18x512xf32>
    %589 = arith.subf %588, %585 : vector<18x512xf32>
    %590 = arith.select %587, %585, %589 : vector<18x512xi1>, vector<18x512xf32>
    %cst_161 = arith.constant 1.000000e+00 : f32
    %591 = vector.broadcast %cst_161 : f32 to vector<18x512xf32>
    %592 = arith.addf %591, %590 : vector<18x512xf32>
    %593 = arith.mulf %555, %592 : vector<18x512xf32>
    %594 = arith.truncf %593 : vector<18x512xf32> to vector<18x512xbf16>
    %c1_162 = arith.constant 1 : index
    %c0_163 = arith.constant 0 : index
    %c0_164 = arith.constant 0 : index
    %595 = vector.load %arg8[%c1_162, %c0_163, %c0_164] : memref<2x512x32xbf16, #tpu.memory_space<vmem>>, vector<1x512x32xbf16>
    %596 = vector.shape_cast %595 : vector<1x512x32xbf16> to vector<512x32xbf16>
    %cst_165 = arith.constant dense<0.000000e+00> : vector<18x32xf32>
    %597 = tpu.matmul %594, %596, %cst_165 {dimension_numbers = #tpu.dot_dimension_numbers<[1], [0], [0], [1], [0, 0, 1, 1], [], []>} : vector<18x512xbf16>, vector<512x32xbf16>, vector<18x32xf32> -> vector<18x32xf32>
    %598 = vector.broadcast %330 : vector<1x32xf32> to vector<18x32xf32>
    %599 = arith.addf %597, %598 : vector<18x32xf32>
    %cst_166 = arith.constant 5.000000e-01 : f32
    %600 = vector.broadcast %cst_166 : f32 to vector<18x32xf32>
    %601 = arith.mulf %600, %599 : vector<18x32xf32>
    %cst_167 = arith.constant 0.707106769 : f32
    %602 = vector.broadcast %cst_167 : f32 to vector<18x32xf32>
    %603 = arith.mulf %599, %602 : vector<18x32xf32>
    %604 = math.absf %603 : vector<18x32xf32>
    %cst_168 = arith.constant 0.327591091 : f32
    %605 = vector.broadcast %cst_168 : f32 to vector<18x32xf32>
    %606 = arith.mulf %605, %604 : vector<18x32xf32>
    %cst_169 = arith.constant 1.000000e+00 : f32
    %607 = vector.broadcast %cst_169 : f32 to vector<18x32xf32>
    %608 = arith.addf %607, %606 : vector<18x32xf32>
    %cst_170 = arith.constant 1.000000e+00 : f32
    %609 = vector.broadcast %cst_170 : f32 to vector<18x32xf32>
    %610 = arith.divf %609, %608 : vector<18x32xf32>
    %cst_171 = arith.constant 1.06140542 : f32
    %611 = vector.broadcast %cst_171 : f32 to vector<18x32xf32>
    %612 = arith.mulf %611, %610 : vector<18x32xf32>
    %cst_172 = arith.constant -1.45315206 : f32
    %613 = vector.broadcast %cst_172 : f32 to vector<18x32xf32>
    %614 = arith.addf %612, %613 : vector<18x32xf32>
    %615 = arith.mulf %614, %610 : vector<18x32xf32>
    %cst_173 = arith.constant 1.42141378 : f32
    %616 = vector.broadcast %cst_173 : f32 to vector<18x32xf32>
    %617 = arith.addf %615, %616 : vector<18x32xf32>
    %618 = arith.mulf %617, %610 : vector<18x32xf32>
    %cst_174 = arith.constant -0.284496725 : f32
    %619 = vector.broadcast %cst_174 : f32 to vector<18x32xf32>
    %620 = arith.addf %618, %619 : vector<18x32xf32>
    %621 = arith.mulf %620, %610 : vector<18x32xf32>
    %cst_175 = arith.constant 0.254829586 : f32
    %622 = vector.broadcast %cst_175 : f32 to vector<18x32xf32>
    %623 = arith.addf %621, %622 : vector<18x32xf32>
    %624 = arith.mulf %623, %610 : vector<18x32xf32>
    %cst_176 = arith.constant 0.000000e+00 : f32
    %625 = vector.broadcast %cst_176 : f32 to vector<18x32xf32>
    %626 = arith.subf %625, %604 : vector<18x32xf32>
    %627 = arith.mulf %626, %604 : vector<18x32xf32>
    %628 = math.exp %627 : vector<18x32xf32>
    %629 = arith.mulf %624, %628 : vector<18x32xf32>
    %cst_177 = arith.constant 1.000000e+00 : f32
    %630 = vector.broadcast %cst_177 : f32 to vector<18x32xf32>
    %631 = arith.subf %630, %629 : vector<18x32xf32>
    %cst_178 = arith.constant 0.000000e+00 : f32
    %632 = vector.broadcast %cst_178 : f32 to vector<18x32xf32>
    %633 = arith.cmpf oge, %603, %632 : vector<18x32xf32>
    %cst_179 = arith.constant 0.000000e+00 : f32
    %634 = vector.broadcast %cst_179 : f32 to vector<18x32xf32>
    %635 = arith.subf %634, %631 : vector<18x32xf32>
    %636 = arith.select %633, %631, %635 : vector<18x32xi1>, vector<18x32xf32>
    %cst_180 = arith.constant 1.000000e+00 : f32
    %637 = vector.broadcast %cst_180 : f32 to vector<18x32xf32>
    %638 = arith.addf %637, %636 : vector<18x32xf32>
    %639 = arith.mulf %601, %638 : vector<18x32xf32>
    %640 = arith.addf %424, %639 : vector<18x32xf32>
    %c0_181 = arith.constant 0 : index
    %c0_182 = arith.constant 0 : index
    %641 = vector.load %arg9[%c0_181, %c0_182] : memref<18x32xf32, #tpu.memory_space<vmem>>, vector<18x32xf32>
    tpu.vector_store %arg9[%c0_181, %c0_182], %640 {strides = array<i32>} : memref<18x32xf32, #tpu.memory_space<vmem>>, vector<18x32xf32>,
    return
  }
  func.func @transform_0(%arg0: i32) -> (i32, i32) {
    %c0_i32 = arith.constant 0 : i32
    %c0_i32_0 = arith.constant 0 : i32
    return %arg0, %c0_i32 : i32, i32
  }
  func.func @transform_1(%arg0: i32) -> (i32, i32) {
    %c0_i32 = arith.constant 0 : i32
    %c0_i32_0 = arith.constant 0 : i32
    %c0_i32_1 = arith.constant 0 : i32
    return %c0_i32, %c0_i32_0 : i32, i32
  }
  func.func @transform_2(%arg0: i32) -> (i32, i32) {
    %c0_i32 = arith.constant 0 : i32
    %c0_i32_0 = arith.constant 0 : i32
    %c0_i32_1 = arith.constant 0 : i32
    return %c0_i32, %c0_i32_0 : i32, i32
  }
  func.func @transform_3(%arg0: i32) -> (i32, i32) {
    %c0_i32 = arith.constant 0 : i32
    %c0_i32_0 = arith.constant 0 : i32
    %c0_i32_1 = arith.constant 0 : i32
    return %c0_i32, %c0_i32_0 : i32, i32
  }
  func.func @transform_4(%arg0: i32) -> (i32, i32, i32) {
    %c0_i32 = arith.constant 0 : i32
    %c0_i32_0 = arith.constant 0 : i32
    %c0_i32_1 = arith.constant 0 : i32
    %c0_i32_2 = arith.constant 0 : i32
    return %c0_i32, %c0_i32_0, %c0_i32_1 : i32, i32, i32
  }
  func.func @transform_5(%arg0: i32) -> (i32, i32, i32) {
    %c0_i32 = arith.constant 0 : i32
    %c0_i32_0 = arith.constant 0 : i32
    %c0_i32_1 = arith.constant 0 : i32
    %c0_i32_2 = arith.constant 0 : i32
    return %c0_i32, %c0_i32_0, %c0_i32_1 : i32, i32, i32
  }
  func.func @transform_6(%arg0: i32) -> (i32, i32, i32) {
    %c0_i32 = arith.constant 0 : i32
    %c0_i32_0 = arith.constant 0 : i32
    %c0_i32_1 = arith.constant 0 : i32
    %c0_i32_2 = arith.constant 0 : i32
    return %c0_i32, %c0_i32_0, %c0_i32_1 : i32, i32, i32
  }
  func.func @transform_7(%arg0: i32) -> (i32, i32, i32) {
    %c0_i32 = arith.constant 0 : i32
    %c0_i32_0 = arith.constant 0 : i32
    %c0_i32_1 = arith.constant 0 : i32
    %c0_i32_2 = arith.constant 0 : i32
    return %c0_i32, %c0_i32_0, %c0_i32_1 : i32, i32, i32
  }
  func.func @transform_8(%arg0: i32) -> (i32, i32) {
    %c0_i32 = arith.constant 0 : i32
    %c0_i32_0 = arith.constant 0 : i32
    return %arg0, %c0_i32 : i32, i32
  }
}

</mosaic_0001>

<bundles_post_ra>
// kernel: subnet_forward.1
= control target key start
LH: loop header
LB: loop body
LE: loop exit
PB: predicated region body
PF: predicated region fallthrough
CT: control target
= control target key end

     0   :  { %13 = vsyncpa [#allocation3], 0  ;;  %s9594_s0 = inlined_call_operand.vmem [shape: f32[18,32], index: 0, kind: input, shape index: {}]   ;;  %s9595_s1 = inlined_call_operand.vmem [shape: f32[262,32], index: 1, kind: input, shape index: {}]   ;;  %s9596_s2 = inlined_call_operand.vmem [shape: f32[46,18], index: 2, kind: input, shape index: {}]   ;;  %s9597_s3 = inlined_call_operand.hbm [shape: f32[4,512], index: 3, kind: input, shape index: {}]   ;;  %s9598_s4 = inlined_call_operand.vmem [shape: bf16[2,32,96], index: 4, kind: input, shape index: {}]   ;;  %s9599_s5 = inlined_call_operand.hbm [shape: bf16[2,32,256], index: 5, kind: input, shape index: {}]   ;;  %s9600_s6 = inlined_call_operand.vmem [shape: bf16[2,256,512], index: 6, kind: input, shape index: {}]   ;;  %s9601_s7 = inlined_call_operand.vmem [shape: bf16[2,512,32], index: 7, kind: input, shape index: {}]   ;;  %s9602_s8 = inlined_call_operand.vmem [shape: f32[18,32], index: 8, kind: output, shape index: {}]  }
   0x1   :  { %14 = vsyncpa [#allocation5], 0  ;;  %s7429_s27 = smov [#allocation2]   ;;  %s7430_s29 = smov [#allocation4]  }
   0x2   :  { %s27_s28 = sshll.u32 %s7429_s27, 4  ;;  %s38_s30 = sshll.u32 %s7430_s29, 4  ;;  %s28_s28 = int_to_ptr.vmem [resolvable:$true] %s27_s28  ;;  %s7485_s30 = int_to_ptr.vmem [resolvable:$true] %s38_s30 }
   0x3   :  { %s7381_s11 = scalar_lea.hbm %s9597_s3, 256 }
   0x4   :  { %p7382_p0 = scmp.ne.s32.totalorder %s9597_s3, %s7381_s11  ;;  %p7385_p1 = scmp.lt.u32.totalorder %s7381_s11, %s9597_s3 }
   0x6   :  { %p7387_p2 = pnand %p7385_p1, %p7382_p0 }
   0x8   :  { %7390 = shalt.err (!%p7387_p2)
}
   0x9   :  { %s7391_s16 = scalar_lea.vmem %s28_s28, 256  ;;  %p7396_p4 = scmp.lt.s32.totalorder %s28_s28, %s28_s28 }
   0xa   :  { %p7392_p3 = scmp.ne.s32.totalorder %s28_s28, %s7391_s16  ;;  %p7397_p5 = scmp.lt.s32.totalorder %s7391_s16, %s7391_s16 }
   0xc   :  { %p7398_p6 = por %p7397_p5, %p7396_p4 }
   0xe   :  { %p7399_p7 = pnand %p7398_p6, %p7392_p3 }
  0x10   :  { %7402 = shalt.err (!%p7399_p7)
}
  0x11   :  { %30 = dma.hbm_to_vmem [thread:$0]  %s9597_s3, 256, %s28_s28, [#allocation3]  }
  0x12   :  { %s7403_s21 = scalar_lea.hbm %s9599_s5, 1024 }
  0x13   :  { %p7404_p8 = scmp.ne.s32.totalorder %s9599_s5, %s7403_s21  ;;  %p7407_p9 = scmp.lt.u32.totalorder %s7403_s21, %s9599_s5 }
  0x15   :  { %p7409_p10 = pnand %p7407_p9, %p7404_p8 }
  0x17   :  { %7412 = shalt.err (!%p7409_p10)
}
  0x18   :  { %s7413_s26 = scalar_lea.vmem %s7485_s30, 1024  ;;  %p7418_p12 = scmp.lt.s32.totalorder %s7485_s30, %s7485_s30 }
  0x19   :  { %p7414_p11 = scmp.ne.s32.totalorder %s7485_s30, %s7413_s26  ;;  %p7419_p13 = scmp.lt.s32.totalorder %s7413_s26, %s7413_s26 }
  0x1b   :  { %p7420_p0 = por %p7419_p13, %p7418_p12 }
  0x1d   :  { %p7421_p1 = pnand %p7420_p0, %p7414_p11 }
  0x1f   :  { %7424 = shalt.err (!%p7421_p1)
}
  0x20   :  { %s7431_s3 = smov 128   ;;  %s7432_s27 = smov 8  }
  0x21   :  { %44 = dma.hbm_to_vmem [thread:$0]  %s9599_s5, 1024, %s7485_s30, [#allocation5], %s7431_s3, %s7431_s3, %s7432_s27  }
  0x22   :  { %7425 = dma.done.wait [#allocation3], 256  }
  0x23   :  { %7426 = vsyncadd [#allocation3], 4294967040 }
  0x24   :  { %7427 = dma.done.wait [#allocation5], 1024  }
  0x25   :  { %7428 = vsyncadd [#allocation5], 4294966272  ;;  %v56_v0 = vld [vmem:[%s9595_s1] sm:$0xff]  ;;  %vm97_vm0 = vcmask 261120   ;;  %v58_v2 = vld [vmem:[%s9595_s1 + $0x10] sm:$0x3] }
  0x26   :  { %v63_v1 = vld [vmem:[%s9594_s0] sm:$0xff]  ;;  %v65_v4 = vld [vmem:[%s9594_s0 + $0x10] sm:$0x3]  ;;  %vm104_vm1 = vcmask 254976   ;;  %v57_v5 = vld [vmem:[%s9595_s1 + $0x8] sm:$0xff]  ;;  %v9605_v54 = vmov 0.0|0.0  }
  0x27   :  { %v7525_v3 = vadd.f32 %v63_v1, %v56_v0  ;;  %v64_v6 = vld [vmem:[%s9594_s0 + $0x8] sm:$0xff]  ;;  %v7536_v7 = vadd.f32 %v65_v4, %v58_v2  ;;  %v6889_v27 = vld [vmem:[%s9598_s4] sm:$0xff]   ;;  %v5920_v40 = vld [vmem:[%s9595_s1 + $0x16] ss:$0 sm:$0xff]  ;;  %6785 = vmatprep.subr.bf16.mxu1 %v9605_v54  ;;  %vm7434_vm2 = vmmov 0   ;;  %v9603_v55 = vmov 0.0  }
  0x28   :  { %v7538_v8 = vadd.f32 %v64_v6, %v57_v5  ;;  %v6890_v28 = vld [vmem:[%s9598_s4 + $0x8] sm:$0xff]   ;;  %6554 = vmatprep.subr.bf16.mxu0 %v6889_v27  ;;  %v5921_v46 = vld [vmem:[%s9595_s1 + $0x17] ss:$0 sm:$0xff]  ;;  %6577 = vmatprep.mubr.msk.f32.mxu1 %vm7434_vm2, %v9603_v55  ;;  %s7436_s26 = smov 96   ;;  %vm229_vm3 = vcmask 1041408   ;;  %vm225_vm4 = vcmask 146432   ;;  %vm7595_vm5 = vmpackc.low %vm97_vm0, %vm97_vm0 }
  0x29   :  { %v98_v9 = vsel %vm97_vm0, %v7525_v3, 0.0  ;;  %v105_v10 = vsel %vm104_vm1, %v7536_v7, 0.0  ;;  %6555 = vmatpush3.bf16.msra.mxu0 %v6889_v27  ;;  %v62_v62 = vld [vmem:[%s9596_s2 + $0x6] sm:$0xf]  ;;  %v9641_v2 = vmov 0  ;;  %vm391_vm6 = vcmask 142336  }
  0x2a   :  { %99 = vadd.xlane.f32.xlu0 %v98_v9  ;;  %106 = vadd.xlane.f32.xlu1 %v105_v10  ;;  %v101_v11 = vsel %vm97_vm0, %v7538_v8, 0.0  ;;  %v9642_v2 = vsel %vm7595_vm5, 4294967295, %v9641_v2  ;;  %v59_v6 = vld [vmem:[%s9595_s1 + $0x12] sm:$0xf]  ;;  %s7437_s11 = smov 64   ;;  %vm445_vm7 = vcmask 1043456  }
  0x2b   :  { %6556 = vmatprep.subr.bf16.mxu0 %v6890_v28  ;;  %9643 = vst [vmem:[#allocation8_spill] sm:$0xff] %v9642_v2  ;;  %vm9635_vm8 = vcmask 1046528   ;;  %vm435_vm9 = vcmask 31744   ;;  %vm9636_vm10 = vcmask 72704   ;;  %vm9634_vm11 = vcmask 1040384  }
  0x2c   :  { %vm7438_vm12 = vmmov 1   ;;  %vm9633_vm14 = vcmask 1045504   ;;  %vm9632_vm15 = vcmask 1044480  }
  0x2d   :  { %6557 = vmatpush3.bf16.msra.mxu0 %v6890_v28  ;;  %vm7679_vm13 = vmpackc.low %vm9634_vm11, %vm7438_vm12  ;;  %vm9626_vm12 = vcmask 1042432  }
  0x2e   :  { %102 = vadd.xlane.f32.xlu0 %v101_v11  ;;  %6782 = vmatprep.subr.bf16.mxu0 %v9605_v54 }
  0xb7   :  { %v100_v12 = vpop.xlane.xlu0 %99  ;;  %v107_v14 = vpop.xlane.xlu1 %106 }
  0xb8   :  { %v109_v13 = vmul.f32 0.03125, %v100_v12  ;;  %v111_v15 = vmul.f32 0.03125, %v107_v14  ;;  %v60_v12 = vld [vmem:[%s9596_s2] sm:$0xf] }
  0xba   :  { %v112_v16 = vsub.f32 %v7525_v3, %v109_v13  ;;  %v114_v17 = vsub.f32 %v7536_v7, %v111_v15 }
  0xbb   :  { %v103_v18 = vpop.xlane.xlu0 %102 }
  0xbc   :  { %v110_v19 = vmul.f32 0.03125, %v103_v18  ;;  %v115_v20 = vmul.f32 %v112_v16, %v112_v16  ;;  %v117_v21 = vmul.f32 %v114_v17, %v114_v17 }
  0xbe   :  { %v113_v22 = vsub.f32 %v7538_v8, %v110_v19  ;;  %v118_v23 = vsel %vm97_vm0, %v115_v20, 0.0  ;;  %v124_v24 = vsel %vm104_vm1, %v117_v21, 0.0 }
  0xbf   :  { %119 = vadd.xlane.f32.xlu1 %v118_v23 }
  0xc0   :  { %v116_v25 = vmul.f32 %v113_v22, %v113_v22 }
  0xc2   :  { %v121_v26 = vsel %vm97_vm0, %v116_v25, 0.0 }
  0xc3   :  { %125 = vadd.xlane.f32.xlu1 %v124_v24  ;;  %122 = vadd.xlane.f32.xlu0 %v121_v26 }
 0x14c   :  { %v120_v29 = vpop.xlane.xlu1 %119 }
 0x14d   :  { %v127_v30 = vmul.f32 0.03125, %v120_v29 }
 0x14f   :  { %v130_v31 = vadd.f32 1e-05, %v127_v30 }
 0x150   :  { %v126_v32 = vpop.xlane.xlu1 %125  ;;  %v123_v33 = vpop.xlane.xlu0 %122 }
 0x151   :  { %7161 = vrsqrt.f32 %v130_v31  ;;  %v129_v34 = vmul.f32 0.03125, %v126_v32  ;;  %v128_v35 = vmul.f32 0.03125, %v123_v33  ;;  %v76_v31 = vld [vmem:[%s9595_s1 + $0x1d] sm:$0xff]  ;;  %v77_v32 = vld [vmem:[%s9595_s1 + $0x25] sm:$0xff]  ;;  %v78_v33 = vld [vmem:[%s9595_s1 + $0x2d] sm:$0xff] }
 0x153   :  { %v132_v36 = vadd.f32 1e-05, %v129_v34  ;;  %v131_v37 = vadd.f32 1e-05, %v128_v35  ;;  %v6793_v34 = vpack.c.bf16 %v77_v32, %v76_v31  ;;  %v79_v35 = vld [vmem:[%s9595_s1 + $0x35] sm:$0xff] }
 0x155   :  { %7163 = vrsqrt.f32 %v132_v36  ;;  %v6796_v36 = vpack.c.bf16 %v79_v35, %v78_v33 }
 0x156   :  { %7165 = vrsqrt.f32 %v131_v37 }
 0x15b   :  { %v7162_v38 = vpop.eup %7161 }
 0x15c   :  { %v136_v39 = vmul.f32 %v7162_v38, %v112_v16 }
 0x15e   :  { %v143_v45 = vmul.f32 %v5920_v40, %v136_v39 }
 0x15f   :  { %v7164_v41 = vpop.eup %7163 }
 0x160   :  { %v7166_v42 = vpop.eup %7165  ;;  %v138_v43 = vmul.f32 %v7164_v41, %v114_v17  ;;  %v150_v50 = vadd.f32 %v5921_v46, %v143_v45 }
 0x161   :  { %v137_v44 = vmul.f32 %v7166_v42, %v113_v22 }
 0x162   :  { %v145_v47 = vmul.f32 %v5920_v40, %v138_v43 }
 0x163   :  { %v144_v48 = vmul.f32 %v5920_v40, %v137_v44 }
 0x164   :  { %v7564_v49 = vadd.f32 %v5921_v46, %v145_v47 }
 0x165   :  { %v7566_v51 = vadd.f32 %v5921_v46, %v144_v48 }
 0x166   :  { %v154_v52 = vpack.c.bf16 %v7564_v49, %v7564_v49  ;;  %v1044_v26 = vrot.slane %v7564_v49, 1 }
 0x167   :  { %v7571_v53 = vpack.c.bf16 %v7566_v51, %v150_v50  ;;  %v1043_v25 = vrot.slane %v7566_v51, 1 }
 0x169   :  { %6558 = vmatprep.mubr.msk.bf16.mxu0 %vm97_vm0, %v7571_v53  ;;  %v1045_v27 = vsel %vm9635_vm8, %v1043_v25, %v1044_v26 }
 0x16a   :  { %6559 = vmatmul.mubr.msk.bf16.vlgmr.msra.gmra.mrb[0].mxu0 %vm97_vm0, %v154_v52  ;;  %v91_v52 = vld [vmem:[%s9596_s2 + $0xa] sm:$0xff] }
 0x16b   :  { %6568 = vmatprep.mubr.msk.f32.mxu0 %vm7434_vm2, %v9603_v55 }
 0x23d   :  { %v6560_v56 = vpop.f32.mrb[0].mxu0 }
 0x23e   :  { %310 = vrot.lane.b32.xlu1 %v6560_v56, %s7436_s26  ;;  %v211_v57 = vpop.f32.mrb[1].mxu0 }
 0x23f   :  { %v6561_v58 = vpop.f32.mrb[2].mxu0 }
 0x240   :  { %v214_v59 = vpop.f32.mrb[3].mxu0 }
 0x241   :  { %v6879_v60 = vpack.i.bf16 %v214_v59, %v211_v57  ;;  %v6783_v61 = vpack.c.bf16 %v214_v59, %v211_v57 }
 0x243   :  { %6880 = vrot.lane.b32.xlu0 %v6879_v60, %s7436_s26  ;;  %6784 = vmatpush3.bf16.msra.mxu0 %v6783_v61 }
 0x244   :  { %6566 = vmatprep.subr.mxu0 %v9603_v55 }
 0x247   :  { %6567 = vmatpush3.msk.msra.mxu0 %vm229_vm3, %v6560_v56 }
 0x248   :  { %6569 = vmatmul.mubr.msk.f32.vlgmr.msra.gmra.mrb[4].mxu0 %vm225_vm4, %v62_v62  ;;  %6580 = vmatprep.subr.mxu0 %v9603_v55 }
 0x249   :  { %6582 = vmatprep.mubr.msk.f32.mxu0 %vm7434_vm2, %v9603_v55  ;;  %6581 = vmatpush3.msk.msra.mxu0 %vm445_vm7, %v59_v6 }
 0x24a   :  { %6792 = vmatprep.subr.bf16.mxu0 %v9605_v54 }
 0x2b0   :  { %v311_v5 = vpop.permute.xlu1 %310 }
 0x2b5   :  { %v6881_v63 = vpop.permute.xlu0 %6880 }
 0x2b6   :  { %v6883_v0 = vunpack.i.h.bf16 %v6881_v63  ;;  %v6882_v1 = vunpack.i.l.bf16 %v6881_v63 }
 0x2b8   :  { %v6786_v4 = vpack.c.bf16 %v6883_v0, %v6882_v1  ;;  %v9644_v0 = vmov 0 }
 0x2b9   :  { %v9645_v0 = vsel %vm7679_vm13, 4294967295, %v9644_v0 }
 0x2ba   :  { %6788 = vmatpush3.bf16.xpose.msk.msra.mxu1 %vm7595_vm5, %v6786_v4  ;;  %9646 = vst [vmem:[#allocation9_spill] sm:$0xff] %v9645_v0 }
 0x2bb   :  { %6575 = vmatprep.subr.mxu1 %v9603_v55 }
 0x2c2   :  { %6576 = vmatpush3.xpose.msk.msra.mxu1 %vm97_vm0, %v311_v5 }
 0x2c3   :  { %6789 = vmatprep.subr.bf16.mxu1 %v9605_v54 }
 0x31b   :  { %v299_v9 = vpop.f32.mrb[4].mxu0 }
 0x31c   :  { %v303_v10 = vmul.f32 %v299_v9, %v59_v6  ;;  %v6570_v11 = vpop.f32.mrb[5].mxu0 }
 0x31e   :  { %6578 = vmatmul.mubr.msk.f32.vlgmr.msra.gmra.mrb[0].mxu1 %vm97_vm0, %v303_v10 }
 0x31f   :  { %6597 = vmatprep.mubr.msk.f32.mxu1 %vm7434_vm2, %v9603_v55 }
 0x3f1   :  { %v387_v13 = vpop.f32.mrb[0].mxu1 }
 0x3f2   :  { %v388_v14 = vadd.f32 %v387_v13, %v60_v12  ;;  %v6579_v15 = vpop.f32.mrb[1].mxu1 }
 0x3f4   :  { %v392_v16 = vsel %vm391_vm6, %v388_v14, -inf }
 0x3f5   :  { %393 = vmax.xlane.f32.xlu1 %v392_v16 }
 0x406   :  { %529 = vrot.lane.b32.xlu1 %v211_v57, %s7437_s11 }
 0x40a   :  { %531 = vrot.lane.b32.xlu1 %v214_v59, %s7437_s11 }
 0x40e   :  { %533 = vrot.lane.b32.xlu1 %v6560_v56, %s7437_s11  ;;  %v93_v56 = vld [vmem:[%s9596_s2 + $0x1a] sm:$0x3] }
 0x437   :  { %786 = vxpose.xlu1.b32.start [1/2] (short) (narrow) %v150_v50, 32 }
 0x43b   :  { %787 = vxpose.xlu1.b32.end [2/2] (short) (narrow) %v7566_v51, 32  ;;  %v61_v51 = vld [vmem:[%s9596_s2 + $0x4] sm:$0x3] }
 0x482   :  { %v394_v17 = vpop.xlane.xlu1 %393 }
 0x483   :  { %v395_v18 = vsub.f32 %v388_v14, %v394_v17 }
 0x485   :  { %v396_v19 = vmul.f32 1.442695, %v395_v18 }
 0x486   :  { %v530_v37 = vpop.permute.xlu1 %529 }
 0x487   :  { %7167 = vpow2.f32 %v396_v19 }
 0x48a   :  { %v532_v40 = vpop.permute.xlu1 %531 }
 0x48e   :  { %v534_v48 = vpop.permute.xlu1 %533 }
 0x491   :  { %v7168_v20 = vpop.eup %7167 }
 0x492   :  { %v398_v21 = vsel %vm391_vm6, %v7168_v20, 0.0 }
 0x493   :  { %399 = vadd.xlane.f32.xlu0 %v398_v21 }
 0x4b7   :  { %v802_v57 = vpop.trf.xlu1 }
 0x4bb   :  { %v803_v61 = vpop.trf.xlu1 }
 0x4bf   :  { %v804_v5 = vpop.trf.xlu1 }
 0x4c3   :  { %v805_v15 = vpop.trf.xlu1 }
 0x520   :  { %v400_v22 = vpop.xlane.xlu0 %399 }
 0x521   :  { %7169 = vrcp.f32 %v400_v22 }
 0x52b   :  { %v7170_v23 = vpop.eup %7169 }
 0x52c   :  { %v402_v24 = vmul.f32 %v7170_v23, %v7168_v20 }
 0x52e   :  { %403 = vxpose.xlu0.b32.start.end [1/1] (short) (narrow) %v402_v24, 24 }
 0x537   :  { %1048 = vxpose.xlu0.b32.start [1/2] (short) (narrow) %v1045_v27, 32 }
 0x53b   :  { %1049 = vxpose.xlu0.b32.end [2/2] (short) (narrow) %v1044_v26, 32 }
 0x5ae   :  { %v419_v28 = vpop.trf.xlu0 }
 0x5af   :  { %6583 = vmatmul.mubr.msk.f32.vlgmr.msra.gmra.mrb[6].mxu0 %vm435_vm9, %v419_v28 }
 0x5b0   :  { %6585 = vmatprep.mubr.msk.f32.mxu0 %vm7434_vm2, %v9603_v55  ;;  %6794 = vmatpush3.bf16.msra.mxu0 %v6793_v34 }
 0x5b1   :  { %6795 = vmatprep.subr.bf16.mxu0 %v9605_v54 }
 0x5b2   :  { %v420_v29 = vpop.trf.xlu0 }
 0x5b3   :  { %6586 = vmatmul.mubr.msk.f32.gmra.mrb[8].mxu0 %vm435_vm9, %v420_v29 }
 0x5b4   :  { %6588 = vmatprep.mubr.msk.f32.mxu0 %vm7434_vm2, %v9603_v55  ;;  %6797 = vmatpush3.bf16.msra.mxu0 %v6796_v36 }
 0x5b6   :  { %v421_v30 = vpop.trf.xlu0 }
 0x5b7   :  { %6589 = vmatmul.mubr.msk.f32.gmra.mrb[10].mxu0 %vm435_vm9, %v421_v30 }
 0x5b8   :  { %6608 = vmatprep.mubr.msk.f32.mxu0 %vm7434_vm2, %v9603_v55 }
 0x682   :  { %v515_v38 = vpop.f32.mrb[6].mxu0 }
 0x683   :  { %v6584_v39 = vpop.f32.mrb[7].mxu0  ;;  %v538_v42 = vmul.f32 %v530_v37, %v515_v38 }
 0x686   :  { %v520_v41 = vpop.f32.mrb[8].mxu0 }
 0x687   :  { %v539_v43 = vmul.f32 %v532_v40, %v520_v41  ;;  %v6587_v44 = vpop.f32.mrb[9].mxu0 }
 0x689   :  { %v6790_v45 = vpack.c.bf16 %v539_v43, %v538_v42 }
 0x68a   :  { %v525_v46 = vpop.f32.mrb[10].mxu0 }
 0x68b   :  { %6791 = vmatpush3.bf16.msra.mxu1 %v6790_v45  ;;  %v6590_v47 = vpop.f32.mrb[11].mxu0  ;;  %v540_v50 = vmul.f32 %v534_v48, %v525_v46 }
 0x68c   :  { %6595 = vmatprep.subr.mxu1 %v9603_v55 }
 0x68f   :  { %6596 = vmatpush3.msk.msra.mxu1 %vm229_vm3, %v540_v50 }
 0x690   :  { %6598 = vmatmul.mubr.msk.f32.vlgmr.msra.gmra.mrb[2].mxu1 %vm225_vm4, %v61_v51  ;;  %6798 = vmatprep.subr.bf16.mxu1 %v9605_v54 }
 0x691   :  { %6800 = vmatpush3.bf16.msra.mxu1 %v7571_v53  ;;  %6617 = vmatprep.mubr.msk.f32.mxu1 %vm7434_vm2, %v9603_v55  ;;  %v92_v53 = vld [vmem:[%s9596_s2 + $0x12] sm:$0xff] }
 0x692   :  { %6615 = vmatprep.subr.mxu1 %v9603_v55 }
 0x695   :  { %6616 = vmatpush3.msk.msra.mxu1 %vm229_vm3, %v7564_v49  ;;  %v1064_v49 = vpop.trf.xlu0 }
 0x696   :  { %6618 = vmatmul.mubr.msk.f32.vlgmr.msra.gmra.mrb[4].mxu1 %vm225_vm4, %v91_v52 }
 0x697   :  { %6620 = vmatprep.mubr.msk.f32.mxu1 %vm7434_vm2, %v9603_v55 }
 0x699   :  { %v1065_v6 = vpop.trf.xlu0 }
 0x69a   :  { %6621 = vmatmul.mubr.msk.f32.gmra.mrb[6].mxu1 %vm225_vm4, %v92_v53 }
 0x69b   :  { %6623 = vmatprep.mubr.msk.f32.mxu1 %vm7434_vm2, %v9603_v55 }
 0x69d   :  { %v1066_v16 = vpop.trf.xlu0 }
 0x69e   :  { %6624 = vmatmul.mubr.msk.f32.gmra.mrb[8].mxu1 %vm225_vm4, %v93_v56 }
 0x69f   :  { %6651 = vmatprep.mubr.msk.f32.mxu1 %vm9636_vm10, %v1064_v49 }
 0x6a1   :  { %v1067_v17 = vpop.trf.xlu0 }
 0x763   :  { %v613_v58 = vpop.f32.mrb[2].mxu1 }
 0x764   :  { %v6599_v59 = vpop.f32.mrb[3].mxu1  ;;  %6609 = vmatmul.mubr.msk.f32.vlgmr.msra.gmra.mrb[12].mxu0 %vm97_vm0, %v613_v58 }
 0x765   :  { %6630 = vmatprep.mubr.msk.f32.mxu0 %vm9636_vm10, %v802_v57 }
 0x769   :  { %v772_v60 = vpop.f32.mrb[4].mxu1 }
 0x76a   :  { %v6619_v62 = vpop.f32.mrb[5].mxu1 }
 0x76d   :  { %v777_v63 = vpop.f32.mrb[6].mxu1 }
 0x76e   :  { %v6801_v1 = vpack.c.bf16 %v777_v63, %v772_v60  ;;  %v6622_v4 = vpop.f32.mrb[7].mxu1  ;;  %v1081_v10 = vrot.slane %v777_v63, 1 }
 0x770   :  { %6803 = vmatprep.subr.msk.bf16.mxu0 %vm7679_vm13, %v6801_v1 }
 0x771   :  { %v782_v9 = vpop.f32.mrb[8].mxu1  ;;  %6806 = vmatpush3.bf16.msk.msra.mxu0 %vm7679_vm13, %v6801_v1 }
 0x772   :  { %v1082_v11 = vrot.slane %v782_v9, 1  ;;  %v6625_v12 = vpop.f32.mrb[9].mxu1  ;;  %6807 = vmatprep.subr.bf16.mxu0 %v9605_v54 }
 0x774   :  { %v1083_v13 = vsel %vm9635_vm8, %v1081_v10, %v1082_v11  ;;  %6631 = vmatmul.mubr.msk.f32.vlgmr.msra.gmra.mrb[14].mxu0 %vm9636_vm10, %v803_v61 }
 0x775   :  { %v6813_v14 = vpack.c.bf16 %v1082_v11, %v1083_v13  ;;  %6633 = vmatprep.mubr.msk.f32.mxu0 %vm9636_vm10, %v804_v5 }
 0x777   :  { %6815 = vmatprep.subr.msk.bf16.mxu1 %vm7679_vm13, %v6813_v14 }
 0x778   :  { %6634 = vmatmul.mubr.msk.f32.gmra.mrb[16].mxu0 %vm9636_vm10, %v805_v15  ;;  %6818 = vmatpush3.bf16.msk.msra.mxu1 %vm7679_vm13, %v6813_v14 }
 0x779   :  { %6644 = vmatprep.mubr.msk.f32.mxu0 %vm7434_vm2, %v9603_v55 }
 0x77b   :  { %6652 = vmatmul.mubr.msk.f32.vlgmr.msra.gmra.mrb[10].mxu1 %vm9636_vm10, %v1065_v6 }
 0x77c   :  { %6654 = vmatprep.mubr.msk.f32.mxu1 %vm9636_vm10, %v1066_v16 }
 0x77f   :  { %6655 = vmatmul.mubr.msk.f32.gmra.mrb[12].mxu1 %vm9636_vm10, %v1067_v17 }
 0x837   :  { %v7701_v18 = vpop.f32.mrb[12].mxu0 }
 0x838   :  { %v6610_v19 = vpop.f32.mrb[13].mxu0 }
 0x847   :  { %v6632_v20 = vpop.f32.mrb[14].mxu0 }
 0x848   :  { %v901_v21 = vpop.f32.mrb[15].mxu0  ;;  %v923_v22 = vsel %vm97_vm0, %v6632_v20, -inf }
 0x849   :  { %924 = vmax.xlane.f32.xlu1 %v923_v22  ;;  %v920_v23 = vsel %vm97_vm0, %v901_v21, -inf }
 0x84a   :  { %921 = vmax.xlane.f32.xlu0 %v920_v23 }
 0x84b   :  { %v6635_v24 = vpop.f32.mrb[16].mxu0 }
 0x84c   :  { %v911_v25 = vpop.f32.mrb[17].mxu0  ;;  %v929_v26 = vsel %vm97_vm0, %v6635_v24, -inf }
 0x84d   :  { %v926_v30 = vsel %vm97_vm0, %v911_v25, -inf }
 0x84e   :  { %v6653_v27 = vpop.f32.mrb[10].mxu1  ;;  %930 = vmax.xlane.f32.xlu0 %v929_v26 }
 0x84f   :  { %v1165_v28 = vpop.f32.mrb[11].mxu1  ;;  %v1187_v34 = vsel %vm97_vm0, %v6653_v27, -inf }
 0x850   :  { %v1184_v29 = vsel %vm97_vm0, %v1165_v28, -inf }
 0x851   :  { %1185 = vmax.xlane.f32.xlu1 %v1184_v29 }
 0x852   :  { %v6656_v31 = vpop.f32.mrb[12].mxu1  ;;  %927 = vmax.xlane.f32.xlu0 %v926_v30 }
 0x853   :  { %v1175_v32 = vpop.f32.mrb[13].mxu1  ;;  %v1193_v35 = vsel %vm97_vm0, %v6656_v31, -inf }
 0x854   :  { %v1190_v33 = vsel %vm97_vm0, %v1175_v32, -inf }
 0x855   :  { %1191 = vmax.xlane.f32.xlu1 %v1190_v33 }
 0x856   :  { %1188 = vmax.xlane.f32.xlu0 %v1187_v34 }
 0x85a   :  { %1194 = vmax.xlane.f32.xlu0 %v1193_v35 }
 0x8d6   :  { %v925_v36 = vpop.xlane.xlu1 %924 }
 0x8d7   :  { %v933_v37 = vsub.f32 %v6632_v20, %v925_v36  ;;  %v922_v38 = vpop.xlane.xlu0 %921 }
 0x8d8   :  { %v932_v39 = vsub.f32 %v901_v21, %v922_v38 }
 0x8d9   :  { %v938_v40 = vmul.f32 1.442695, %v933_v37  ;;  %v5938_v37 = vld [vmem:[%s9595_s1 + $0x18] ss:$0 sm:$0xff] }
 0x8da   :  { %v936_v41 = vmul.f32 1.442695, %v932_v39 }
 0x8db   :  { %7171 = vpow2.f32 %v938_v40  ;;  %v931_v42 = vpop.xlane.xlu0 %930 }
 0x8dc   :  { %7173 = vpow2.f32 %v936_v41  ;;  %v935_v43 = vsub.f32 %v6635_v24, %v931_v42  ;;  %v691_v42 = vadd.f32 %v5938_v37, %v7701_v18  ;;  %v1037_v18 = vlaneseq  ;;  %v6921_v37 = vld [vmem:[%s9600_s6 + $0x80] ss:$16 sps:$4 sm:$0xff]  }
 0x8de   :  { %v942_v44 = vmul.f32 1.442695, %v935_v43  ;;  %v1186_v45 = vpop.xlane.xlu1 %1185 }
 0x8df   :  { %v1196_v46 = vsub.f32 %v1165_v28, %v1186_v45  ;;  %v928_v47 = vpop.xlane.xlu0 %927 }
 0x8e0   :  { %7175 = vpow2.f32 %v942_v44  ;;  %v934_v48 = vsub.f32 %v911_v25, %v928_v47 }
 0x8e1   :  { %v1200_v50 = vmul.f32 1.442695, %v1196_v46 }
 0x8e2   :  { %v940_v51 = vmul.f32 1.442695, %v934_v48  ;;  %v1192_v52 = vpop.xlane.xlu1 %1191 }
 0x8e3   :  { %v1198_v53 = vsub.f32 %v1175_v32, %v1192_v52  ;;  %v1189_v56 = vpop.xlane.xlu0 %1188  ;;  %v7730_v52 = vshrl.u32 %v1037_v18, 7  ;;  %v6963_v18 = vld [vmem:[%s9600_s6 + $0x160] ss:$16 sps:$4 sm:$0xff]  }
 0x8e4   :  { %7177 = vpow2.f32 %v940_v51  ;;  %v1197_v49 = vsub.f32 %v6653_v27, %v1189_v56  ;;  %v1228_v51 = vrot.slane %v691_v42, 1 }
 0x8e5   :  { %v7172_v57 = vpop.eup %7171  ;;  %7179 = vpow2.f32 %v1200_v50  ;;  %v1204_v59 = vmul.f32 1.442695, %v1198_v53  ;;  %v7733_v53 = vsub.s32 0, %v7730_v52 }
 0x8e6   :  { %v7174_v58 = vpop.eup %7173  ;;  %v1202_v60 = vmul.f32 1.442695, %v1197_v49  ;;  %v947_v61 = vsel %vm97_vm0, %v7172_v57, 0.0 }
 0x8e7   :  { %948 = vadd.xlane.f32.xlu0 %v947_v61  ;;  %v1195_v62 = vpop.xlane.xlu0 %1194  ;;  %v944_v63 = vsel %vm97_vm0, %v7174_v58, 0.0  ;;  %9647 = vst [vmem:[#allocation10_spill] sm:$0xff] %v7733_v53 }
 0x8e8   :  { %7181 = vpow2.f32 %v1202_v60  ;;  %v1199_v1 = vsub.f32 %v6656_v31, %v1195_v62  ;;  %945 = vadd.xlane.f32.xlu1 %v944_v63 }
 0x8e9   :  { %7183 = vpow2.f32 %v1204_v59 }
 0x8ea   :  { %v7176_v4 = vpop.eup %7175  ;;  %v1206_v5 = vmul.f32 1.442695, %v1199_v1 }
 0x8eb   :  { %v953_v6 = vsel %vm97_vm0, %v7176_v4, 0.0 }
 0x8ec   :  { %7185 = vpow2.f32 %v1206_v5  ;;  %954 = vadd.xlane.f32.xlu0 %v953_v6 }
 0x8ee   :  { %v7178_v9 = vpop.eup %7177 }
 0x8ef   :  { %v950_v10 = vsel %vm97_vm0, %v7178_v9, 0.0  ;;  %v7180_v11 = vpop.eup %7179 }
 0x8f0   :  { %951 = vadd.xlane.f32.xlu1 %v950_v10  ;;  %v1208_v13 = vsel %vm97_vm0, %v7180_v11, 0.0 }
 0x8f2   :  { %v7182_v12 = vpop.eup %7181 }
 0x8f3   :  { %v1211_v14 = vsel %vm97_vm0, %v7182_v12, 0.0  ;;  %v7184_v15 = vpop.eup %7183 }
 0x8f4   :  { %1209 = vadd.xlane.f32.xlu1 %v1208_v13  ;;  %1212 = vadd.xlane.f32.xlu0 %v1211_v14  ;;  %v1214_v17 = vsel %vm97_vm0, %v7184_v15, 0.0 }
 0x8f6   :  { %v7186_v16 = vpop.eup %7185 }
 0x8f7   :  { %v1217_v19 = vsel %vm97_vm0, %v7186_v16, 0.0 }
 0x8f8   :  { %1215 = vadd.xlane.f32.xlu1 %v1214_v17  ;;  %1218 = vadd.xlane.f32.xlu0 %v1217_v19 }
 0x974   :  { %v949_v20 = vpop.xlane.xlu0 %948 }
 0x975   :  { %7187 = vrcp.f32 %v949_v20  ;;  %v946_v21 = vpop.xlane.xlu1 %945 }
 0x976   :  { %7189 = vrcp.f32 %v946_v21 }
 0x979   :  { %v955_v22 = vpop.xlane.xlu0 %954 }
 0x97a   :  { %7191 = vrcp.f32 %v955_v22  ;;  %v6891_v22 = vld [vmem:[#allocation4] ss:$8 sps:$4 sm:$0xff]  }
 0x97d   :  { %v952_v23 = vpop.xlane.xlu1 %951 }
 0x97e   :  { %7193 = vrcp.f32 %v952_v23  ;;  %v6893_v23 = vld [vmem:[#allocation4 + $0x4] ss:$8 sps:$4 sm:$0xff]  }
 0x97f   :  { %v7188_v24 = vpop.eup %7187  ;;  %1665 = vmatprep.subr.bf16.mxu1 %v6893_v23  ;;  %v7890_v23 = vsub.s32 7, %v7730_v52 }
 0x980   :  { %v7190_v25 = vpop.eup %7189  ;;  %v961_v26 = vmul.f32 %v7188_v24, %v7172_v57  ;;  %v6896_v24 = vld [vmem:[#allocation4 + $0x14] ss:$8 sps:$4 sm:$0xff]   ;;  %1666 = vmatpush1.bf16.msra.mxu1 %v6891_v22  ;;  %v7887_v22 = vsub.s32 6, %v7730_v52 }
 0x981   :  { %v1210_v27 = vpop.xlane.xlu1 %1209  ;;  %v1213_v28 = vpop.xlane.xlu0 %1212  ;;  %v960_v29 = vmul.f32 %v7190_v25, %v7174_v58  ;;  %v9607_v25 = vmov 0   ;;  %1667 = vmatprep.subr.bf16.mxu1 %v6896_v24  ;;  %9654 = vst [vmem:[#allocation17_spill] sm:$0xff] %v7890_v23 }
 0x982   :  { %7195 = vrcp.f32 %v1210_v27  ;;  %1697 = vmatprep.mubr.bf16.mxu1 %v9607_v25  ;;  %v6897_v27 = vld [vmem:[%s9600_s6] ss:$16 sps:$4 sm:$0xff]   ;;  %9653 = vst [vmem:[#allocation16_spill] sm:$0xff] %v7887_v22 }
 0x983   :  { %7197 = vrcp.f32 %v1213_v28  ;;  %v6808_v30 = vpack.c.bf16 %v961_v26, %v960_v29  ;;  %v6894_v26 = vld [vmem:[#allocation4 + $0x10] ss:$8 sps:$4 sm:$0xff]   ;;  %v6899_v28 = vld [vmem:[%s9600_s6 + $0x4] ss:$16 sps:$4 sm:$0xff]   ;;  %v6902_v29 = vld [vmem:[%s9600_s6 + $0xc] ss:$16 sps:$4 sm:$0xff]  }
 0x984   :  { %v7192_v33 = vpop.eup %7191  ;;  %1668 = vmatpush1.bf16.msra.mxu1 %v6894_v26  ;;  %v82_v26 = vld [vmem:[%s9595_s1 + $0x4d] sm:$0xff] }
 0x985   :  { %v1216_v31 = vpop.xlane.xlu1 %1215  ;;  %6809 = vmatpush3.bf16.msra.mxu0 %v6808_v30  ;;  %v1219_v32 = vpop.xlane.xlu0 %1218  ;;  %v963_v36 = vmul.f32 %v7192_v33, %v7176_v4  ;;  %v6905_v30 = vld [vmem:[%s9600_s6 + $0x24] ss:$16 sps:$4 sm:$0xff]   ;;  %2176 = vmatprep.subr.bf16.mxu1 %v6902_v29  ;;  %v6909_v33 = vld [vmem:[%s9600_s6 + $0x40] ss:$16 sps:$4 sm:$0xff]  }
 0x986   :  { %7199 = vrcp.f32 %v1216_v31  ;;  %6810 = vmatprep.subr.bf16.mxu0 %v9605_v54  ;;  %v6903_v31 = vld [vmem:[%s9600_s6 + $0x20] ss:$16 sps:$4 sm:$0xff]  }
 0x987   :  { %7201 = vrcp.f32 %v1219_v32  ;;  %v6911_v32 = vld [vmem:[%s9600_s6 + $0x44] ss:$16 sps:$4 sm:$0xff]  }
 0x988   :  { %v7194_v34 = vpop.eup %7193 }
 0x989   :  { %v962_v35 = vmul.f32 %v7194_v34, %v7178_v9  ;;  %v6917_v34 = vld [vmem:[%s9600_s6 + $0x64] ss:$16 sps:$4 sm:$0xff]  }
 0x98b   :  { %v6811_v38 = vpack.c.bf16 %v963_v36, %v962_v35  ;;  %v6915_v35 = vld [vmem:[%s9600_s6 + $0x60] ss:$16 sps:$4 sm:$0xff]   ;;  %v6923_v36 = vld [vmem:[%s9600_s6 + $0x84] ss:$16 sps:$4 sm:$0xff]  }
 0x98c   :  { %v7196_v39 = vpop.eup %7195 }
 0x98d   :  { %v7198_v40 = vpop.eup %7197  ;;  %6812 = vmatpush3.bf16.msra.mxu0 %v6811_v38  ;;  %v1224_v41 = vmul.f32 %v7196_v39, %v7180_v11  ;;  %v6929_v38 = vld [vmem:[%s9600_s6 + $0xa4] ss:$16 sps:$4 sm:$0xff]   ;;  %v6927_v39 = vld [vmem:[%s9600_s6 + $0xa0] ss:$16 sps:$4 sm:$0xff]  }
 0x98e   :  { %6819 = vmatprep.subr.bf16.mxu0 %v9605_v54  ;;  %v1225_v43 = vmul.f32 %v7198_v40, %v7182_v12  ;;  %v6935_v40 = vld [vmem:[%s9600_s6 + $0xc4] ss:$16 sps:$4 sm:$0xff]  }
 0x990   :  { %v7200_v44 = vpop.eup %7199  ;;  %6645 = vmatmul.mubr.msk.f32.vlgmr.msra.gmra.mrb[18].mxu0 %vm97_vm0, %v691_v42  ;;  %v6820_v45 = vpack.c.bf16 %v1225_v43, %v1224_v41  ;;  %v6933_v41 = vld [vmem:[%s9600_s6 + $0xc0] ss:$16 sps:$4 sm:$0xff]   ;;  %v6941_v42 = vld [vmem:[%s9600_s6 + $0xe4] ss:$16 sps:$4 sm:$0xff]  }
 0x991   :  { %v7202_v46 = vpop.eup %7201  ;;  %v1226_v47 = vmul.f32 %v7200_v44, %v7184_v15  ;;  %6665 = vmatprep.mubr.msk.f32.mxu0 %vm7434_vm2, %v9603_v55  ;;  %v6939_v43 = vld [vmem:[%s9600_s6 + $0xe0] ss:$16 sps:$4 sm:$0xff]   ;;  %v6947_v44 = vld [vmem:[%s9600_s6 + $0x104] ss:$16 sps:$4 sm:$0xff]  }
 0x992   :  { %6821 = vmatpush3.bf16.msra.mxu0 %v6820_v45  ;;  %v1227_v48 = vmul.f32 %v7202_v46, %v7186_v16  ;;  %v6945_v45 = vld [vmem:[%s9600_s6 + $0x100] ss:$16 sps:$4 sm:$0xff]   ;;  %v6953_v46 = vld [vmem:[%s9600_s6 + $0x124] ss:$16 sps:$4 sm:$0xff]  }
 0x993   :  { %6822 = vmatprep.subr.bf16.mxu0 %v9605_v54 }
 0x994   :  { %v6823_v50 = vpack.c.bf16 %v1227_v48, %v1226_v47  ;;  %v6951_v47 = vld [vmem:[%s9600_s6 + $0x120] ss:$16 sps:$4 sm:$0xff]   ;;  %v6959_v48 = vld [vmem:[%s9600_s6 + $0x144] ss:$16 sps:$4 sm:$0xff]  }
 0x996   :  { %6824 = vmatpush3.bf16.msra.mxu0 %v6823_v50  ;;  %v6957_v50 = vld [vmem:[%s9600_s6 + $0x140] ss:$16 sps:$4 sm:$0xff]  }
 0x997   :  { %2125 = vmatprep.subr.bf16.mxu0 %v6899_v28  ;;  %v84_v28 = vld [vmem:[%s9595_s1 + $0x5d] sm:$0xff] }
 0x999   :  { %6666 = vmatmul.mubr.msk.f32.vlgmr.msra.gmra.mrb[20].mxu0 %vm97_vm0, %v1228_v51  ;;  %v6965_v51 = vld [vmem:[%s9600_s6 + $0x164] ss:$16 sps:$4 sm:$0xff]  }
 0x99a   :  { %2126 = vmatpush1.bf16.msra.mxu0 %v6897_v27  ;;  %v83_v27 = vld [vmem:[%s9595_s1 + $0x55] sm:$0xff] }
 0x99b   :  { %2127 = vmatprep.subr.bf16.mxu0 %v6905_v30 }
 0x99e   :  { %2128 = vmatpush1.bf16.msra.mxu0 %v6903_v31 }
 0x99f   :  { %2129 = vmatprep.subr.bf16.mxu0 %v6911_v32 }
 0x9a2   :  { %2130 = vmatpush1.bf16.msra.mxu0 %v6909_v33  ;;  %v7914_v33 = vld [vmem:[%s9595_s1 + $0x45] sm:$0xff] }
 0x9a3   :  { %2131 = vmatprep.subr.bf16.mxu0 %v6917_v34 }
 0x9a6   :  { %2132 = vmatpush1.bf16.msra.mxu0 %v6915_v35 }
 0x9a7   :  { %2133 = vmatprep.subr.bf16.mxu0 %v6923_v36 }
 0x9aa   :  { %2134 = vmatpush1.bf16.msra.mxu0 %v6921_v37 }
 0x9ab   :  { %2135 = vmatprep.subr.bf16.mxu0 %v6929_v38  ;;  %v7927_v38 = vld [vmem:[%s9595_s1 + $0x6d] sm:$0xff] }
 0x9ae   :  { %2136 = vmatpush1.bf16.msra.mxu0 %v6927_v39  ;;  %v7932_v39 = vld [vmem:[%s9595_s1 + $0x75] sm:$0xff] }
 0x9af   :  { %2137 = vmatprep.subr.bf16.mxu0 %v6935_v40  ;;  %v7937_v40 = vld [vmem:[%s9595_s1 + $0x7d] sm:$0xff] }
 0x9b2   :  { %2138 = vmatpush1.bf16.msra.mxu0 %v6933_v41 }
 0x9b3   :  { %2139 = vmatprep.subr.bf16.mxu0 %v6941_v42 }
 0x9b6   :  { %2140 = vmatpush1.bf16.msra.mxu0 %v6939_v43 }
 0x9b7   :  { %2141 = vmatprep.subr.bf16.mxu0 %v6947_v44 }
 0x9ba   :  { %2142 = vmatpush1.bf16.msra.mxu0 %v6945_v45 }
 0x9bb   :  { %2143 = vmatprep.subr.bf16.mxu0 %v6953_v46 }
 0x9be   :  { %2144 = vmatpush1.bf16.msra.mxu0 %v6951_v47 }
 0x9bf   :  { %2145 = vmatprep.subr.bf16.mxu0 %v6959_v48 }
 0x9c2   :  { %2146 = vmatpush1.bf16.msra.mxu0 %v6957_v50 }
 0x9c3   :  { %2147 = vmatprep.subr.bf16.mxu0 %v6965_v51 }
 0x9c6   :  { %2148 = vmatpush1.bf16.msra.mxu0 %v6963_v18 }
 0xa63   :  { %v1033_v56 = vpop.f32.mrb[18].mxu0 }
 0xa64   :  { %v1040_v49 = vrot.slane %v1033_v56, %v7733_v53  ;;  %v6646_v57 = vpop.f32.mrb[19].mxu0  ;;  %v6971_v56 = vld [vmem:[%s9600_s6 + $0x184] ss:$16 sps:$4 sm:$0xff]  }
 0xa65   :  { %2149 = vmatprep.subr.bf16.mxu0 %v6971_v56  ;;  %v6977_v57 = vld [vmem:[%s9600_s6 + $0x1a4] ss:$16 sps:$4 sm:$0xff]  }
 0xa66   :  { %v7737_v58 = vadd.f32 %v1040_v49, %v7525_v3 }
 0xa68   :  { %v1309_v59 = vsel %vm97_vm0, %v7737_v58, 0.0 }
 0xa69   :  { %1310 = vadd.xlane.f32.xlu0 %v1309_v59  ;;  %v6975_v59 = vld [vmem:[%s9600_s6 + $0x1a0] ss:$16 sps:$4 sm:$0xff]  }
 0xa6c   :  { %v1297_v60 = vpop.f32.mrb[20].mxu0 }
 0xa6d   :  { %v1304_v61 = vrot.slane %v1297_v60, %v7733_v53  ;;  %v6667_v62 = vpop.f32.mrb[21].mxu0 }
 0xa6f   :  { %v1305_v63 = vsel %vm9634_vm11, %v1040_v49, %v1304_v61  ;;  %v7747_v4 = vadd.f32 %v1304_v61, %v7536_v7  ;;  %v6969_v49 = vld [vmem:[%s9600_s6 + $0x180] ss:$16 sps:$4 sm:$0xff]  }
 0xa70   :  { %v7744_v1 = vadd.f32 %v1305_v63, %v7538_v8  ;;  %2150 = vmatpush1.bf16.msra.mxu0 %v6969_v49 }
 0xa71   :  { %v1315_v5 = vsel %vm104_vm1, %v7747_v4, 0.0  ;;  %2151 = vmatprep.subr.bf16.mxu0 %v6977_v57 }
 0xa72   :  { %v1312_v3 = vsel %vm97_vm0, %v7744_v1, 0.0 }
 0xa73   :  { %1313 = vadd.xlane.f32.xlu1 %v1312_v3 }
 0xa74   :  { %2152 = vmatpush1.bf16.msra.mxu0 %v6975_v59 }
 0xa77   :  { %1316 = vadd.xlane.f32.xlu1 %v1315_v5 }
 0xaf6   :  { %v1311_v6 = vpop.xlane.xlu0 %1310 }
 0xaf7   :  { %v1318_v9 = vmul.f32 0.03125, %v1311_v6 }
 0xaf9   :  { %v7754_v10 = vsub.f32 %v7737_v58, %v1318_v9 }
 0xafb   :  { %v1324_v8 = vmul.f32 %v7754_v10, %v7754_v10 }
 0xafd   :  { %v1327_v11 = vsel %vm97_vm0, %v1324_v8, 0.0  ;;  %v7862_v8 = vld [vmem:[%s9595_s1 + $0x19] ss:$0 sm:$0xff] }
 0xafe   :  { %1328 = vadd.xlane.f32.xlu1 %v1327_v11 }
 0xb00   :  { %v1314_v7 = vpop.xlane.xlu1 %1313 }
 0xb01   :  { %v1319_v12 = vmul.f32 0.03125, %v1314_v7 }
 0xb03   :  { %v7760_v13 = vsub.f32 %v7744_v1, %v1319_v12  ;;  %v7868_v12 = vld [vmem:[%s9595_s1 + $0x1a] ss:$0 sm:$0xff] }
 0xb04   :  { %v1317_v14 = vpop.xlane.xlu1 %1316 }
 0xb05   :  { %v1320_v15 = vmul.f32 0.03125, %v1317_v14  ;;  %v1325_v16 = vmul.f32 %v7760_v13, %v7760_v13  ;;  %v7871_v14 = vsub.s32 1, %v7730_v52 }
 0xb07   :  { %v7765_v17 = vsub.f32 %v7747_v4, %v1320_v15  ;;  %v1330_v19 = vsel %vm97_vm0, %v1325_v16, 0.0  ;;  %9648 = vst [vmem:[#allocation11_spill] sm:$0xff] %v7871_v14 }
 0xb08   :  { %1331 = vadd.xlane.f32.xlu0 %v1330_v19  ;;  %v7875_v19 = vsub.s32 2, %v7730_v52 }
 0xb09   :  { %v1326_v20 = vmul.f32 %v7765_v17, %v7765_v17 }
 0xb0a   :  { %9649 = vst [vmem:[#allocation12_spill] sm:$0xff] %v7875_v19 }
 0xb0b   :  { %v1333_v21 = vsel %vm104_vm1, %v1326_v20, 0.0  ;;  %v7878_v20 = vsub.s32 3, %v7730_v52 }
 0xb0c   :  { %1334 = vadd.xlane.f32.xlu0 %v1333_v21  ;;  %v7881_v21 = vsub.s32 4, %v7730_v52 }
 0xb0d   :  { %9650 = vst [vmem:[#allocation13_spill] sm:$0xff] %v7878_v20 }
 0xb0e   :  { %9651 = vst [vmem:[#allocation14_spill] sm:$0xff] %v7881_v21 }
 0xb8b   :  { %v1329_v60 = vpop.xlane.xlu1 %1328 }
 0xb8c   :  { %v1336_v61 = vmul.f32 0.03125, %v1329_v60 }
 0xb8e   :  { %v1339_v62 = vadd.f32 1e-05, %v1336_v61 }
 0xb90   :  { %7203 = vrsqrt.f32 %v1339_v62 }
 0xb95   :  { %v1332_v63 = vpop.xlane.xlu0 %1331 }
 0xb96   :  { %v1337_v3 = vmul.f32 0.03125, %v1332_v63 }
 0xb98   :  { %v1340_v5 = vadd.f32 1e-05, %v1337_v3 }
 0xb99   :  { %v1335_v6 = vpop.xlane.xlu0 %1334 }
 0xb9a   :  { %v7204_v9 = vpop.eup %7203  ;;  %7205 = vrsqrt.f32 %v1340_v5  ;;  %v1338_v11 = vmul.f32 0.03125, %v1335_v6 }
 0xb9b   :  { %v1345_v7 = vmul.f32 %v7204_v9, %v7754_v10  ;;  %v7884_v10 = vsub.s32 5, %v7730_v52  ;;  %v7905_v52 = vld [vmem:[%s9595_s1 + $0x65] sm:$0xff] }
 0xb9c   :  { %v1341_v15 = vadd.f32 1e-05, %v1338_v11 }
 0xb9d   :  { %v1352_v16 = vmul.f32 %v7862_v8, %v1345_v7  ;;  %9652 = vst [vmem:[#allocation15_spill] sm:$0xff] %v7884_v10 }
 0xb9e   :  { %7207 = vrsqrt.f32 %v1341_v15 }
 0xb9f   :  { %v1359_v24 = vadd.f32 %v7868_v12, %v1352_v16 }
 0xba1   :  { %v1365_v29 = vrot.slane %v1359_v24, %v7733_v53  ;;  %v1373_v30 = vrot.slane %v1359_v24, %v7871_v14  ;;  %v1388_v31 = vrot.slane %v1359_v24, %v7875_v19  ;;  %v1404_v32 = vrot.slane %v1359_v24, %v7878_v20 }
 0xba2   :  { %v1420_v34 = vrot.slane %v1359_v24, %v7881_v21  ;;  %v7918_v35 = vrot.slane %v1359_v24, %v7884_v10  ;;  %v7921_v36 = vrot.slane %v1359_v24, %v7887_v22  ;;  %v1466_v37 = vrot.slane %v1359_v24, %v7890_v23 }
 0xba3   :  { %v7939_v41 = vmul.f32 %v1373_v30, %v82_v26  ;;  %v7941_v42 = vmul.f32 %v1388_v31, %v83_v27  ;;  %v7943_v44 = vmul.f32 %v1404_v32, %v84_v28  ;;  %v1367_v47 = vmul.f32 %v1365_v29, %v7914_v33 }
 0xba4   :  { %v7206_v43 = vpop.eup %7205  ;;  %v7946_v45 = vmul.f32 %v1420_v34, %v7905_v52  ;;  %v7953_v50 = vmul.f32 %v7918_v35, %v7927_v38  ;;  %v7957_v51 = vmul.f32 %v7921_v36, %v7932_v39  ;;  %v7960_v18 = vmul.f32 %v1466_v37, %v7937_v40 }
 0xba5   :  { %v1346_v46 = vmul.f32 %v7206_v43, %v7760_v13  ;;  %v1379_v48 = vrot.slane %v7939_v41, 1  ;;  %v80_v13 = vld [vmem:[%s9595_s1 + $0x3d] sm:$0xff]  ;;  %v9610_v57 = vrot.slane %v7941_v42, 2  ;;  %v9609_v60 = vrot.slane %v7943_v44, 3 }
 0xba6   :  { %v9611_v61 = vrot.slane %v7946_v45, 4  ;;  %v7972_v62 = vmul.f32 %v1466_v37, %v7932_v39  ;;  %v1374_v5 = vmul.f32 %v1373_v30, %v7914_v33  ;;  %v1389_v6 = vmul.f32 %v1388_v31, %v82_v26 }
 0xba7   :  { %v1353_v56 = vmul.f32 %v7862_v8, %v1346_v46  ;;  %v1384_v49 = vadd.f32 %v1379_v48, %v1367_v47  ;;  %v1442_v9 = vrot.slane %v7953_v50, 5  ;;  %v1366_v15 = vmul.f32 %v1365_v29, %v80_v13 }
 0xba8   :  { %v7208_v59 = vpop.eup %7207  ;;  %v1405_v43 = vmul.f32 %v1404_v32, %v83_v27  ;;  %v7994_v46 = vmul.f32 %v1420_v34, %v84_v28  ;;  %v1378_v32 = vrot.slane %v1374_v5, 1 }
 0xba9   :  { %v7975_v63 = vadd.f32 %v7868_v12, %v1353_v56  ;;  %v1400_v3 = vadd.f32 %v9610_v57, %v1384_v49  ;;  %v1347_v37 = vmul.f32 %v7208_v59, %v7765_v17  ;;  %v1394_v56 = vrot.slane %v1389_v6, 2 }
 0xbab   :  { %v1416_v16 = vadd.f32 %v9609_v60, %v1400_v3  ;;  %v1497_v24 = vrot.slane %v7975_v63, %v7875_v19  ;;  %v1512_v30 = vrot.slane %v7975_v63, %v7878_v20  ;;  %v1527_v31 = vrot.slane %v7975_v63, %v7881_v21 }
 0xbac   :  { %v1542_v29 = vrot.slane %v7975_v63, %v7884_v10  ;;  %v7998_v47 = vrot.slane %v7975_v63, %v7871_v14  ;;  %v1557_v17 = vrot.slane %v7975_v63, %v7887_v22 }
 0xbad   :  { %v1498_v49 = vmul.f32 %v1497_v24, %v7914_v33  ;;  %v8003_v59 = vmul.f32 %v1497_v24, %v82_v26  ;;  %v1513_v3 = vmul.f32 %v1512_v30, %v82_v26  ;;  %v8005_v55 = vmul.f32 %v1512_v30, %v83_v27 }
 0xbae   :  { %v1431_v34 = vadd.f32 %v9611_v61, %v1416_v16  ;;  %v1528_v54 = vmul.f32 %v1527_v31, %v83_v27  ;;  %v8009_v25 = vmul.f32 %v1527_v31, %v84_v28  ;;  %v1543_v7 = vmul.f32 %v1542_v29, %v84_v28 }
 0xbaf   :  { %v1502_v60 = vrot.slane %v1498_v49, 1  ;;  %v1503_v11 = vrot.slane %v8003_v59, 1  ;;  %v1517_v57 = vrot.slane %v1513_v3, 2  ;;  %v1518_v5 = vrot.slane %v8005_v55, 2 }
 0xbb0   :  { %v1490_v6 = vmul.f32 %v7998_v47, %v80_v13  ;;  %v1532_v24 = vrot.slane %v1528_v54, 3  ;;  %v1533_v26 = vrot.slane %v8009_v25, 3  ;;  %v8016_v30 = vmul.f32 %v1542_v29, %v7905_v52 }
 0xbb1   :  { %v1504_v27 = vsel %vm9635_vm8, %v1502_v60, %v1503_v11  ;;  %v1558_v28 = vmul.f32 %v1557_v17, %v7905_v52  ;;  %v1410_v16 = vrot.slane %v1405_v43, 3  ;;  %v1436_v31 = vmul.f32 %v7918_v35, %v7905_v52 }
 0xbb2   :  { %v1447_v49 = vadd.f32 %v1442_v9, %v1431_v34  ;;  %v1507_v13 = vadd.f32 %v1504_v27, %v1490_v6  ;;  %v1547_v54 = vrot.slane %v1543_v7, 4  ;;  %v1548_v3 = vrot.slane %v8016_v30, 4  ;;  %v6906_v30 = vld [vmem:[%s9600_s6 + $0x28] ss:$16 sps:$4 sm:$0xff]  }
 0xbb3   :  { %v1519_v29 = vsel %vm9633_vm14, %v1517_v57, %v1518_v5  ;;  %v8031_v61 = vmul.f32 %v1557_v17, %v7927_v38  ;;  %v1572_v60 = vrot.slane %v7975_v63, %v7890_v23  ;;  %v1354_v43 = vmul.f32 %v7862_v8, %v1347_v37 }
 0xbb4   :  { %v1522_v52 = vadd.f32 %v1519_v29, %v1507_v13  ;;  %v1534_v35 = vsel %vm9632_vm15, %v1532_v24, %v1533_v26  ;;  %v1562_v7 = vrot.slane %v1558_v28, 5  ;;  %v1380_v34 = vsel %vm9635_vm8, %v1378_v32, %v1379_v48 }
 0xbb5   :  { %v1563_v57 = vrot.slane %v8031_v61, 5  ;;  %v1573_v17 = vmul.f32 %v1572_v60, %v7927_v38  ;;  %v8045_v6 = vmul.f32 %v1572_v60, %v7932_v39  ;;  %v1361_v27 = vadd.f32 %v7868_v12, %v1354_v43 }
 0xbb6   :  { %v1537_v8 = vadd.f32 %v1534_v35, %v1522_v52  ;;  %v1549_v37 = vsel %vm445_vm7, %v1547_v54, %v1548_v3  ;;  %v1383_v24 = vadd.f32 %v1380_v34, %v1366_v15  ;;  %v9655_v28 = vrot.slane %v7941_v42, 2 }
 0xbb7   :  { %v1577_v48 = vrot.slane %v1573_v17, 6  ;;  %v1578_v61 = vrot.slane %v8045_v6, 6  ;;  %v1587_v32 = vrot.slane %v1361_v27, %v7733_v53  ;;  %v1425_v13 = vrot.slane %v7994_v46, 4 }
 0xbb8   :  { %v1396_v41 = vsel %vm9633_vm14, %v1394_v56, %v9655_v28  ;;  %v9656_v29 = vrot.slane %v7957_v51, 6  ;;  %v1552_v60 = vadd.f32 %v1549_v37, %v1537_v8  ;;  %v9657_v52 = vrot.slane %v7943_v44, 3  ;;  %v5958_v51 = vld [vmem:[%s9595_s1 + $0x1b] ss:$0 sm:$0xff] }
 0xbb9   :  { %v1399_v43 = vadd.f32 %v1396_v41, %v1383_v24  ;;  %v1564_v42 = vsel %vm9626_vm12, %v1562_v7, %v1563_v57  ;;  %v1588_v56 = vmul.f32 %v1587_v32, %v7932_v39  ;;  %v1589_v54 = vmul.f32 %v1587_v32, %v7937_v40 }
 0xbba   :  { %v1462_v12 = vadd.f32 %v9656_v29, %v1447_v49  ;;  %v1412_v15 = vsel %vm9632_vm15, %v1410_v16, %v9657_v52  ;;  %v1441_v35 = vrot.slane %v1436_v31, 5  ;;  %v1567_v34 = vadd.f32 %v1564_v42, %v1552_v60 }
 0xbbb   :  { %v1602_v17 = vrot.slane %v1361_v27, %v7871_v14  ;;  %v1415_v46 = vadd.f32 %v1412_v15, %v1399_v43  ;;  %v1452_v49 = vmul.f32 %v7921_v36, %v7927_v38  ;;  %v1579_v6 = vsel %vm229_vm3, %v1577_v48, %v1578_v61  ;;  %v89_v27 = vld [vmem:[%s9595_s1 + $0x85] sm:$0xff]  ;;  %v90_v36 = vld [vmem:[%s9595_s1 + $0x8d] sm:$0x1] }
 0xbbc   :  { %v1592_v8 = vrot.slane %v1588_v56, 7  ;;  %v1593_v44 = vrot.slane %v1589_v54, 7  ;;  %v9658_v16 = vrot.slane %v7946_v45, 4  ;;  %v1481_v39 = vrot.slane %v7975_v63, %v7733_v53 }
 0xbbd   :  { %v1582_v40 = vadd.f32 %v1579_v6, %v1567_v34  ;;  %v1456_v37 = vrot.slane %v1452_v49, 6  ;;  %v1471_v38 = vrot.slane %v7972_v62, 7  ;;  %v1443_v24 = vsel %vm9626_vm12, %v1441_v35, %v1442_v9  ;;  %v6900_v34 = vld [vmem:[%s9600_s6 + $0x8] ss:$16 sps:$4 sm:$0xff]   ;;  %v6908_v49 = vld [vmem:[%s9600_s6 + $0x2c] ss:$16 sps:$4 sm:$0xff]  }
 0xbbe   :  { %v1427_v7 = vsel %vm445_vm7, %v1425_v13, %v9658_v16  ;;  %v1594_v45 = vsel %vm9634_vm11, %v1592_v8, %v1593_v44  ;;  %v1491_v63 = vmul.f32 %v7998_v47, %v7914_v33  ;;  %v9659_v28 = vrot.slane %v7960_v18, 7 }
 0xbbf   :  { %v1430_v31 = vadd.f32 %v1427_v7, %v1415_v46  ;;  %v1597_v48 = vadd.f32 %v1594_v45, %v1582_v40  ;;  %v1603_v32 = vmul.f32 %v1602_v17, %v89_v27  ;;  %v1458_v60 = vsel %vm229_vm3, %v1456_v37, %v9656_v29  ;;  %v6924_v37 = vld [vmem:[%s9600_s6 + $0x88] ss:$16 sps:$4 sm:$0xff]  }
 0xbc0   :  { %v1477_v41 = vadd.f32 %v9659_v28, %v1462_v12  ;;  %v1508_v62 = vadd.f32 %v1503_v11, %v1491_v63  ;;  %v1483_v43 = vmul.f32 %v1481_v39, %v90_v36  ;;  %v9660_v9 = vmov %v9659_v28  ;;  %v6936_v45 = vld [vmem:[%s9600_s6 + $0xc8] ss:$16 sps:$4 sm:$0xff]   ;;  %v6950_v28 = vld [vmem:[%s9600_s6 + $0x10c] ss:$16 sps:$4 sm:$0xff]  }
 0xbc1   :  { %v1446_v13 = vadd.f32 %v1443_v24, %v1430_v31  ;;  %v1605_v50 = vadd.f32 %v1603_v32, %v1597_v48  ;;  %v1473_v33 = vsel %vm9634_vm11, %v1471_v38, %v9660_v9  ;;  %v1482_v12 = vmul.f32 %v1481_v39, %v89_v27  ;;  %v6918_v39 = vld [vmem:[%s9600_s6 + $0x68] ss:$16 sps:$4 sm:$0xff]   ;;  %v6926_v31 = vld [vmem:[%s9600_s6 + $0x8c] ss:$16 sps:$4 sm:$0xff]  }
 0xbc2   :  { %v1523_v47 = vadd.f32 %v1518_v5, %v1508_v62  ;;  %v1485_v56 = vadd.f32 %v1483_v43, %v1477_v41  ;;  %v1604_v8 = vmul.f32 %v1602_v17, %v90_v36  ;;  %v6920_v17 = vld [vmem:[%s9600_s6 + $0x6c] ss:$16 sps:$4 sm:$0xff]   ;;  %v6930_v36 = vld [vmem:[%s9600_s6 + $0xa8] ss:$16 sps:$4 sm:$0xff]  }
 0xbc3   :  { %v1461_v52 = vadd.f32 %v1458_v60, %v1446_v13  ;;  %v1609_v15 = vrot.slane %v1605_v50, 7  ;;  %v6932_v27 = vld [vmem:[%s9600_s6 + $0xac] ss:$16 sps:$4 sm:$0xff]   ;;  %v6942_v63 = vld [vmem:[%s9600_s6 + $0xe8] ss:$16 sps:$4 sm:$0xff]  }
 0xbc4   :  { %v1538_v11 = vadd.f32 %v1533_v26, %v1523_v47  ;;  %v9661_v26 = vmov 0   ;;  %v6938_v38 = vld [vmem:[%s9600_s6 + $0xcc] ss:$16 sps:$4 sm:$0xff]   ;;  %v6948_v41 = vld [vmem:[%s9600_s6 + $0x108] ss:$16 sps:$4 sm:$0xff]  }
 0xbc5   :  { %v1476_v42 = vadd.f32 %v1473_v33, %v1461_v52  ;;  %v1614_v54 = vsel %vm9634_vm11, %v1485_v56, %v1609_v15  ;;  %v6944_v24 = vld [vmem:[%s9600_s6 + $0xec] ss:$16 sps:$4 sm:$0xff]   ;;  %v6954_v32 = vld [vmem:[%s9600_s6 + $0x128] ss:$16 sps:$4 sm:$0xff]   ;;  %v6981_v33 = vld [vmem:[%s9600_s6 + $0x1c0] ss:$16 sps:$4 sm:$0xff]  }
 0xbc6   :  { %v1620_v18 = vadd.f32 %v5958_v51, %v1614_v54  ;;  %v1553_v35 = vadd.f32 %v1548_v3, %v1538_v11  ;;  %v6914_v3 = vld [vmem:[%s9600_s6 + $0x4c] ss:$16 sps:$4 sm:$0xff]   ;;  %v6960_v29 = vld [vmem:[%s9600_s6 + $0x148] ss:$16 sps:$4 sm:$0xff]   ;;  %v6983_v47 = vld [vmem:[%s9600_s6 + $0x1c4] ss:$16 sps:$4 sm:$0xff]  }
 0xbc7   :  { %v1484_v59 = vadd.f32 %v1482_v12, %v1476_v42  ;;  %v6956_v48 = vld [vmem:[%s9600_s6 + $0x12c] ss:$16 sps:$4 sm:$0xff]   ;;  %v6966_v62 = vld [vmem:[%s9600_s6 + $0x168] ss:$16 sps:$4 sm:$0xff]   ;;  %2153 = vmatprep.subr.bf16.mxu0 %v6983_v47  ;;  %v6987_v42 = vld [vmem:[%s9600_s6 + $0x1e0] ss:$16 sps:$4 sm:$0xff]  }
 0xbc8   :  { %v1568_v5 = vadd.f32 %v1563_v57, %v1553_v35  ;;  %v6962_v13 = vld [vmem:[%s9600_s6 + $0x14c] ss:$16 sps:$4 sm:$0xff]   ;;  %v6972_v50 = vld [vmem:[%s9600_s6 + $0x188] ss:$16 sps:$4 sm:$0xff]   ;;  %2154 = vmatpush1.bf16.msra.mxu0 %v6981_v33  ;;  %v6989_v56 = vld [vmem:[%s9600_s6 + $0x1e4] ss:$16 sps:$4 sm:$0xff]  }
 0xbc9   :  { %v1619_v55 = vadd.f32 %v5958_v51, %v1484_v59  ;;  %v6968_v60 = vld [vmem:[%s9600_s6 + $0x16c] ss:$16 sps:$4 sm:$0xff]   ;;  %v6978_v9 = vld [vmem:[%s9600_s6 + $0x1a8] ss:$16 sps:$4 sm:$0xff]   ;;  %2155 = vmatprep.subr.bf16.mxu0 %v6989_v56  ;;  %v7019_v56 = vld [vmem:[%s9601_s7 + $0x30] sm:$0xff]  }
 0xbca   :  { %v1583_v25 = vadd.f32 %v1578_v61, %v1568_v5  ;;  %v6912_v61 = vld [vmem:[%s9600_s6 + $0x48] ss:$16 sps:$4 sm:$0xff]   ;;  %v6974_v43 = vld [vmem:[%s9600_s6 + $0x18c] ss:$16 sps:$4 sm:$0xff]  }
 0xbcb   :  { %v1622_v46 = vpack.c.bf16 %v1620_v18, %v1619_v55  ;;  %v6980_v52 = vld [vmem:[%s9600_s6 + $0x1ac] ss:$16 sps:$4 sm:$0xff]   ;;  %v6984_v12 = vld [vmem:[%s9600_s6 + $0x1c8] ss:$16 sps:$4 sm:$0xff]  }
 0xbcc   :  { %v1598_v6 = vadd.f32 %v1593_v44, %v1583_v25  ;;  %v6992_v11 = vld [vmem:[%s9600_s6 + $0x1ec] ss:$16 sps:$4 sm:$0xff]   ;;  %2156 = vmatpush1.bf16.msra.mxu0 %v6987_v42  ;;  %v96_v59 = vld [vmem:[#allocation2 + $0x1] ss:$4 sm:$0x3]  ;;  %v7018_v42 = vld [vmem:[%s9601_s7 + $0xf0] sm:$0xff]  }
 0xbcd   :  { %5963 = vmatmul.mubr.msk.bf16.vlgmr.msra.gmra.mrb[16].mxu1 %vm97_vm0, %v1622_v46  ;;  %v1632_v54 = vrot.slane %v96_v59, %v7733_v53  ;;  %v1636_v35 = vrot.slane %v96_v59, %v7871_v14  ;;  %v7014_v33 = vld [vmem:[%s9601_s7 + $0xe8] sm:$0xff]   ;;  %v7022_v59 = vld [vmem:[%s9601_s7 + $0xf8] sm:$0xff]  }
 0xbce   :  { %1707 = vmatprep.mubr.bf16.mxu1 %v9661_v26  ;;  %2177 = vmatpush1.bf16.msra.mxu1 %v6900_v34  ;;  %v1606_v57 = vadd.f32 %v1604_v8, %v1598_v6  ;;  %v7015_v47 = vld [vmem:[%s9601_s7 + $0x28] sm:$0xff]  }
 0xbcf   :  { %2178 = vmatprep.subr.bf16.mxu1 %v6908_v49 }
 0xbd0   :  { %v1610_v16 = vrot.slane %v1606_v57, 7 }
 0xbd2   :  { %2179 = vmatpush1.bf16.msra.mxu1 %v6906_v30  ;;  %v1611_v44 = vsel %vm9634_vm11, %v1609_v15, %v1610_v16  ;;  %v6986_v15 = vld [vmem:[%s9600_s6 + $0x1cc] ss:$16 sps:$4 sm:$0xff]  }
 0xbd3   :  { %2180 = vmatprep.subr.bf16.mxu1 %v6914_v3  ;;  %v1621_v7 = vadd.f32 %v5958_v51, %v1611_v44  ;;  %v6990_v51 = vld [vmem:[%s9600_s6 + $0x1e8] ss:$16 sps:$4 sm:$0xff]  }
 0xbd5   :  { %v1623_v40 = vpack.c.bf16 %v1621_v7, %v1621_v7 }
 0xbd6   :  { %2181 = vmatpush1.bf16.msra.mxu1 %v6912_v61 }
 0xbd7   :  { %2182 = vmatprep.subr.bf16.mxu1 %v6920_v17  ;;  %5964 = vmatmul.mubr.msk.bf16.gmra.mrb[20].mxu1 %vm97_vm0, %v1623_v40  ;;  %v6993_v40 = vld [vmem:[%s9601_s7 + $0x40] sm:$0xff]  }
 0xbd8   :  { %6389 = vmatprep.subr.bf16.mxu0 %v6993_v40 }
 0xbda   :  { %2183 = vmatpush1.bf16.msra.mxu1 %v6918_v39 }
 0xbdb   :  { %2184 = vmatprep.subr.bf16.mxu1 %v6926_v31  ;;  %v6994_v31 = vld [vmem:[%s9601_s7 + $0xc0] sm:$0xff]  }
 0xbde   :  { %2185 = vmatpush1.bf16.msra.mxu1 %v6924_v37  ;;  %v6995_v37 = vld [vmem:[%s9601_s7] sm:$0xff]  }
 0xbdf   :  { %2186 = vmatprep.subr.bf16.mxu1 %v6932_v27  ;;  %v6996_v27 = vld [vmem:[%s9601_s7 + $0x80] sm:$0xff]  }
 0xbe2   :  { %2187 = vmatpush1.bf16.msra.mxu1 %v6930_v36  ;;  %v6997_v36 = vld [vmem:[%s9601_s7 + $0x48] sm:$0xff]  }
 0xbe3   :  { %2188 = vmatprep.subr.bf16.mxu1 %v6938_v38  ;;  %v6998_v38 = vld [vmem:[%s9601_s7 + $0xc8] sm:$0xff]  }
 0xbe6   :  { %2189 = vmatpush1.bf16.msra.mxu1 %v6936_v45  ;;  %v6999_v45 = vld [vmem:[%s9601_s7 + $0x8] sm:$0xff]  }
 0xbe7   :  { %2190 = vmatprep.subr.bf16.mxu1 %v6944_v24  ;;  %v7000_v24 = vld [vmem:[%s9601_s7 + $0x88] sm:$0xff]  }
 0xbea   :  { %2191 = vmatpush1.bf16.msra.mxu1 %v6942_v63  ;;  %v7001_v63 = vld [vmem:[%s9601_s7 + $0x50] sm:$0xff]  }
 0xbeb   :  { %2192 = vmatprep.subr.bf16.mxu1 %v6950_v28  ;;  %v7002_v28 = vld [vmem:[%s9601_s7 + $0xd0] sm:$0xff]  }
 0xbee   :  { %2193 = vmatpush1.bf16.msra.mxu1 %v6948_v41  ;;  %v7003_v41 = vld [vmem:[%s9601_s7 + $0x10] sm:$0xff]  }
 0xbef   :  { %2194 = vmatprep.subr.bf16.mxu1 %v6956_v48  ;;  %v7004_v48 = vld [vmem:[%s9601_s7 + $0x90] sm:$0xff]  }
 0xbf2   :  { %2195 = vmatpush1.bf16.msra.mxu1 %v6954_v32  ;;  %v7005_v32 = vld [vmem:[%s9601_s7 + $0x58] sm:$0xff]  }
 0xbf3   :  { %2196 = vmatprep.subr.bf16.mxu1 %v6962_v13  ;;  %v7006_v13 = vld [vmem:[%s9601_s7 + $0xd8] sm:$0xff]  }
 0xbf6   :  { %2197 = vmatpush1.bf16.msra.mxu1 %v6960_v29  ;;  %v7007_v29 = vld [vmem:[%s9601_s7 + $0x18] sm:$0xff]  }
 0xbf7   :  { %2198 = vmatprep.subr.bf16.mxu1 %v6968_v60  ;;  %v7008_v60 = vld [vmem:[%s9601_s7 + $0x98] sm:$0xff]  }
 0xbfa   :  { %2199 = vmatpush1.bf16.msra.mxu1 %v6966_v62  ;;  %v7009_v62 = vld [vmem:[%s9601_s7 + $0x60] sm:$0xff]  }
 0xbfb   :  { %2200 = vmatprep.subr.bf16.mxu1 %v6974_v43  ;;  %v7010_v43 = vld [vmem:[%s9601_s7 + $0xe0] sm:$0xff]  }
 0xbfe   :  { %2201 = vmatpush1.bf16.msra.mxu1 %v6972_v50  ;;  %v7011_v50 = vld [vmem:[%s9601_s7 + $0x20] sm:$0xff]  }
 0xbff   :  { %2202 = vmatprep.subr.bf16.mxu1 %v6980_v52  ;;  %v7012_v52 = vld [vmem:[%s9601_s7 + $0xa0] sm:$0xff]  }
 0xc02   :  { %2203 = vmatpush1.bf16.msra.mxu1 %v6978_v9  ;;  %v7013_v9 = vld [vmem:[%s9601_s7 + $0x68] sm:$0xff]  }
 0xc03   :  { %2204 = vmatprep.subr.bf16.mxu1 %v6986_v15  ;;  %v7017_v15 = vld [vmem:[%s9601_s7 + $0x70] sm:$0xff]  }
 0xc06   :  { %2205 = vmatpush1.bf16.msra.mxu1 %v6984_v12  ;;  %v7016_v12 = vld [vmem:[%s9601_s7 + $0xa8] sm:$0xff]  }
 0xc07   :  { %2206 = vmatprep.subr.bf16.mxu1 %v6992_v11  ;;  %v7021_v11 = vld [vmem:[%s9601_s7 + $0x78] sm:$0xff]  }
 0xc0a   :  { %2207 = vmatpush1.bf16.msra.mxu1 %v6990_v51  ;;  %v7020_v51 = vld [vmem:[%s9601_s7 + $0xb0] sm:$0xff]  }
 0xc0b   :  { %6417 = vmatprep.subr.bf16.mxu1 %v6994_v31 }
 0xca0   :  { %v1699_v18 = vpop.f32.mrb[16].mxu1 }
 0xca1   :  { %v1701_v55 = vpop.f32.mrb[17].mxu1  ;;  %v1700_v34 = vadd.f32 %v1699_v18, %v1632_v54  ;;  %v7024_v18 = vld [vmem:[%s9601_s7 + $0xb8] sm:$0xff]  }
 0xca2   :  { %v1703_v5 = vpop.f32.mrb[18].mxu1  ;;  %v1702_v25 = vadd.f32 %v1701_v55, %v1636_v35  ;;  %v94_v55 = vld [vmem:[#allocation2] ss:$4 sm:$0xf] }
 0xca3   :  { %v1704_v46 = vadd.f32 %v1703_v5, %v1632_v54  ;;  %v1705_v49 = vpop.f32.mrb[19].mxu1  ;;  %v8316_v5 = vrot.slane %v94_v55, %v7733_v53 }
 0xca4   :  { %v1706_v6 = vadd.f32 %v1705_v49, %v1636_v35  ;;  %v8325_v49 = vrot.slane %v94_v55, %v7878_v20 }
 0xca5   :  { %v1716_v8 = vpack.c.bf16 %v1704_v46, %v1700_v34  ;;  %v8319_v34 = vrot.slane %v94_v55, %v7875_v19  ;;  %v8322_v46 = vrot.slane %v94_v55, %v7871_v14 }
 0xca6   :  { %v1717_v30 = vpack.c.bf16 %v1706_v6, %v1702_v25 }
 0xca8   :  { %2157 = vmatprep.mubr.bf16.mxu0 %v1717_v30  ;;  %2208 = vmatprep.mubr.bf16.mxu1 %v1717_v30 }
 0xca9   :  { %2158 = vmatmul.mubr.bf16.vlgmr.msra.gmra.mrb[24].mxu0 %v1716_v8  ;;  %2209 = vmatmul.mubr.bf16.vlgmr.msra.gmra.mrb[24].mxu1 %v1716_v8 }
 0xcaa   :  { %v1709_v3 = vpop.f32.mrb[20].mxu1  ;;  %6390 = vmatpush3.bf16.msra.mxu0 %v6995_v37  ;;  %6418 = vmatpush3.bf16.msra.mxu1 %v6996_v27 }
 0xcab   :  { %v1710_v57 = vadd.f32 %v1709_v3, %v1632_v54  ;;  %v1711_v16 = vpop.f32.mrb[21].mxu1  ;;  %6391 = vmatprep.subr.bf16.mxu0 %v6997_v36  ;;  %6419 = vmatprep.subr.bf16.mxu1 %v6998_v38  ;;  %v7023_v54 = vld [vmem:[%s9601_s7 + $0x38] sm:$0xff]  }
 0xcac   :  { %v1712_v61 = vadd.f32 %v1711_v16, %v1636_v35  ;;  %v1713_v17 = vpop.f32.mrb[22].mxu1  ;;  %v9662_v35 = vmov 0.0|0.0  }
 0xcad   :  { %v1714_v44 = vpop.f32.mrb[23].mxu1  ;;  %v1718_v39 = vpack.c.bf16 %v1710_v57, %v1710_v57 }
 0xcae   :  { %v1719_v7 = vpack.c.bf16 %v1712_v61, %v1712_v61  ;;  %6392 = vmatpush3.bf16.msra.mxu0 %v6999_v45  ;;  %6420 = vmatpush3.bf16.msra.mxu1 %v7000_v24 }
 0xcaf   :  { %6393 = vmatprep.subr.bf16.mxu0 %v7001_v63  ;;  %6421 = vmatprep.subr.bf16.mxu1 %v7002_v28 }
 0xcb0   :  { %2167 = vmatprep.mubr.bf16.mxu0 %v1719_v7  ;;  %2218 = vmatprep.mubr.bf16.mxu1 %v1719_v7 }
 0xcb1   :  { %2168 = vmatmul.mubr.bf16.gmra.mrb[28].mxu0 %v1718_v39  ;;  %2219 = vmatmul.mubr.bf16.gmra.mrb[28].mxu1 %v1718_v39 }
 0xcb2   :  { %6394 = vmatpush3.bf16.msra.mxu0 %v7003_v41  ;;  %6422 = vmatpush3.bf16.msra.mxu1 %v7004_v48 }
 0xcb3   :  { %6395 = vmatprep.subr.bf16.mxu0 %v7005_v32  ;;  %6423 = vmatprep.subr.bf16.mxu1 %v7006_v13 }
 0xcb6   :  { %6396 = vmatpush3.bf16.msra.mxu0 %v7007_v29  ;;  %6424 = vmatpush3.bf16.msra.mxu1 %v7008_v60 }
 0xcb7   :  { %6397 = vmatprep.subr.bf16.mxu0 %v7009_v62  ;;  %6425 = vmatprep.subr.bf16.mxu1 %v7010_v43 }
 0xcba   :  { %6398 = vmatpush3.bf16.msra.mxu0 %v7011_v50  ;;  %6426 = vmatpush3.bf16.msra.mxu1 %v7012_v52 }
 0xcbb   :  { %6399 = vmatprep.subr.bf16.mxu0 %v7013_v9  ;;  %6427 = vmatprep.subr.bf16.mxu1 %v7014_v33 }
 0xcbe   :  { %6400 = vmatpush3.bf16.msra.mxu0 %v7015_v47  ;;  %6428 = vmatpush3.bf16.msra.mxu1 %v7016_v12 }
 0xcbf   :  { %6401 = vmatprep.subr.bf16.mxu0 %v7017_v15  ;;  %6429 = vmatprep.subr.bf16.mxu1 %v7018_v42 }
 0xcc2   :  { %6402 = vmatpush3.bf16.msra.mxu0 %v7019_v56  ;;  %6430 = vmatpush3.bf16.msra.mxu1 %v7020_v51 }
 0xcc3   :  { %6403 = vmatprep.subr.bf16.mxu0 %v7021_v11  ;;  %6431 = vmatprep.subr.bf16.mxu1 %v7022_v59 }
 0xcc6   :  { %6404 = vmatpush3.bf16.msra.mxu0 %v7023_v54  ;;  %6432 = vmatpush3.bf16.msra.mxu1 %v7024_v18 }
 0xcc7   :  { %6825 = vmatprep.subr.bf16.mxu1 %v9662_v35 }
 0xd7c   :  { %v2159_v25 = vpop.f32.mrb[24].mxu0  ;;  %v2210_v6 = vpop.f32.mrb[24].mxu1 }
 0xd7d   :  { %v2160_v8 = vadd.f32 %v2159_v25, %v8316_v5  ;;  %v8329_v30 = vadd.f32 %v2210_v6, %v8319_v34  ;;  %v2161_v3 = vpop.f32.mrb[25].mxu0  ;;  %v2212_v57 = vpop.f32.mrb[25].mxu1 }
 0xd7e   :  { %v2162_v16 = vadd.f32 %v2161_v3, %v8322_v46  ;;  %v8333_v61 = vadd.f32 %v2212_v57, %v8325_v49  ;;  %v2163_v17 = vpop.f32.mrb[26].mxu0  ;;  %v2214_v44 = vpop.f32.mrb[26].mxu1 }
 0xd7f   :  { %v8335_v7 = vmul.f32 0.70710677, %v2160_v8  ;;  %v8338_v39 = vmul.f32 0.70710677, %v8329_v30  ;;  %v2165_v32 = vpop.f32.mrb[27].mxu0  ;;  %v2216_v13 = vpop.f32.mrb[27].mxu1  ;;  %v2164_v43 = vadd.f32 %v2163_v17, %v8316_v5  ;;  %v8359_v9 = vadd.f32 %v2214_v44, %v8319_v34 }
 0xd80   :  { %v8340_v40 = vmul.f32 0.70710677, %v2162_v16  ;;  %v8343_v31 = vmul.f32 0.70710677, %v8333_v61  ;;  %v8364_v42 = vadd.f32 %v2165_v32, %v8322_v46  ;;  %v8371_v25 = vadd.f32 %v2216_v13, %v8325_v49 }
 0xd81   :  { %v2251_v37 = vand.u32 2147483647, %v8335_v7  ;;  %v2253_v27 = vand.u32 2147483647, %v8338_v39  ;;  %v8361_v15 = vmul.f32 0.70710677, %v2164_v43 }
 0xd82   :  { %v2252_v36 = vand.u32 2147483647, %v8340_v40  ;;  %v2254_v38 = vand.u32 2147483647, %v8343_v31  ;;  %v8367_v54 = vmul.f32 0.70710677, %v8359_v9 }
 0xd83   :  { %v2263_v45 = vmul.f32 0.3275911, %v2251_v37  ;;  %v2265_v24 = vmul.f32 0.3275911, %v2253_v27  ;;  %v2419_v11 = vsub.f32 0.0, %v2251_v37  ;;  %v2421_v59 = vsub.f32 0.0, %v2253_v27 }
 0xd84   :  { %v2264_v63 = vmul.f32 0.3275911, %v2252_v36  ;;  %v2266_v48 = vmul.f32 0.3275911, %v2254_v38  ;;  %v8349_v29 = vpop.f32.mrb[28].mxu0  ;;  %v8351_v60 = vpop.f32.mrb[28].mxu1 }
 0xd85   :  { %v2275_v28 = vadd.f32 1.0, %v2263_v45  ;;  %v2277_v41 = vadd.f32 1.0, %v2265_v24  ;;  %v8354_v50 = vpop.f32.mrb[29].mxu0  ;;  %v8356_v52 = vpop.f32.mrb[29].mxu1  ;;  %v2420_v18 = vsub.f32 0.0, %v2252_v36  ;;  %v2422_v6 = vsub.f32 0.0, %v2254_v38 }
 0xd86   :  { %v2276_v62 = vadd.f32 1.0, %v2264_v63  ;;  %v2173_v33 = vpop.f32.mrb[30].mxu0  ;;  %v2224_v47 = vpop.f32.mrb[30].mxu1  ;;  %v2278_v12 = vadd.f32 1.0, %v2266_v48  ;;  %v2255_v55 = vand.u32 2147483647, %v8361_v15  ;;  %v2431_v45 = vmul.f32 %v2419_v11, %v2251_v37 }
 0xd87   :  { %7209 = vrcp.f32 %v2275_v28  ;;  %v2174_v56 = vpop.f32.mrb[31].mxu0  ;;  %v2225_v51 = vpop.f32.mrb[31].mxu1  ;;  %v2257_v3 = vand.u32 2147483647, %v8367_v54  ;;  %v8375_v57 = vmul.f32 0.70710677, %v8364_v42  ;;  %v2433_v24 = vmul.f32 %v2421_v59, %v2253_v27 }
 0xd88   :  { %7211 = vrcp.f32 %v2277_v41  ;;  %v8377_v17 = vmul.f32 0.5, %v2160_v8  ;;  %v2267_v44 = vmul.f32 0.3275911, %v2255_v55  ;;  %v2432_v41 = vmul.f32 %v2420_v18, %v2252_v36 }
 0xd89   :  { %7213 = vrcp.f32 %v2276_v62  ;;  %v2269_v63 = vmul.f32 0.3275911, %v2257_v3  ;;  %v2256_v28 = vand.u32 2147483647, %v8375_v57  ;;  %v2423_v32 = vsub.f32 0.0, %v2255_v55 }
 0xd8a   :  { %7215 = vrcp.f32 %v2278_v12  ;;  %v2279_v48 = vadd.f32 1.0, %v2267_v44  ;;  %v8381_v13 = vmul.f32 0.70710677, %v8371_v25  ;;  %v2434_v62 = vmul.f32 %v2422_v6, %v2254_v38 }
 0xd8b   :  { %v2281_v33 = vadd.f32 1.0, %v2269_v63  ;;  %v2425_v47 = vsub.f32 0.0, %v2257_v3  ;;  %v2268_v56 = vmul.f32 0.3275911, %v2256_v28  ;;  %v8386_v8 = vmul.f32 0.5, %v8329_v30 }
 0xd8c   :  { %v8388_v37 = vmul.f32 0.5, %v2162_v16  ;;  %7217 = vrcp.f32 %v2279_v48  ;;  %v2258_v27 = vand.u32 2147483647, %v8381_v13  ;;  %v2443_v11 = vmul.f32 1.442695, %v2431_v45 }
 0xd8d   :  { %7219 = vrcp.f32 %v2281_v33  ;;  %v2280_v38 = vadd.f32 1.0, %v2268_v56  ;;  %v2447_v18 = vmul.f32 1.442695, %v2433_v24  ;;  %v2435_v6 = vmul.f32 %v2423_v32, %v2255_v55 }
 0xd8e   :  { %v2270_v44 = vmul.f32 0.3275911, %v2258_v27  ;;  %v2445_v30 = vmul.f32 1.442695, %v2432_v41  ;;  %v2449_v23 = vmul.f32 1.442695, %v2434_v62  ;;  %v2437_v16 = vmul.f32 %v2425_v47, %v2257_v3 }
 0xd8f   :  { %7221 = vrcp.f32 %v2280_v38  ;;  %v8399_v21 = vadd.f32 %v8349_v29, %v8316_v5  ;;  %v8403_v55 = vmul.f32 0.5, %v2164_v43  ;;  %v2451_v41 = vmul.f32 1.442695, %v2435_v6 }
 0xd90   :  { %v2282_v10 = vadd.f32 1.0, %v2270_v44  ;;  %7223 = vpow2.f32 %v2443_v11  ;;  %v2424_v62 = vsub.f32 0.0, %v2256_v28  ;;  %v2455_v29 = vmul.f32 1.442695, %v2437_v16 }
 0xd91   :  { %v8383_v51 = vpop.eup %7209  ;;  %7225 = vpow2.f32 %v2447_v18  ;;  %v2426_v44 = vsub.f32 0.0, %v2258_v27  ;;  %vm2491_vm12 = vcmp.ge.f32.partialorder %v8335_v7, 0.0  ;;  %vm2493_vm15 = vcmp.ge.f32.partialorder %v8338_v39, 0.0 }
 0xd92   :  { %v8391_v36 = vpop.eup %7211  ;;  %v2311_v12 = vmul.f32 1.0614054, %v8383_v51  ;;  %7227 = vrcp.f32 %v2282_v10  ;;  %v2436_v6 = vmul.f32 %v2424_v62, %v2256_v28  ;;  %vm2492_vm14 = vcmp.ge.f32.partialorder %v8340_v40, 0.0 }
 0xd93   :  { %v2313_v59 = vmul.f32 1.0614054, %v8391_v36  ;;  %v8395_v22 = vpop.eup %7213  ;;  %7229 = vpow2.f32 %v2445_v30  ;;  %vm2495_vm11 = vcmp.ge.f32.partialorder %v8361_v15, 0.0  ;;  %vm2497_vm8 = vcmp.ge.f32.partialorder %v8367_v54, 0.0 }
 0xd94   :  { %v2323_v63 = vadd.f32 -1.4531521, %v2311_v12  ;;  %v2312_v24 = vmul.f32 1.0614054, %v8395_v22  ;;  %v8405_v32 = vpop.eup %7215  ;;  %v8410_v12 = vmul.f32 0.70710677, %v8399_v21  ;;  %7231 = vpow2.f32 %v2449_v23 }
 0xd95   :  { %v2325_v48 = vadd.f32 -1.4531521, %v2313_v59  ;;  %v2314_v56 = vmul.f32 1.0614054, %v8405_v32  ;;  %7233 = vpow2.f32 %v2451_v41  ;;  %vm2494_vm10 = vcmp.ge.f32.partialorder %v8343_v31, 0.0 }
 0xd96   :  { %v2335_v45 = vmul.f32 %v8383_v51, %v2323_v63  ;;  %v2324_v47 = vadd.f32 -1.4531521, %v2312_v24  ;;  %v8414_v59 = vpop.eup %7217  ;;  %7235 = vpow2.f32 %v2455_v29  ;;  %v8423_v23 = vand.u32 2147483647, %v8410_v12 }
 0xd97   :  { %v2337_v3 = vmul.f32 %v8391_v36, %v2325_v48  ;;  %v2326_v38 = vadd.f32 -1.4531521, %v2314_v56  ;;  %v8417_v10 = vpop.eup %7219  ;;  %v2315_v48 = vmul.f32 1.0614054, %v8414_v59 }
 0xd98   :  { %v2347_v33 = vadd.f32 1.4214138, %v2335_v45  ;;  %v2336_v11 = vmul.f32 %v8395_v22, %v2324_v47  ;;  %v2317_v24 = vmul.f32 1.0614054, %v8417_v10 }
 0xd99   :  { %v2349_v5 = vadd.f32 1.4214138, %v2337_v3  ;;  %v2338_v16 = vmul.f32 %v8405_v32, %v2326_v38  ;;  %v2327_v62 = vadd.f32 -1.4531521, %v2315_v48  ;;  %v2271_v48 = vmul.f32 0.3275911, %v8423_v23 }
 0xd9a   :  { %v2359_v43 = vmul.f32 %v8383_v51, %v2347_v33  ;;  %v2348_v30 = vadd.f32 1.4214138, %v2336_v11  ;;  %v8427_v33 = vpop.eup %7221  ;;  %v2329_v56 = vadd.f32 -1.4531521, %v2317_v24 }
 0xd9b   :  { %v2361_v18 = vmul.f32 %v8391_v36, %v2349_v5  ;;  %v2350_v41 = vadd.f32 1.4214138, %v2338_v16  ;;  %v2453_v5 = vmul.f32 1.442695, %v2436_v6  ;;  %v7224_v11 = vpop.eup %7223  ;;  %v2339_v20 = vmul.f32 %v8414_v59, %v2327_v62 }
 0xd9c   :  { %v2371_v63 = vadd.f32 -0.28449672, %v2359_v43  ;;  %v2360_v28 = vmul.f32 %v8395_v22, %v2348_v30  ;;  %v2438_v43 = vmul.f32 %v2426_v44, %v2258_v27  ;;  %v7226_v14 = vpop.eup %7225  ;;  %v2341_v30 = vmul.f32 %v8417_v10, %v2329_v56 }
 0xd9d   :  { %v2373_v45 = vadd.f32 -0.28449672, %v2361_v18  ;;  %v2362_v29 = vmul.f32 %v8405_v32, %v2350_v41  ;;  %v2316_v16 = vmul.f32 1.0614054, %v8427_v33  ;;  %v8435_v19 = vpop.eup %7227  ;;  %7237 = vpow2.f32 %v2453_v5 }
 0xd9e   :  { %v2383_v3 = vmul.f32 %v8383_v51, %v2371_v63  ;;  %v2372_v18 = vadd.f32 -0.28449672, %v2360_v28  ;;  %v7230_v24 = vpop.eup %7229  ;;  %v2353_v28 = vadd.f32 1.4214138, %v2341_v30  ;;  %v2318_v62 = vmul.f32 1.0614054, %v8435_v19 }
 0xd9f   :  { %v2385_v47 = vmul.f32 %v8391_v36, %v2373_v45  ;;  %v2374_v44 = vadd.f32 -0.28449672, %v2362_v29  ;;  %v2351_v45 = vadd.f32 1.4214138, %v2339_v20  ;;  %v2328_v41 = vadd.f32 -1.4531521, %v2316_v16 }
 0xda0   :  { %v2395_v38 = vadd.f32 0.2548296, %v2383_v3  ;;  %v2384_v27 = vmul.f32 %v8395_v22, %v2372_v18  ;;  %v2365_v20 = vmul.f32 %v8417_v10, %v2353_v28  ;;  %v2330_v0 = vadd.f32 -1.4531521, %v2318_v62 }
 0xda1   :  { %v2397_v63 = vadd.f32 0.2548296, %v2385_v47  ;;  %v7232_v47 = vpop.eup %7231  ;;  %v2386_v26 = vmul.f32 %v8405_v32, %v2374_v44  ;;  %v2340_v29 = vmul.f32 %v8427_v33, %v2328_v41 }
 0xda2   :  { %v2407_v6 = vmul.f32 %v8383_v51, %v2395_v38  ;;  %v2396_v53 = vadd.f32 0.2548296, %v2384_v27  ;;  %v2363_v51 = vmul.f32 %v8414_v59, %v2351_v45  ;;  %v7234_v38 = vpop.eup %7233  ;;  %v2342_v27 = vmul.f32 %v8435_v19, %v2330_v0 }
 0xda3   :  { %v2409_v3 = vmul.f32 %v8391_v36, %v2397_v63  ;;  %v2398_v63 = vadd.f32 0.2548296, %v2386_v26  ;;  %v7236_v16 = vpop.eup %7235 }
 0xda4   :  { %v2467_v56 = vmul.f32 %v7224_v11, %v2407_v6  ;;  %v2408_v36 = vmul.f32 %v8395_v22, %v2396_v53  ;;  %v2375_v30 = vadd.f32 -0.28449672, %v2363_v51  ;;  %v2377_v11 = vadd.f32 -0.28449672, %v2365_v20 }
 0xda5   :  { %v2469_v18 = vmul.f32 %v7226_v14, %v2409_v3  ;;  %v2352_v6 = vadd.f32 1.4214138, %v2340_v29  ;;  %v2354_v53 = vadd.f32 1.4214138, %v2342_v27  ;;  %v2457_v22 = vmul.f32 1.442695, %v2438_v43 }
 0xda6   :  { %v2479_v2 = vsub.f32 1.0, %v2467_v56  ;;  %v2468_v45 = vmul.f32 %v7230_v24, %v2408_v36  ;;  %v2387_v3 = vmul.f32 %v8414_v59, %v2375_v30  ;;  %v2389_v28 = vmul.f32 %v8417_v10, %v2377_v11 }
 0xda7   :  { %v2481_v14 = vsub.f32 1.0, %v2469_v18  ;;  %v2364_v41 = vmul.f32 %v8427_v33, %v2352_v6  ;;  %v2410_v26 = vmul.f32 %v8405_v32, %v2398_v63  ;;  %v2233_v56 = vmul.f32 0.5, %v8359_v9  ;;  %v7238_v6 = vpop.eup %7237 }
 0xda8   :  { %v2503_v44 = vsub.f32 0.0, %v2479_v2  ;;  %v2399_v62 = vadd.f32 0.2548296, %v2387_v3  ;;  %v2283_v51 = vadd.f32 1.0, %v2271_v48  ;;  %v2401_v0 = vadd.f32 0.2548296, %v2389_v28 }
 0xda9   :  { %v2376_v5 = vadd.f32 -0.28449672, %v2364_v41  ;;  %v8458_v24 = vadd.f32 %v8351_v60, %v8319_v34  ;;  %v2505_v43 = vsub.f32 0.0, %v2481_v14  ;;  %v2480_v20 = vsub.f32 1.0, %v2468_v45 }
 0xdaa   :  { %v2515_v18 = vsel %vm2491_vm12, %v2479_v2, %v2503_v44  ;;  %v2411_v32 = vmul.f32 %v8414_v59, %v2399_v62  ;;  %v2413_v9 = vmul.f32 %v8417_v10, %v2401_v0  ;;  %v2366_v29 = vmul.f32 %v8435_v19, %v2354_v53 }
 0xdab   :  { %v2388_v48 = vmul.f32 %v8427_v33, %v2376_v5  ;;  %7239 = vpow2.f32 %v2457_v22  ;;  %v2470_v36 = vmul.f32 %v7232_v47, %v2410_v26  ;;  %v2527_v34 = vadd.f32 1.0, %v2515_v18 }
 0xdac   :  { %v2471_v63 = vmul.f32 %v7234_v38, %v2411_v32  ;;  %7241 = vrcp.f32 %v2283_v51  ;;  %v2473_v60 = vmul.f32 %v7236_v16, %v2413_v9  ;;  %v2378_v2 = vadd.f32 -0.28449672, %v2366_v29 }
 0xdad   :  { %v2400_v7 = vadd.f32 0.2548296, %v2388_v48  ;;  %v2517_v30 = vsel %vm2493_vm15, %v2481_v14, %v2505_v43  ;;  %v2504_v59 = vsub.f32 0.0, %v2480_v20  ;;  %vm2496_vm12 = vcmp.ge.f32.partialorder %v8375_v57, 0.0 }
 0xdae   :  { %v2483_v11 = vsub.f32 1.0, %v2471_v63  ;;  %v8471_v10 = vmul.f32 0.70710677, %v8458_v24  ;;  %v2485_v47 = vsub.f32 1.0, %v2473_v60  ;;  %v2427_v16 = vsub.f32 0.0, %v8423_v23 }
 0xdaf   :  { %v2412_v38 = vmul.f32 %v8427_v33, %v2400_v7  ;;  %v8478_v27 = vadd.f32 %v8354_v50, %v8322_v46  ;;  %v2482_v39 = vsub.f32 1.0, %v2470_v36  ;;  %v2390_v14 = vmul.f32 %v8435_v19, %v2378_v2 }
 0xdb0   :  { %v2507_v44 = vsub.f32 0.0, %v2483_v11  ;;  %v8482_v45 = vand.u32 2147483647, %v8471_v10  ;;  %v2539_v3 = vmul.f32 %v2527_v34, %v8377_v17  ;;  %v2529_v28 = vadd.f32 1.0, %v2517_v30 }
 0xdb1   :  { %v2509_v41 = vsub.f32 0.0, %v2485_v47  ;;  %v2472_v53 = vmul.f32 %v7238_v6, %v2412_v38  ;;  %v2516_v33 = vsel %vm2492_vm14, %v2480_v20, %v2504_v59  ;;  %v2402_v46 = vadd.f32 0.2548296, %v2390_v14 }
 0xdb2   :  { %v2519_v22 = vsel %vm2495_vm11, %v2483_v11, %v2507_v44  ;;  %v2273_v50 = vmul.f32 0.3275911, %v8482_v45  ;;  %v8493_v0 = vmul.f32 0.70710677, %v8478_v27  ;;  %v2506_v17 = vsub.f32 0.0, %v2482_v39 }
 0xdb3   :  { %v2531_v26 = vadd.f32 1.0, %v2519_v22  ;;  %v2521_v62 = vsel %vm2497_vm8, %v2485_v47, %v2509_v41  ;;  %v2484_v51 = vsub.f32 1.0, %v2472_v53  ;;  %v2414_v18 = vmul.f32 %v8435_v19, %v2402_v46 }
 0xdb4   :  { %v2533_v5 = vadd.f32 1.0, %v2521_v62  ;;  %v2285_v40 = vadd.f32 1.0, %v2273_v50  ;;  %v2541_v15 = vmul.f32 %v2529_v28, %v8386_v8  ;;  %v2260_v9 = vand.u32 2147483647, %v8493_v0 }
 0xdb5   :  { %v7240_v43 = vpop.eup %7239  ;;  %v2543_v20 = vmul.f32 %v2531_v26, %v8403_v55  ;;  %v2508_v32 = vsub.f32 0.0, %v2484_v51  ;;  %v2528_v54 = vadd.f32 1.0, %v2516_v33  ;;  %v2232_v34 = vmul.f32 0.5, %v8364_v42 }
 0xdb6   :  { %v8499_v48 = vpop.eup %7241  ;;  %v2545_v29 = vmul.f32 %v2533_v5, %v2233_v56  ;;  %v2474_v36 = vmul.f32 %v7240_v43, %v2414_v18  ;;  %7243 = vrcp.f32 %v2285_v40  ;;  %v2272_v60 = vmul.f32 0.3275911, %v2260_v9 }
 0xdb7   :  { %v2551_v63 = vpack.c.bf16 %v2543_v20, %v2539_v3  ;;  %v2520_v19 = vsel %vm2496_vm12, %v2484_v51, %v2508_v32  ;;  %v2518_v8 = vsel %vm2494_vm10, %v2482_v39, %v2506_v17  ;;  %v8508_v59 = vadd.f32 %v8356_v52, %v8325_v49 }
 0xdb8   :  { %v2553_v55 = vpack.c.bf16 %v2545_v29, %v2541_v15  ;;  %v2532_v7 = vadd.f32 1.0, %v2520_v19  ;;  %v2486_v2 = vsub.f32 1.0, %v2474_v36  ;;  %v2284_v30 = vadd.f32 1.0, %v2272_v60 }
 0xdb9   :  { %v2319_v56 = vmul.f32 1.0614054, %v8499_v48  ;;  %v2540_v11 = vmul.f32 %v2528_v54, %v8388_v37  ;;  %v2439_v57 = vmul.f32 %v2427_v16, %v8423_v23  ;;  %v2530_v47 = vadd.f32 1.0, %v2518_v8 }
 0xdba   :  { %v2544_v42 = vmul.f32 %v2532_v7, %v2232_v34  ;;  %v2510_v6 = vsub.f32 0.0, %v2486_v2  ;;  %vm2498_vm8 = vcmp.ge.f32.partialorder %v8381_v13, 0.0  ;;  %7245 = vrcp.f32 %v2284_v30 }
 0xdbb   :  { %v8515_v31 = vmul.f32 0.70710677, %v8508_v59  ;;  %v2331_v44 = vadd.f32 -1.4531521, %v2319_v56  ;;  %v2230_v49 = vmul.f32 0.5, %v8333_v61  ;;  %v2234_v52 = vmul.f32 0.5, %v8371_v25 }
 0xdbc   :  { %v2522_v38 = vsel %vm2498_vm8, %v2486_v2, %v2510_v6  ;;  %v2552_v39 = vpack.c.bf16 %v2544_v42, %v2540_v11  ;;  %v2459_v3 = vmul.f32 1.442695, %v2439_v57  ;;  %v2429_v23 = vsub.f32 0.0, %v8482_v45 }
 0xdbd   :  { %v2534_v14 = vadd.f32 1.0, %v2522_v38  ;;  %v2262_v37 = vand.u32 2147483647, %v8515_v31  ;;  %v2343_v13 = vmul.f32 %v8499_v48, %v2331_v44  ;;  %v2542_v16 = vmul.f32 %v2530_v47, %v2230_v49 }
 0xdbe   :  { %2851 = vmatprep.mubr.bf16.mxu0 %v2552_v39  ;;  %v2428_v22 = vsub.f32 0.0, %v2260_v9  ;;  %7247 = vpow2.f32 %v2459_v3  ;;  %v2441_v25 = vmul.f32 %v2429_v23, %v8482_v45  ;;  %vm2499_vm10 = vcmp.ge.f32.partialorder %v8410_v12, 0.0 }
 0xdbf   :  { %v2546_v28 = vmul.f32 %v2534_v14, %v2234_v52  ;;  %v2274_v41 = vmul.f32 0.3275911, %v2262_v37  ;;  %2852 = vmatmul.mubr.bf16.vlgmr.msra.gmra.mrb[32].mxu0 %v2551_v63  ;;  %v2355_v33 = vadd.f32 1.4214138, %v2343_v13  ;;  %v2430_v36 = vsub.f32 0.0, %v2262_v37 }
 0xdc0   :  { %v7244_v53 = vpop.eup %7243  ;;  %v2440_v5 = vmul.f32 %v2428_v22, %v2260_v9  ;;  %v2463_v40 = vmul.f32 1.442695, %v2441_v25  ;;  %vm2500_vm11 = vcmp.ge.f32.partialorder %v8493_v0, 0.0  ;;  %vm2501_vm14 = vcmp.ge.f32.partialorder %v8471_v10, 0.0 }
 0xdc1   :  { %v2286_v46 = vadd.f32 1.0, %v2274_v41  ;;  %v2554_v61 = vpack.c.bf16 %v2546_v28, %v2542_v16  ;;  %v2321_v50 = vmul.f32 1.0614054, %v7244_v53  ;;  %v2367_v26 = vmul.f32 %v8499_v48, %v2355_v33 }
 0xdc2   :  { %v2461_v29 = vmul.f32 1.442695, %v2440_v5  ;;  %v2442_v9 = vmul.f32 %v2430_v36, %v2262_v37  ;;  %v2236_v5 = vmul.f32 0.5, %v8478_v27  ;;  %vm2502_vm15 = vcmp.ge.f32.partialorder %v8515_v31, 0.0 }
 0xdc3   :  { %7249 = vrcp.f32 %v2286_v46  ;;  %2899 = vmatprep.mubr.bf16.mxu1 %v2554_v61  ;;  %v2333_v62 = vadd.f32 -1.4531521, %v2321_v50  ;;  %v2379_v51 = vadd.f32 -0.28449672, %v2367_v26  ;;  %v2235_v26 = vmul.f32 0.5, %v8399_v21 }
 0xdc4   :  { %2900 = vmatmul.mubr.bf16.vlgmr.msra.gmra.mrb[32].mxu1 %v2553_v55  ;;  %v7246_v17 = vpop.eup %7245  ;;  %7251 = vpow2.f32 %v2463_v40  ;;  %v2465_v57 = vmul.f32 1.442695, %v2442_v9  ;;  %v2237_v21 = vmul.f32 0.5, %v8458_v24  ;;  %v2238_v27 = vmul.f32 0.5, %v8508_v59  ;;  %v6029_v24 = vld [vmem:[%s9595_s1 + $0x1c] ss:$0 sm:$0xff] }
 0xdc5   :  { %v2345_v18 = vmul.f32 %v7244_v53, %v2333_v62  ;;  %v2320_v43 = vmul.f32 1.0614054, %v7246_v17  ;;  %v2391_v15 = vmul.f32 %v8499_v48, %v2379_v51  ;;  %7253 = vpow2.f32 %v2461_v29 }
 0xdc6   :  { %7255 = vpow2.f32 %v2465_v57 }
 0xdc7   :  { %v2357_v20 = vadd.f32 1.4214138, %v2345_v18  ;;  %v2332_v32 = vadd.f32 -1.4531521, %v2320_v43  ;;  %v2403_v54 = vadd.f32 0.2548296, %v2391_v15 }
 0xdc8   :  { %v7248_v60 = vpop.eup %7247 }
 0xdc9   :  { %v2369_v45 = vmul.f32 %v7244_v53, %v2357_v20  ;;  %v2344_v63 = vmul.f32 %v7246_v17, %v2332_v32  ;;  %v2415_v34 = vmul.f32 %v8499_v48, %v2403_v54 }
 0xdcb   :  { %v2381_v19 = vadd.f32 -0.28449672, %v2369_v45  ;;  %v2356_v8 = vadd.f32 1.4214138, %v2344_v63  ;;  %v2475_v7 = vmul.f32 %v7248_v60, %v2415_v34  ;;  %v9663_v60 = vmov 0.0  }
 0xdcd   :  { %v7250_v55 = vpop.eup %7249  ;;  %v2393_v2 = vmul.f32 %v7244_v53, %v2381_v19  ;;  %v2368_v30 = vmul.f32 %v7246_v17, %v2356_v8  ;;  %v2487_v47 = vsub.f32 1.0, %v2475_v7 }
 0xdce   :  { %v2322_v56 = vmul.f32 1.0614054, %v7250_v55  ;;  %v7252_v49 = vpop.eup %7251 }
 0xdcf   :  { %v2405_v11 = vadd.f32 0.2548296, %v2393_v2  ;;  %v2380_v42 = vadd.f32 -0.28449672, %v2368_v30  ;;  %v2511_v14 = vsub.f32 0.0, %v2487_v47  ;;  %v7254_v13 = vpop.eup %7253 }
 0xdd0   :  { %v2334_v6 = vadd.f32 -1.4531521, %v2322_v56 }
 0xdd1   :  { %v2417_v38 = vmul.f32 %v7244_v53, %v2405_v11  ;;  %v2392_v39 = vmul.f32 %v7246_v17, %v2380_v42  ;;  %v2523_v41 = vsel %vm2499_vm10, %v2487_v47, %v2511_v14 }
 0xdd2   :  { %v2346_v44 = vmul.f32 %v7250_v55, %v2334_v6  ;;  %v2535_v50 = vadd.f32 1.0, %v2523_v41 }
 0xdd3   :  { %v2404_v48 = vadd.f32 0.2548296, %v2392_v39  ;;  %v2477_v3 = vmul.f32 %v7252_v49, %v2417_v38 }
 0xdd4   :  { %v2358_v52 = vadd.f32 1.4214138, %v2346_v44  ;;  %v2547_v40 = vmul.f32 %v2535_v50, %v2235_v26 }
 0xdd5   :  { %v2416_v23 = vmul.f32 %v7246_v17, %v2404_v48  ;;  %v2489_v33 = vsub.f32 1.0, %v2477_v3  ;;  %v7256_v17 = vpop.eup %7255 }
 0xdd6   :  { %v2370_v37 = vmul.f32 %v7250_v55, %v2358_v52  ;;  %v2555_v29 = vpack.c.bf16 %v2547_v40, %v2547_v40 }
 0xdd7   :  { %v2476_v16 = vmul.f32 %v7254_v13, %v2416_v23  ;;  %v2513_v25 = vsub.f32 0.0, %v2489_v33 }
 0xdd8   :  { %v2382_v28 = vadd.f32 -0.28449672, %v2370_v37 }
 0xdd9   :  { %v2488_v22 = vsub.f32 1.0, %v2476_v16  ;;  %v2525_v15 = vsel %vm2501_vm14, %v2489_v33, %v2513_v25 }
 0xdda   :  { %v2394_v46 = vmul.f32 %v7250_v55, %v2382_v28  ;;  %v2537_v0 = vadd.f32 1.0, %v2525_v15 }
 0xddb   :  { %v2512_v53 = vsub.f32 0.0, %v2488_v22 }
 0xddc   :  { %v2406_v61 = vadd.f32 0.2548296, %v2394_v46  ;;  %v2549_v10 = vmul.f32 %v2537_v0, %v2237_v21 }
 0xddd   :  { %v2524_v62 = vsel %vm2500_vm11, %v2488_v22, %v2512_v53 }
 0xdde   :  { %v2418_v51 = vmul.f32 %v7250_v55, %v2406_v61  ;;  %v2536_v12 = vadd.f32 1.0, %v2524_v62  ;;  %v2557_v19 = vpack.c.bf16 %v2549_v10, %v2549_v10 }
 0xde0   :  { %v2478_v18 = vmul.f32 %v7256_v17, %v2418_v51  ;;  %v2548_v43 = vmul.f32 %v2536_v12, %v2236_v5 }
 0xde2   :  { %v2490_v20 = vsub.f32 1.0, %v2478_v18  ;;  %v2556_v32 = vpack.c.bf16 %v2548_v43, %v2548_v43 }
 0xde4   :  { %v2514_v54 = vsub.f32 0.0, %v2490_v20  ;;  %2859 = vmatprep.mubr.bf16.mxu0 %v2556_v32 }
 0xde5   :  { %2860 = vmatmul.mubr.bf16.gmra.mrb[36].mxu0 %v2555_v29 }
 0xde6   :  { %v2526_v36 = vsel %vm2502_vm15, %v2490_v20, %v2514_v54 }
 0xde7   :  { %v2538_v45 = vadd.f32 1.0, %v2526_v36 }
 0xde9   :  { %v2550_v63 = vmul.f32 %v2538_v45, %v2238_v27 }
 0xdeb   :  { %v2558_v34 = vpack.c.bf16 %v2550_v63, %v2550_v63 }
 0xded   :  { %2907 = vmatprep.mubr.bf16.mxu1 %v2558_v34 }
 0xdee   :  { %2908 = vmatmul.mubr.bf16.gmra.mrb[36].mxu1 %v2557_v19 }
 0xdef   :  { %6682 = vmatprep.mubr.msk.f32.mxu1 %vm7434_vm2, %v9663_v60 }
 0xe92   :  { %v6405_v8 = vpop.f32.mrb[32].mxu0 }
 0xe93   :  { %v6406_v55 = vpop.f32.mrb[33].mxu0 }
 0xe94   :  { %v6407_v31 = vadd.f32 %v6406_v55, %v6405_v8  ;;  %v6408_v9 = vpop.f32.mrb[34].mxu0 }
 0xe95   :  { %v6409_v7 = vpop.f32.mrb[35].mxu0 }
 0xe96   :  { %v6410_v59 = vadd.f32 %v6409_v7, %v6408_v9  ;;  %v2854_v30 = vadd.f32 %v6407_v31, %v6029_v24 }
 0xe97   :  { %v6433_v2 = vpop.f32.mrb[32].mxu1 }
 0xe98   :  { %v6434_v56 = vpop.f32.mrb[33].mxu1  ;;  %v2857_v6 = vadd.f32 %v6410_v59, %v6029_v24 }
 0xe99   :  { %v6435_v11 = vadd.f32 %v6434_v56, %v6433_v2  ;;  %v6436_v42 = vpop.f32.mrb[34].mxu1 }
 0xe9a   :  { %v6437_v57 = vpop.f32.mrb[35].mxu1 }
 0xe9b   :  { %v8539_v47 = vadd.f32 %v6435_v11, %v2854_v30  ;;  %v6438_v38 = vadd.f32 %v6437_v57, %v6436_v42 }
 0xe9d   :  { %v2918_v39 = vmul.f32 0.70710677, %v8539_v47  ;;  %v8542_v44 = vadd.f32 %v6438_v38, %v2857_v6  ;;  %v2915_v38 = vmul.f32 0.5, %v8539_v47 }
 0xe9f   :  { %v2921_v49 = vand.u32 2147483647, %v2918_v39  ;;  %v8545_v48 = vmul.f32 0.70710677, %v8542_v44  ;;  %vm2981_vm12 = vcmp.ge.f32.partialorder %v2918_v39, 0.0 }
 0xea1   :  { %v2924_v52 = vmul.f32 0.3275911, %v2921_v49  ;;  %v2922_v14 = vand.u32 2147483647, %v8545_v48  ;;  %v2963_v13 = vsub.f32 0.0, %v2921_v49  ;;  %vm2982_vm8 = vcmp.ge.f32.partialorder %v8545_v48, 0.0 }
 0xea3   :  { %v2927_v3 = vadd.f32 1.0, %v2924_v52  ;;  %v2925_v23 = vmul.f32 0.3275911, %v2922_v14  ;;  %v2964_v16 = vsub.f32 0.0, %v2922_v14  ;;  %v2966_v41 = vmul.f32 %v2963_v13, %v2921_v49 }
 0xea5   :  { %7257 = vrcp.f32 %v2927_v3  ;;  %v2928_v37 = vadd.f32 1.0, %v2925_v23  ;;  %v2967_v53 = vmul.f32 %v2964_v16, %v2922_v14  ;;  %v2969_v61 = vmul.f32 1.442695, %v2966_v41 }
 0xea7   :  { %7259 = vrcp.f32 %v2928_v37  ;;  %v2971_v51 = vmul.f32 1.442695, %v2967_v53  ;;  %v2916_v37 = vmul.f32 0.5, %v8542_v44 }
 0xea8   :  { %7261 = vpow2.f32 %v2969_v61 }
 0xea9   :  { %7263 = vpow2.f32 %v2971_v51 }
 0xeaf   :  { %v7258_v28 = vpop.eup %7257 }
 0xeb0   :  { %v2936_v33 = vmul.f32 1.0614054, %v7258_v28 }
 0xeb1   :  { %v7260_v22 = vpop.eup %7259 }
 0xeb2   :  { %v2939_v46 = vadd.f32 -1.4531521, %v2936_v33  ;;  %v2937_v50 = vmul.f32 1.0614054, %v7260_v22  ;;  %v7262_v45 = vpop.eup %7261 }
 0xeb3   :  { %v7264_v7 = vpop.eup %7263 }
 0xeb4   :  { %v2942_v25 = vmul.f32 %v7258_v28, %v2939_v46  ;;  %v2940_v26 = vadd.f32 -1.4531521, %v2937_v50 }
 0xeb6   :  { %v2945_v62 = vadd.f32 1.4214138, %v2942_v25  ;;  %v2943_v17 = vmul.f32 %v7260_v22, %v2940_v26 }
 0xeb8   :  { %v2948_v5 = vmul.f32 %v7258_v28, %v2945_v62  ;;  %v2946_v12 = vadd.f32 1.4214138, %v2943_v17  ;;  %v6411_v18 = vpop.f32.mrb[36].mxu0 }
 0xeb9   :  { %v6412_v43 = vpop.f32.mrb[37].mxu0 }
 0xeba   :  { %v2951_v40 = vadd.f32 -0.28449672, %v2948_v5  ;;  %v2949_v15 = vmul.f32 %v7260_v22, %v2946_v12  ;;  %v6413_v20 = vadd.f32 %v6412_v43, %v6411_v18  ;;  %v6414_v32 = vpop.f32.mrb[38].mxu0 }
 0xebb   :  { %v6415_v29 = vpop.f32.mrb[39].mxu0 }
 0xebc   :  { %v2954_v54 = vmul.f32 %v7258_v28, %v2951_v40  ;;  %v2952_v0 = vadd.f32 -0.28449672, %v2949_v15  ;;  %v2862_v34 = vadd.f32 %v6413_v20, %v6029_v24 }
 0xebe   :  { %v2957_v21 = vadd.f32 0.2548296, %v2954_v54  ;;  %v2955_v36 = vmul.f32 %v7260_v22, %v2952_v0 }
 0xec0   :  { %v2960_v27 = vmul.f32 %v7258_v28, %v2957_v21  ;;  %v2958_v10 = vadd.f32 0.2548296, %v2955_v36 }
 0xec1   :  { %v6439_v63 = vpop.f32.mrb[36].mxu1 }
 0xec2   :  { %v2975_v19 = vmul.f32 %v7262_v45, %v2960_v27  ;;  %v6440_v8 = vpop.f32.mrb[37].mxu1  ;;  %v2961_v55 = vmul.f32 %v7260_v22, %v2958_v10 }
 0xec3   :  { %v6441_v31 = vadd.f32 %v6440_v8, %v6439_v63  ;;  %v6442_v9 = vpop.f32.mrb[38].mxu1 }
 0xec4   :  { %v2978_v59 = vsub.f32 1.0, %v2975_v19  ;;  %v6443_v2 = vpop.f32.mrb[39].mxu1  ;;  %v2976_v30 = vmul.f32 %v7264_v7, %v2961_v55  ;;  %v7025_v7 = vld [vmem:[%s9598_s4 + $0x10] sm:$0xff]  }
 0xec5   :  { %v2910_v56 = vadd.f32 %v6441_v31, %v2862_v34  ;;  %6668 = vmatprep.subr.bf16.mxu0 %v7025_v7 }
 0xec6   :  { %v2984_v11 = vsub.f32 0.0, %v2978_v59  ;;  %v2979_v42 = vsub.f32 1.0, %v2976_v30  ;;  %6669 = vmatpush3.bf16.msra.mxu0 %v7025_v7 }
 0xec7   :  { %v2920_v6 = vmul.f32 0.70710677, %v2910_v56  ;;  %v2917_v43 = vmul.f32 0.5, %v2910_v56 }
 0xec8   :  { %v2987_v57 = vsel %vm2981_vm12, %v2978_v59, %v2984_v11  ;;  %v2985_v52 = vsub.f32 0.0, %v2979_v42  ;;  %v7026_v59 = vld [vmem:[%s9598_s4 + $0x18] sm:$0xff]  }
 0xec9   :  { %v2990_v49 = vadd.f32 1.0, %v2987_v57  ;;  %v2923_v24 = vand.u32 2147483647, %v2920_v6  ;;  %vm2983_vm10 = vcmp.ge.f32.partialorder %v2920_v6, 0.0  ;;  %6670 = vmatprep.subr.bf16.mxu0 %v7026_v59 }
 0xeca   :  { %v2988_v3 = vsel %vm2982_vm8, %v2979_v42, %v2985_v52  ;;  %6671 = vmatpush3.bf16.msra.mxu0 %v7026_v59  ;;  %v3006_v59 = vld [vmem:[%s9595_s1 + $0x95] sm:$0xff] }
 0xecb   :  { %v2993_v14 = vmul.f32 %v2990_v49, %v2915_v38  ;;  %v2926_v23 = vmul.f32 0.3275911, %v2923_v24  ;;  %v2991_v13 = vadd.f32 1.0, %v2988_v3  ;;  %v2965_v33 = vsub.f32 0.0, %v2923_v24  ;;  %6828 = vmatprep.subr.bf16.mxu0 %v9662_v35  ;;  %v6062_v49 = vld [vmem:[%s9595_s1 + $0x8e] ss:$0 sm:$0xff] }
 0xecc   :  { %v6063_v3 = vld [vmem:[%s9595_s1 + $0x8f] ss:$0 sm:$0xff] }
 0xecd   :  { %v2929_v16 = vadd.f32 1.0, %v2926_v23  ;;  %v8552_v28 = vadd.f32 %v2993_v14, %v7737_v58  ;;  %v2994_v39 = vmul.f32 %v2991_v13, %v2916_v37  ;;  %v2968_v22 = vmul.f32 %v2965_v33, %v2923_v24 }
 0xecf   :  { %7265 = vrcp.f32 %v2929_v16  ;;  %v3028_v47 = vsel %vm97_vm0, %v8552_v28, 0.0  ;;  %v8557_v41 = vadd.f32 %v2994_v39, %v7744_v1  ;;  %v2973_v58 = vmul.f32 1.442695, %v2968_v22 }
 0xed0   :  { %3029 = vadd.xlane.f32.xlu1 %v3028_v47 }
 0xed1   :  { %v3031_v48 = vsel %vm97_vm0, %v8557_v41, 0.0  ;;  %7267 = vpow2.f32 %v2973_v58 }
 0xed2   :  { %3032 = vadd.xlane.f32.xlu0 %v3031_v48 }
 0xed9   :  { %v7266_v44 = vpop.eup %7265 }
 0xeda   :  { %v2938_v46 = vmul.f32 1.0614054, %v7266_v44 }
 0xedb   :  { %v7268_v1 = vpop.eup %7267 }
 0xedc   :  { %v2941_v53 = vadd.f32 -1.4531521, %v2938_v46 }
 0xede   :  { %v2944_v61 = vmul.f32 %v7266_v44, %v2941_v53 }
 0xee0   :  { %v2947_v50 = vadd.f32 1.4214138, %v2944_v61 }
 0xee2   :  { %v2950_v25 = vmul.f32 %v7266_v44, %v2947_v50 }
 0xee4   :  { %v2953_v26 = vadd.f32 -0.28449672, %v2950_v25 }
 0xee6   :  { %v2956_v62 = vmul.f32 %v7266_v44, %v2953_v26 }
 0xee8   :  { %v2959_v51 = vadd.f32 0.2548296, %v2956_v62 }
 0xeea   :  { %v2962_v17 = vmul.f32 %v7266_v44, %v2959_v51  ;;  %v7377_v51 = vld [vmem:[%s9596_s2 + $0x6] sm:$0xf] }
 0xeec   :  { %v2977_v5 = vmul.f32 %v7268_v1, %v2962_v17  ;;  %v7378_v17 = vld [vmem:[%s9595_s1 + $0x12] sm:$0xf] }
 0xeee   :  { %v2980_v12 = vsub.f32 1.0, %v2977_v5 }
 0xef0   :  { %v2986_v18 = vsub.f32 0.0, %v2980_v12 }
 0xef2   :  { %v2989_v40 = vsel %vm2983_vm10, %v2980_v12, %v2986_v18 }
 0xef3   :  { %v2992_v15 = vadd.f32 1.0, %v2989_v40 }
 0xef5   :  { %v2995_v20 = vmul.f32 %v2992_v15, %v2917_v43 }
 0xef7   :  { %v8562_v32 = vadd.f32 %v2995_v20, %v7747_v4 }
 0xef9   :  { %v3034_v54 = vsel %vm104_vm1, %v8562_v32, 0.0 }
 0xefa   :  { %3035 = vadd.xlane.f32.xlu1 %v3034_v54 }
 0xf5d   :  { %v3030_v29 = vpop.xlane.xlu1 %3029 }
 0xf5e   :  { %v3037_v0 = vmul.f32 0.03125, %v3030_v29 }
 0xf5f   :  { %v3033_v36 = vpop.xlane.xlu0 %3032 }
 0xf60   :  { %v3040_v21 = vsub.f32 %v8552_v28, %v3037_v0  ;;  %v3038_v27 = vmul.f32 0.03125, %v3033_v36  ;;  %v7379_v0 = vld [vmem:[%s9596_s2] sm:$0xf] }
 0xf62   :  { %v3043_v45 = vmul.f32 %v3040_v21, %v3040_v21  ;;  %v3041_v10 = vsub.f32 %v8557_v41, %v3038_v27 }
 0xf64   :  { %v3046_v63 = vsel %vm97_vm0, %v3043_v45, 0.0  ;;  %v3044_v34 = vmul.f32 %v3041_v10, %v3041_v10 }
 0xf65   :  { %3047 = vadd.xlane.f32.xlu0 %v3046_v63 }
 0xf66   :  { %v3049_v4 = vsel %vm97_vm0, %v3044_v34, 0.0 }
 0xf67   :  { %3050 = vadd.xlane.f32.xlu1 %v3049_v4 }
 0xf87   :  { %v3036_v19 = vpop.xlane.xlu1 %3035 }
 0xf88   :  { %v3039_v8 = vmul.f32 0.03125, %v3036_v19 }
 0xf8a   :  { %v3042_v55 = vsub.f32 %v8562_v32, %v3039_v8 }
 0xf8c   :  { %v3045_v31 = vmul.f32 %v3042_v55, %v3042_v55 }
 0xf8e   :  { %v3052_v9 = vsel %vm104_vm1, %v3045_v31, 0.0 }
 0xf8f   :  { %3053 = vadd.xlane.f32.xlu0 %v3052_v9 }
 0xff2   :  { %v3048_v2 = vpop.xlane.xlu0 %3047 }
 0xff3   :  { %v3055_v30 = vmul.f32 0.03125, %v3048_v2  ;;  %v3007_v2 = vld [vmem:[%s9595_s1 + $0x9d] sm:$0xff] }
 0xff4   :  { %v3051_v11 = vpop.xlane.xlu1 %3050 }
 0xff5   :  { %v3058_v56 = vadd.f32 1e-05, %v3055_v30  ;;  %v3056_v42 = vmul.f32 0.03125, %v3051_v11  ;;  %v6836_v30 = vpack.c.bf16 %v3007_v2, %v3006_v59 }
 0xff7   :  { %7269 = vrsqrt.f32 %v3058_v56  ;;  %v3059_v6 = vadd.f32 1e-05, %v3056_v42 }
 0xff9   :  { %7271 = vrsqrt.f32 %v3059_v6 }
0x1001   :  { %v7270_v57 = vpop.eup %7269 }
0x1002   :  { %v3064_v38 = vmul.f32 %v7270_v57, %v3040_v21 }
0x1003   :  { %v7272_v52 = vpop.eup %7271 }
0x1004   :  { %v3065_v24 = vmul.f32 %v7272_v52, %v3041_v10  ;;  %v3071_v14 = vmul.f32 %v6062_v49, %v3064_v38 }
0x1006   :  { %v3072_v23 = vmul.f32 %v6062_v49, %v3065_v24  ;;  %v3078_v37 = vadd.f32 %v6063_v3, %v3071_v14 }
0x1008   :  { %v8585_v13 = vadd.f32 %v6063_v3, %v3072_v23 }
0x100a   :  { %v8588_v16 = vpack.c.bf16 %v8585_v13, %v3078_v37 }
0x100c   :  { %6672 = vmatprep.mubr.msk.bf16.mxu0 %vm97_vm0, %v8588_v16 }
0x101c   :  { %v3054_v39 = vpop.xlane.xlu0 %3053 }
0x101d   :  { %v3057_v47 = vmul.f32 0.03125, %v3054_v39  ;;  %v7380_v39 = vld [vmem:[%s9596_s2 + $0x4] sm:$0x3] }
0x101f   :  { %v3060_v48 = vadd.f32 1e-05, %v3057_v47  ;;  %v3021_v47 = vld [vmem:[%s9596_s2 + $0x1c] sm:$0xff] }
0x1021   :  { %7273 = vrsqrt.f32 %v3060_v48  ;;  %v3023_v48 = vld [vmem:[%s9596_s2 + $0x2c] sm:$0x3] }
0x102b   :  { %v7274_v33 = vpop.eup %7273 }
0x102c   :  { %v3066_v44 = vmul.f32 %v7274_v33, %v3042_v55  ;;  %v3008_v33 = vld [vmem:[%s9595_s1 + $0xa5] sm:$0xff] }
0x102e   :  { %v3073_v22 = vmul.f32 %v6062_v49, %v3066_v44  ;;  %v3009_v44 = vld [vmem:[%s9595_s1 + $0xad] sm:$0xff] }
0x1030   :  { %v8592_v46 = vadd.f32 %v6063_v3, %v3073_v22  ;;  %v6839_v22 = vpack.c.bf16 %v3009_v44, %v3008_v33 }
0x1032   :  { %v3082_v53 = vpack.c.bf16 %v8592_v46, %v8592_v46 }
0x1034   :  { %6673 = vmatmul.mubr.msk.bf16.vlgmr.msra.gmra.mrb[40].mxu0 %vm97_vm0, %v3082_v53 }
0x1035   :  { %6691 = vmatprep.mubr.msk.f32.mxu0 %vm7434_vm2, %v9663_v60 }
0x1107   :  { %v6674_v58 = vpop.f32.mrb[40].mxu0 }
0x1108   :  { %3234 = vrot.lane.b32.xlu0 %v6674_v58, %s7436_s26  ;;  %v3140_v61 = vpop.f32.mrb[41].mxu0 }
0x1109   :  { %v6675_v50 = vpop.f32.mrb[42].mxu0 }
0x110a   :  { %v3143_v25 = vpop.f32.mrb[43].mxu0 }
0x110b   :  { %v6884_v26 = vpack.i.bf16 %v3143_v25, %v3140_v61  ;;  %v6826_v62 = vpack.c.bf16 %v3143_v25, %v3140_v61 }
0x110d   :  { %6885 = vrot.lane.b32.xlu1 %v6884_v26, %s7436_s26  ;;  %6827 = vmatpush3.bf16.msra.mxu1 %v6826_v62 }
0x110e   :  { %6680 = vmatprep.subr.mxu1 %v9663_v60 }
0x1111   :  { %6681 = vmatpush3.msk.msra.mxu1 %vm229_vm3, %v6674_v58 }
0x1112   :  { %6683 = vmatmul.mubr.msk.f32.vlgmr.msra.gmra.mrb[14].mxu1 %vm225_vm4, %v7377_v51  ;;  %6694 = vmatprep.subr.mxu1 %v9663_v60 }
0x1113   :  { %6695 = vmatpush3.msk.msra.mxu1 %vm445_vm7, %v7378_v17  ;;  %6696 = vmatprep.mubr.msk.f32.mxu1 %vm7434_vm2, %v9663_v60 }
0x1114   :  { %6835 = vmatprep.subr.bf16.mxu1 %v9662_v35 }
0x117a   :  { %v3235_v43 = vpop.permute.xlu0 %3234 }
0x117f   :  { %v6886_v1 = vpop.permute.xlu1 %6885 }
0x1180   :  { %v6888_v5 = vunpack.i.h.bf16 %v6886_v1  ;;  %v6887_v12 = vunpack.i.l.bf16 %v6886_v1 }
0x1182   :  { %v6829_v18 = vpack.c.bf16 %v6888_v5, %v6887_v12 }
0x1184   :  { %6831 = vmatpush3.bf16.xpose.msk.msra.mxu0 %vm7595_vm5, %v6829_v18  ;;  %vm9665_vm5 = vcmask 72704  }
0x1185   :  { %6689 = vmatprep.subr.mxu0 %v9663_v60 }
0x118c   :  { %6690 = vmatpush3.xpose.msk.msra.mxu0 %vm97_vm0, %v3235_v43 }
0x118d   :  { %6832 = vmatprep.subr.bf16.mxu0 %v9662_v35 }
0x11e5   :  { %v3223_v15 = vpop.f32.mrb[14].mxu1 }
0x11e6   :  { %v3227_v20 = vmul.f32 %v7378_v17, %v3223_v15  ;;  %v6684_v54 = vpop.f32.mrb[15].mxu1 }
0x11e8   :  { %6692 = vmatmul.mubr.msk.f32.vlgmr.msra.gmra.mrb[22].mxu0 %vm97_vm0, %v3227_v20 }
0x11e9   :  { %6711 = vmatprep.mubr.msk.f32.mxu0 %vm7434_vm2, %v9663_v60 }
0x12bb   :  { %v3311_v29 = vpop.f32.mrb[22].mxu0 }
0x12bc   :  { %v3312_v21 = vadd.f32 %v7379_v0, %v3311_v29  ;;  %v6693_v36 = vpop.f32.mrb[23].mxu0 }
0x12be   :  { %v3315_v27 = vsel %vm391_vm6, %v3312_v21, -inf }
0x12bf   :  { %3316 = vmax.xlane.f32.xlu1 %v3315_v27 }
0x134c   :  { %v3317_v45 = vpop.xlane.xlu1 %3316 }
0x134d   :  { %v3318_v10 = vsub.f32 %v3312_v21, %v3317_v45 }
0x134f   :  { %v3319_v63 = vmul.f32 1.442695, %v3318_v10 }
0x1351   :  { %7275 = vpow2.f32 %v3319_v63 }
0x135b   :  { %v7276_v34 = vpop.eup %7275 }
0x135c   :  { %v3321_v4 = vsel %vm391_vm6, %v7276_v34, 0.0  ;;  %vm9668_vm6 = vcmask 1046528  }
0x135d   :  { %3322 = vadd.xlane.f32.xlu0 %v3321_v4 }
0x1373   :  { %3447 = vrot.lane.b32.xlu0 %v3140_v61, %s7437_s11 }
0x1377   :  { %3449 = vrot.lane.b32.xlu0 %v3143_v25, %s7437_s11 }
0x137b   :  { %3451 = vrot.lane.b32.xlu0 %v6674_v58, %s7437_s11 }
0x1399   :  { %3701 = vxpose.xlu0.b32.start [1/2] (short) (narrow) %v3078_v37, 32 }
0x139d   :  { %3702 = vxpose.xlu0.b32.end [2/2] (short) (narrow) %v8585_v13, 32 }
0x13ea   :  { %v3323_v19 = vpop.xlane.xlu0 %3322 }
0x13eb   :  { %7277 = vrcp.f32 %v3323_v19  ;;  %v3955_v19 = vrot.slane %v8585_v13, 1 }
0x13ee   :  { %v3448_v56 = vpop.permute.xlu0 %3447 }
0x13f2   :  { %v3450_v6 = vpop.permute.xlu0 %3449 }
0x13f5   :  { %v7278_v8 = vpop.eup %7277 }
0x13f6   :  { %v3325_v55 = vmul.f32 %v7278_v8, %v7276_v34  ;;  %v3452_v23 = vpop.permute.xlu0 %3451 }
0x13f8   :  { %3326 = vxpose.xlu1.b32.start.end [1/1] (short) (narrow) %v3325_v55, 24 }
0x1419   :  { %v3717_v58 = vpop.trf.xlu0 }
0x141d   :  { %v3718_v25 = vpop.trf.xlu0 }
0x1421   :  { %v3719_v1 = vpop.trf.xlu0 }
0x1425   :  { %v3720_v54 = vpop.trf.xlu0 }
0x1478   :  { %v3342_v31 = vpop.trf.xlu1 }
0x1479   :  { %6697 = vmatmul.mubr.msk.f32.vlgmr.msra.gmra.mrb[40].mxu1 %vm435_vm9, %v3342_v31 }
0x147a   :  { %6699 = vmatprep.mubr.msk.f32.mxu1 %vm7434_vm2, %v9663_v60  ;;  %6837 = vmatpush3.bf16.msra.mxu1 %v6836_v30 }
0x147b   :  { %6838 = vmatprep.subr.bf16.mxu1 %v9662_v35 }
0x147c   :  { %v3343_v9 = vpop.trf.xlu1 }
0x147d   :  { %6700 = vmatmul.mubr.msk.f32.gmra.mrb[42].mxu1 %vm435_vm9, %v3343_v9 }
0x147e   :  { %6702 = vmatprep.mubr.msk.f32.mxu1 %vm7434_vm2, %v9663_v60  ;;  %6840 = vmatpush3.bf16.msra.mxu1 %v6839_v22 }
0x1480   :  { %v3344_v7 = vpop.trf.xlu1 }
0x1481   :  { %6703 = vmatmul.mubr.msk.f32.gmra.mrb[44].mxu1 %vm435_vm9, %v3344_v7 }
0x1482   :  { %6722 = vmatprep.mubr.msk.f32.mxu1 %vm7434_vm2, %v9663_v60 }
0x154c   :  { %v3433_v11 = vpop.f32.mrb[40].mxu1 }
0x154d   :  { %v6698_v42 = vpop.f32.mrb[41].mxu1  ;;  %v3456_v38 = vmul.f32 %v3448_v56, %v3433_v11 }
0x1550   :  { %v3438_v57 = vpop.f32.mrb[42].mxu1 }
0x1551   :  { %v3457_v49 = vmul.f32 %v3450_v6, %v3438_v57  ;;  %v6701_v52 = vpop.f32.mrb[43].mxu1 }
0x1553   :  { %v6833_v24 = vpack.c.bf16 %v3457_v49, %v3456_v38 }
0x1554   :  { %v3443_v14 = vpop.f32.mrb[44].mxu1 }
0x1555   :  { %6834 = vmatpush3.bf16.msra.mxu0 %v6833_v24  ;;  %v6704_v3 = vpop.f32.mrb[45].mxu1  ;;  %v3458_v37 = vmul.f32 %v3452_v23, %v3443_v14 }
0x1556   :  { %6709 = vmatprep.subr.mxu0 %v9663_v60 }
0x1559   :  { %6710 = vmatpush3.msk.msra.mxu0 %vm229_vm3, %v3458_v37 }
0x155a   :  { %6841 = vmatprep.subr.bf16.mxu0 %v9662_v35  ;;  %6712 = vmatmul.mubr.msk.f32.vlgmr.msra.gmra.mrb[44].mxu0 %vm225_vm4, %v7380_v39 }
0x155b   :  { %6843 = vmatpush3.bf16.msra.mxu0 %v8588_v16  ;;  %6731 = vmatprep.mubr.msk.f32.mxu0 %vm7434_vm2, %v9663_v60  ;;  %v3022_v16 = vld [vmem:[%s9596_s2 + $0x24] sm:$0xff] }
0x155c   :  { %6729 = vmatprep.subr.mxu0 %v9663_v60 }
0x155f   :  { %6730 = vmatpush3.msk.msra.mxu0 %vm229_vm3, %v8592_v46 }
0x1560   :  { %6732 = vmatmul.mubr.msk.f32.vlgmr.msra.gmra.mrb[46].mxu0 %vm225_vm4, %v3021_v47  ;;  %6862 = vmatprep.subr.bf16.mxu0 %v9662_v35 }
0x1561   :  { %6734 = vmatprep.mubr.msk.f32.mxu0 %vm7434_vm2, %v9663_v60 }
0x1564   :  { %6735 = vmatmul.mubr.msk.f32.gmra.mrb[48].mxu0 %vm225_vm4, %v3022_v16 }
0x1565   :  { %6737 = vmatprep.mubr.msk.f32.mxu0 %vm7434_vm2, %v9663_v60 }
0x1568   :  { %6738 = vmatmul.mubr.msk.f32.gmra.mrb[50].mxu0 %vm225_vm4, %v3023_v48  ;;  %vm9667_vm4 = vmmov %vm9665_vm5 }
0x1569   :  { %6779 = vmatprep.mubr.msk.f32.mxu0 %vm7434_vm2, %v9663_v60  ;;  %vm9669_vm9 = vmmov %vm9667_vm4 }
0x156a   :  { %vm9670_vm11 = vmmov %vm9667_vm4 }
0x156b   :  { %vm9672_vm14 = vmmov %vm9667_vm4 }
0x156c   :  { %vm9673_vm15 = vmmov %vm9667_vm4 }
0x156d   :  { %vm9674_vm12 = vmmov %vm9667_vm4 }
0x156e   :  { %vm9675_vm8 = vmmov %vm9667_vm4 }
0x162d   :  { %v3528_v53 = vpop.f32.mrb[44].mxu0 }
0x162e   :  { %v6713_v61 = vpop.f32.mrb[45].mxu0  ;;  %6723 = vmatmul.mubr.msk.f32.vlgmr.msra.gmra.mrb[46].mxu1 %vm97_vm0, %v3528_v53 }
0x162f   :  { %6744 = vmatprep.mubr.msk.f32.mxu1 %vm9665_vm5, %v3717_v58  ;;  %vm9687_vm5 = vcmask 1045504  }
0x1633   :  { %v3687_v50 = vpop.f32.mrb[46].mxu0 }
0x1634   :  { %v6733_v26 = vpop.f32.mrb[47].mxu0 }
0x1637   :  { %v3692_v62 = vpop.f32.mrb[48].mxu0 }
0x1638   :  { %v6844_v51 = vpack.c.bf16 %v3692_v62, %v3687_v50  ;;  %v6736_v17 = vpop.f32.mrb[49].mxu0  ;;  %v3993_v18 = vrot.slane %v3692_v62, 1  ;;  %v6084_v62 = vld [vmem:[%s9595_s1 + $0x90] ss:$0 sm:$0xff] }
0x163a   :  { %6846 = vmatprep.subr.msk.bf16.mxu1 %vm7679_vm13, %v6844_v51 }
0x163b   :  { %6849 = vmatpush3.bf16.msk.msra.mxu1 %vm7679_vm13, %v6844_v51  ;;  %v3697_v12 = vpop.f32.mrb[50].mxu0 }
0x163c   :  { %v3994_v40 = vrot.slane %v3697_v12, 1  ;;  %6850 = vmatprep.subr.bf16.mxu1 %v9662_v35  ;;  %v6739_v43 = vpop.f32.mrb[51].mxu0 }
0x163e   :  { %6745 = vmatmul.mubr.msk.f32.vlgmr.msra.gmra.mrb[48].mxu1 %vm9667_vm4, %v3718_v25  ;;  %v3995_v15 = vsel %vm9668_vm6, %v3993_v18, %v3994_v40  ;;  %v9676_v18 = vmov 0   ;;  %vm9688_vm4 = vcmask 1044480  }
0x163f   :  { %v8695_v20 = vpack.c.bf16 %v3994_v40, %v3995_v15  ;;  %6747 = vmatprep.mubr.msk.f32.mxu1 %vm9669_vm9, %v3719_v1 }
0x1642   :  { %6748 = vmatmul.mubr.msk.f32.gmra.mrb[50].mxu1 %vm9670_vm11, %v3720_v54  ;;  %vm9692_vm11 = vmmov %vm9687_vm5 }
0x1643   :  { %6758 = vmatprep.mubr.msk.f32.mxu1 %vm7434_vm2, %v9663_v60  ;;  %v3956_v60 = vrot.slane %v8592_v46, 1  ;;  %vm9671_vm2 = vmmov %vm9668_vm6  ;;  %vm9689_vm6 = vcmask 1042432  }
0x1644   :  { %vm9686_vm10 = vmmov %vm9671_vm2 }
0x1645   :  { %v3957_v8 = vsel %vm9671_vm2, %v3955_v19, %v3956_v60  ;;  %vm9690_vm9 = vmmov %vm9671_vm2 }
0x1646   :  { %vm9694_vm2 = vmmov %vm9688_vm4 }
0x1701   :  { %v8701_v29 = vpop.f32.mrb[46].mxu1 }
0x1702   :  { %v6724_v0 = vpop.f32.mrb[47].mxu1  ;;  %v8719_v17 = vadd.f32 %v6084_v62, %v8701_v29 }
0x1711   :  { %v6746_v21 = vpop.f32.mrb[48].mxu1 }
0x1712   :  { %v3814_v36 = vpop.f32.mrb[49].mxu1  ;;  %v3836_v27 = vsel %vm97_vm0, %v6746_v21, -inf }
0x1713   :  { %3837 = vmax.xlane.f32.xlu0 %v3836_v27  ;;  %v3833_v45 = vsel %vm97_vm0, %v3814_v36, -inf }
0x1714   :  { %3834 = vmax.xlane.f32.xlu1 %v3833_v45 }
0x1715   :  { %v6749_v10 = vpop.f32.mrb[50].mxu1 }
0x1716   :  { %v3824_v63 = vpop.f32.mrb[51].mxu1  ;;  %v3842_v4 = vsel %vm97_vm0, %v6749_v10, -inf }
0x1717   :  { %v3839_v34 = vsel %vm97_vm0, %v3824_v63, -inf }
0x1718   :  { %3840 = vmax.xlane.f32.xlu1 %v3839_v34 }
0x171c   :  { %3843 = vmax.xlane.f32.xlu1 %v3842_v4 }
0x1740   :  { %3960 = vxpose.xlu0.b32.start [1/2] (short) (narrow) %v3957_v8, 32 }
0x1744   :  { %3961 = vxpose.xlu0.b32.end [2/2] (short) (narrow) %v3956_v60, 32 }
0x17a0   :  { %v3838_v55 = vpop.xlane.xlu0 %3837 }
0x17a1   :  { %v3846_v31 = vsub.f32 %v6746_v21, %v3838_v55  ;;  %v3835_v9 = vpop.xlane.xlu1 %3834 }
0x17a2   :  { %v3845_v7 = vsub.f32 %v3814_v36, %v3835_v9 }
0x17a3   :  { %v3851_v59 = vmul.f32 1.442695, %v3846_v31 }
0x17a4   :  { %v3849_v2 = vmul.f32 1.442695, %v3845_v7 }
0x17a5   :  { %7279 = vpow2.f32 %v3851_v59  ;;  %v3841_v30 = vpop.xlane.xlu1 %3840 }
0x17a6   :  { %v3847_v56 = vsub.f32 %v3824_v63, %v3841_v30  ;;  %7281 = vpow2.f32 %v3849_v2 }
0x17a8   :  { %v3853_v11 = vmul.f32 1.442695, %v3847_v56 }
0x17a9   :  { %v3844_v42 = vpop.xlane.xlu1 %3843 }
0x17aa   :  { %v3848_v6 = vsub.f32 %v6749_v10, %v3844_v42  ;;  %7283 = vpow2.f32 %v3853_v11 }
0x17ac   :  { %v3855_v46 = vmul.f32 1.442695, %v3848_v6 }
0x17ae   :  { %7285 = vpow2.f32 %v3855_v46 }
0x17af   :  { %v7280_v13 = vpop.eup %7279 }
0x17b0   :  { %v3860_v57 = vsel %vm97_vm0, %v7280_v13, 0.0  ;;  %v7282_v38 = vpop.eup %7281 }
0x17b1   :  { %3861 = vadd.xlane.f32.xlu1 %v3860_v57  ;;  %v3857_v49 = vsel %vm97_vm0, %v7282_v38, 0.0 }
0x17b4   :  { %v7284_v52 = vpop.eup %7283 }
0x17b5   :  { %3858 = vadd.xlane.f32.xlu1 %v3857_v49  ;;  %v3863_v24 = vsel %vm97_vm0, %v7284_v52, 0.0 }
0x17b8   :  { %v7286_v14 = vpop.eup %7285 }
0x17b9   :  { %3864 = vadd.xlane.f32.xlu1 %v3863_v24  ;;  %v3866_v3 = vsel %vm97_vm0, %v7286_v14, 0.0 }
0x17bd   :  { %3867 = vadd.xlane.f32.xlu1 %v3866_v3 }
0x17c0   :  { %v3976_v53 = vpop.trf.xlu0 }
0x17c4   :  { %v3977_v26 = vpop.trf.xlu0 }
0x17c8   :  { %v3978_v1 = vpop.trf.xlu0 }
0x17cc   :  { %v3979_v12 = vpop.trf.xlu0 }
0x183e   :  { %v3862_v23 = vpop.xlane.xlu1 %3861 }
0x183f   :  { %7287 = vrcp.f32 %v3862_v23 }
0x1842   :  { %v3859_v37 = vpop.xlane.xlu1 %3858 }
0x1843   :  { %7289 = vrcp.f32 %v3859_v37 }
0x1846   :  { %v3865_v39 = vpop.xlane.xlu1 %3864 }
0x1847   :  { %7291 = vrcp.f32 %v3865_v39 }
0x1849   :  { %v7288_v16 = vpop.eup %7287 }
0x184a   :  { %v3868_v47 = vpop.xlane.xlu1 %3867  ;;  %v3874_v44 = vmul.f32 %v7288_v16, %v7280_v13 }
0x184b   :  { %7293 = vrcp.f32 %v3868_v47 }
0x184d   :  { %v7290_v48 = vpop.eup %7289 }
0x184e   :  { %v3873_v33 = vmul.f32 %v7290_v48, %v7282_v38  ;;  %v4140_v48 = vrot.slane %v8719_v17, 1 }
0x1850   :  { %v6851_v22 = vpack.c.bf16 %v3874_v44, %v3873_v33  ;;  %v9677_v44 = vld [vmem:[#allocation10_spill] sm:$0xff] }
0x1851   :  { %v7292_v58 = vpop.eup %7291 }
0x1852   :  { %6852 = vmatpush3.bf16.msra.mxu1 %v6851_v22  ;;  %v3875_v50 = vmul.f32 %v7292_v58, %v7284_v52 }
0x1853   :  { %6853 = vmatprep.subr.bf16.mxu1 %v9662_v35 }
0x1855   :  { %v7294_v61 = vpop.eup %7293 }
0x1856   :  { %v3876_v25 = vmul.f32 %v7294_v61, %v7286_v14 }
0x1858   :  { %v6854_v51 = vpack.c.bf16 %v3876_v25, %v3875_v50 }
0x185a   :  { %6855 = vmatpush3.bf16.msra.mxu1 %v6854_v51 }
0x185b   :  { %6858 = vmatprep.subr.msk.bf16.mxu1 %vm7679_vm13, %v8695_v20 }
0x185d   :  { %6759 = vmatmul.mubr.msk.f32.vlgmr.msra.gmra.mrb[52].mxu1 %vm97_vm0, %v8719_v17 }
0x185e   :  { %6861 = vmatpush3.bf16.msk.msra.mxu1 %vm7679_vm13, %v8695_v20  ;;  %6765 = vmatprep.mubr.msk.f32.mxu1 %vm9672_vm14, %v3976_v53  ;;  %vm9678_vm13 = vcmask 1040384  }
0x185f   :  { %vm9695_vm14 = vmmov %vm9678_vm13 }
0x1861   :  { %6766 = vmatmul.mubr.msk.f32.vlgmr.msra.gmra.mrb[54].mxu1 %vm9673_vm15, %v3977_v26  ;;  %vm9697_vm15 = vmmov %vm9689_vm6 }
0x1862   :  { %6768 = vmatprep.mubr.msk.f32.mxu1 %vm9674_vm12, %v3978_v1 }
0x1865   :  { %6769 = vmatmul.mubr.msk.f32.gmra.mrb[56].mxu1 %vm9675_vm8, %v3979_v12 }
0x1866   :  { %4607 = vmatprep.mubr.bf16.mxu1 %v9676_v18 }
0x1930   :  { %v8734_v40 = vpop.f32.mrb[52].mxu1 }
0x1931   :  { %v6760_v43 = vpop.f32.mrb[53].mxu1  ;;  %v3953_v22 = vrot.slane %v8734_v40, %v9677_v44 }
0x1933   :  { %v8755_v50 = vadd.f32 %v3953_v22, %v8552_v28 }
0x1934   :  { %v6767_v15 = vpop.f32.mrb[54].mxu1 }
0x1935   :  { %v4099_v54 = vsel %vm97_vm0, %v6767_v15, -inf  ;;  %v4077_v29 = vpop.f32.mrb[55].mxu1  ;;  %v4221_v62 = vsel %vm97_vm0, %v8755_v50, 0.0 }
0x1936   :  { %4100 = vmax.xlane.f32.xlu1 %v4099_v54  ;;  %v4096_v20 = vsel %vm97_vm0, %v4077_v29, -inf }
0x1938   :  { %v6770_v5 = vpop.f32.mrb[56].mxu1 }
0x1939   :  { %v4087_v0 = vpop.f32.mrb[57].mxu1  ;;  %v4105_v36 = vsel %vm97_vm0, %v6770_v5, -inf }
0x193a   :  { %4097 = vmax.xlane.f32.xlu1 %v4096_v20  ;;  %v4102_v21 = vsel %vm97_vm0, %v4087_v0, -inf }
0x193e   :  { %4103 = vmax.xlane.f32.xlu1 %v4102_v21 }
0x1942   :  { %4106 = vmax.xlane.f32.xlu1 %v4105_v36  ;;  %v7027_v36 = vld [vmem:[#allocation4 + $0x20] ss:$8 sps:$4 sm:$0xff]  }
0x19c3   :  { %v4101_v27 = vpop.xlane.xlu1 %4100 }
0x19c4   :  { %v4109_v45 = vsub.f32 %v6767_v15, %v4101_v27  ;;  %v7029_v27 = vld [vmem:[#allocation4 + $0x24] ss:$8 sps:$4 sm:$0xff]  }
0x19c5   :  { %4575 = vmatprep.subr.bf16.mxu1 %v7029_v27 }
0x19c6   :  { %v4114_v10 = vmul.f32 1.442695, %v4109_v45  ;;  %v7032_v45 = vld [vmem:[#allocation4 + $0x34] ss:$8 sps:$4 sm:$0xff]   ;;  %4576 = vmatpush1.bf16.msra.mxu1 %v7027_v36 }
0x19c7   :  { %v4098_v63 = vpop.xlane.xlu1 %4097  ;;  %4577 = vmatprep.subr.bf16.mxu1 %v7032_v45  ;;  %v8907_v36 = vld [vmem:[%s9595_s1 + $0xc5] sm:$0xff]  ;;  %v9681_v45 = vld [vmem:[#allocation13_spill] sm:$0xff] }
0x19c8   :  { %7295 = vpow2.f32 %v4114_v10  ;;  %v4108_v34 = vsub.f32 %v4077_v29, %v4098_v63  ;;  %v7030_v10 = vld [vmem:[#allocation4 + $0x30] ss:$8 sps:$4 sm:$0xff]  }
0x19c9   :  { %v7033_v63 = vld [vmem:[%s9600_s6 + $0x200] ss:$16 sps:$4 sm:$0xff]  }
0x19ca   :  { %v4112_v4 = vmul.f32 1.442695, %v4108_v34  ;;  %4578 = vmatpush1.bf16.msra.mxu1 %v7030_v10  ;;  %v7035_v34 = vld [vmem:[%s9600_s6 + $0x204] ss:$16 sps:$4 sm:$0xff]  }
0x19cb   :  { %v4104_v60 = vpop.xlane.xlu1 %4103 }
0x19cc   :  { %7297 = vpow2.f32 %v4112_v4  ;;  %v4110_v19 = vsub.f32 %v4087_v0, %v4104_v60  ;;  %v7038_v4 = vld [vmem:[%s9600_s6 + $0x20c] ss:$16 sps:$4 sm:$0xff]   ;;  %v7041_v60 = vld [vmem:[%s9600_s6 + $0x224] ss:$16 sps:$4 sm:$0xff]  }
0x19cd   :  { %5087 = vmatprep.subr.bf16.mxu1 %v7038_v4  ;;  %v9683_v4 = vld [vmem:[#allocation15_spill] sm:$0xff] }
0x19ce   :  { %v4116_v8 = vmul.f32 1.442695, %v4110_v19  ;;  %v7039_v19 = vld [vmem:[%s9600_s6 + $0x220] ss:$16 sps:$4 sm:$0xff]  }
0x19cf   :  { %v4107_v55 = vpop.xlane.xlu1 %4106 }
0x19d0   :  { %7299 = vpow2.f32 %v4116_v8  ;;  %v4111_v31 = vsub.f32 %v6770_v5, %v4107_v55  ;;  %v7047_v8 = vld [vmem:[%s9600_s6 + $0x244] ss:$16 sps:$4 sm:$0xff]   ;;  %v7045_v55 = vld [vmem:[%s9600_s6 + $0x240] ss:$16 sps:$4 sm:$0xff]  }
0x19d2   :  { %v7296_v9 = vpop.eup %7295  ;;  %v4118_v7 = vmul.f32 1.442695, %v4111_v31  ;;  %v7053_v31 = vld [vmem:[%s9600_s6 + $0x264] ss:$16 sps:$4 sm:$0xff]  }
0x19d3   :  { %v4123_v59 = vsel %vm97_vm0, %v7296_v9, 0.0 }
0x19d4   :  { %7301 = vpow2.f32 %v4118_v7  ;;  %4124 = vadd.xlane.f32.xlu1 %v4123_v59  ;;  %v7059_v7 = vld [vmem:[%s9600_s6 + $0x284] ss:$16 sps:$4 sm:$0xff]   ;;  %v7057_v59 = vld [vmem:[%s9600_s6 + $0x280] ss:$16 sps:$4 sm:$0xff]  }
0x19d6   :  { %v7298_v2 = vpop.eup %7297 }
0x19d7   :  { %v4120_v30 = vsel %vm97_vm0, %v7298_v2, 0.0 }
0x19d8   :  { %4121 = vadd.xlane.f32.xlu1 %v4120_v30  ;;  %v7063_v30 = vld [vmem:[%s9600_s6 + $0x2a0] ss:$16 sps:$4 sm:$0xff]  }
0x19da   :  { %v7300_v56 = vpop.eup %7299 }
0x19db   :  { %v4126_v11 = vsel %vm97_vm0, %v7300_v56, 0.0 }
0x19dc   :  { %4127 = vadd.xlane.f32.xlu1 %v4126_v11  ;;  %v7069_v11 = vld [vmem:[%s9600_s6 + $0x2c0] ss:$16 sps:$4 sm:$0xff]  }
0x19de   :  { %v7302_v42 = vpop.eup %7301 }
0x19df   :  { %v4129_v6 = vsel %vm97_vm0, %v7302_v42, 0.0 }
0x19e0   :  { %4130 = vadd.xlane.f32.xlu1 %v4129_v6  ;;  %v7075_v6 = vld [vmem:[%s9600_s6 + $0x2e0] ss:$16 sps:$4 sm:$0xff]  }
0x1a61   :  { %v4125_v46 = vpop.xlane.xlu1 %4124 }
0x1a62   :  { %7303 = vrcp.f32 %v4125_v46  ;;  %v7083_v46 = vld [vmem:[%s9600_s6 + $0x304] ss:$16 sps:$4 sm:$0xff]  }
0x1a65   :  { %v4122_v13 = vpop.xlane.xlu1 %4121 }
0x1a66   :  { %7305 = vrcp.f32 %v4122_v13  ;;  %v7081_v13 = vld [vmem:[%s9600_s6 + $0x300] ss:$16 sps:$4 sm:$0xff]  }
0x1a69   :  { %v4128_v57 = vpop.xlane.xlu1 %4127 }
0x1a6a   :  { %7307 = vrcp.f32 %v4128_v57  ;;  %v7089_v57 = vld [vmem:[%s9600_s6 + $0x324] ss:$16 sps:$4 sm:$0xff]  }
0x1a6c   :  { %v7304_v49 = vpop.eup %7303 }
0x1a6d   :  { %v4131_v38 = vpop.xlane.xlu1 %4130  ;;  %v4137_v14 = vmul.f32 %v7304_v49, %v7296_v9  ;;  %v7051_v9 = vld [vmem:[%s9600_s6 + $0x260] ss:$16 sps:$4 sm:$0xff]   ;;  %v7095_v49 = vld [vmem:[%s9600_s6 + $0x344] ss:$16 sps:$4 sm:$0xff]  }
0x1a6e   :  { %7309 = vrcp.f32 %v4131_v38  ;;  %v7087_v38 = vld [vmem:[%s9600_s6 + $0x320] ss:$16 sps:$4 sm:$0xff]  }
0x1a70   :  { %v7306_v52 = vpop.eup %7305 }
0x1a71   :  { %v4136_v24 = vmul.f32 %v7306_v52, %v7298_v2  ;;  %v7065_v2 = vld [vmem:[%s9600_s6 + $0x2a4] ss:$16 sps:$4 sm:$0xff]   ;;  %v7093_v52 = vld [vmem:[%s9600_s6 + $0x340] ss:$16 sps:$4 sm:$0xff]  }
0x1a73   :  { %v6863_v3 = vpack.c.bf16 %v4137_v14, %v4136_v24  ;;  %v7101_v24 = vld [vmem:[%s9600_s6 + $0x364] ss:$16 sps:$4 sm:$0xff]   ;;  %v7099_v14 = vld [vmem:[%s9600_s6 + $0x360] ss:$16 sps:$4 sm:$0xff]  }
0x1a74   :  { %v7308_v23 = vpop.eup %7307 }
0x1a75   :  { %6864 = vmatpush3.bf16.msra.mxu0 %v6863_v3  ;;  %v4138_v39 = vmul.f32 %v7308_v23, %v7300_v56  ;;  %v7071_v56 = vld [vmem:[%s9600_s6 + $0x2c4] ss:$16 sps:$4 sm:$0xff]   ;;  %v7105_v23 = vld [vmem:[%s9600_s6 + $0x380] ss:$16 sps:$4 sm:$0xff]  }
0x1a76   :  { %6865 = vmatprep.subr.bf16.mxu0 %v9662_v35  ;;  %v7107_v3 = vld [vmem:[%s9600_s6 + $0x384] ss:$16 sps:$4 sm:$0xff]  }
0x1a78   :  { %v7310_v37 = vpop.eup %7309 }
0x1a79   :  { %v4139_v47 = vmul.f32 %v7310_v37, %v7302_v42  ;;  %v7077_v42 = vld [vmem:[%s9600_s6 + $0x2e4] ss:$16 sps:$4 sm:$0xff]  }
0x1a7a   :  { %v7113_v37 = vld [vmem:[%s9600_s6 + $0x3a4] ss:$16 sps:$4 sm:$0xff]  }
0x1a7b   :  { %v6866_v16 = vpack.c.bf16 %v4139_v47, %v4138_v39  ;;  %v7111_v39 = vld [vmem:[%s9600_s6 + $0x3a0] ss:$16 sps:$4 sm:$0xff]  }
0x1a7d   :  { %6867 = vmatpush3.bf16.msra.mxu0 %v6866_v16 }
0x1a7e   :  { %5036 = vmatprep.subr.bf16.mxu0 %v7035_v34 }
0x1a80   :  { %6780 = vmatmul.mubr.msk.f32.vlgmr.msra.gmra.mrb[52].mxu0 %vm97_vm0, %v4140_v48 }
0x1a81   :  { %5037 = vmatpush1.bf16.msra.mxu0 %v7033_v63  ;;  %v9682_v63 = vld [vmem:[#allocation14_spill] sm:$0xff] }
0x1a82   :  { %5038 = vmatprep.subr.bf16.mxu0 %v7041_v60 }
0x1a85   :  { %5039 = vmatpush1.bf16.msra.mxu0 %v7039_v19  ;;  %v8919_v19 = vld [vmem:[%s9595_s1 + $0xcd] sm:$0xff] }
0x1a86   :  { %5040 = vmatprep.subr.bf16.mxu0 %v7047_v8 }
0x1a89   :  { %5041 = vmatpush1.bf16.msra.mxu0 %v7045_v55 }
0x1a8a   :  { %5042 = vmatprep.subr.bf16.mxu0 %v7053_v31 }
0x1a8d   :  { %5043 = vmatpush1.bf16.msra.mxu0 %v7051_v9 }
0x1a8e   :  { %5044 = vmatprep.subr.bf16.mxu0 %v7059_v7  ;;  %v8936_v7 = vld [vmem:[%s9595_s1 + $0xb5] sm:$0xff] }
0x1a91   :  { %5045 = vmatpush1.bf16.msra.mxu0 %v7057_v59  ;;  %v8941_v59 = vld [vmem:[%s9595_s1 + $0xd5] sm:$0xff] }
0x1a92   :  { %5046 = vmatprep.subr.bf16.mxu0 %v7065_v2 }
0x1a95   :  { %5047 = vmatpush1.bf16.msra.mxu0 %v7063_v30 }
0x1a96   :  { %5048 = vmatprep.subr.bf16.mxu0 %v7071_v56  ;;  %v9684_v56 = vld [vmem:[#allocation16_spill] sm:$0xff] }
0x1a99   :  { %5049 = vmatpush1.bf16.msra.mxu0 %v7069_v11 }
0x1a9a   :  { %5050 = vmatprep.subr.bf16.mxu0 %v7077_v42  ;;  %v9685_v42 = vld [vmem:[#allocation17_spill] sm:$0xff] }
0x1a9d   :  { %5051 = vmatpush1.bf16.msra.mxu0 %v7075_v6 }
0x1a9e   :  { %5052 = vmatprep.subr.bf16.mxu0 %v7083_v46  ;;  %v8958_v46 = vld [vmem:[%s9595_s1 + $0xdd] sm:$0xff] }
0x1aa1   :  { %5053 = vmatpush1.bf16.msra.mxu0 %v7081_v13  ;;  %v8963_v13 = vld [vmem:[%s9595_s1 + $0xf5] sm:$0xff] }
0x1aa2   :  { %5054 = vmatprep.subr.bf16.mxu0 %v7089_v57 }
0x1aa5   :  { %5055 = vmatpush1.bf16.msra.mxu0 %v7087_v38 }
0x1aa6   :  { %5056 = vmatprep.subr.bf16.mxu0 %v7095_v49 }
0x1aa9   :  { %5057 = vmatpush1.bf16.msra.mxu0 %v7093_v52 }
0x1aaa   :  { %5058 = vmatprep.subr.bf16.mxu0 %v7101_v24  ;;  %v8983_v24 = vld [vmem:[%s9595_s1 + $0xe5] sm:$0xff] }
0x1aad   :  { %5059 = vmatpush1.bf16.msra.mxu0 %v7099_v14 }
0x1aae   :  { %5060 = vmatprep.subr.bf16.mxu0 %v7107_v3 }
0x1ab1   :  { %5061 = vmatpush1.bf16.msra.mxu0 %v7105_v23 }
0x1ab2   :  { %5062 = vmatprep.subr.bf16.mxu0 %v7113_v37 }
0x1ab5   :  { %5063 = vmatpush1.bf16.msra.mxu0 %v7111_v39  ;;  %v8998_v39 = vld [vmem:[%s9595_s1 + $0xed] sm:$0xff] }
0x1b53   :  { %v4209_v33 = vpop.f32.mrb[52].mxu0 }
0x1b54   :  { %v4216_v53 = vrot.slane %v4209_v33, %v9677_v44  ;;  %v6781_v58 = vpop.f32.mrb[53].mxu0 }
0x1b56   :  { %v4217_v61 = vsel %vm9678_vm13, %v3953_v22, %v4216_v53  ;;  %v8760_v26 = vadd.f32 %v4216_v53, %v8562_v32 }
0x1b57   :  { %v8752_v35 = vadd.f32 %v4217_v61, %v8557_v41 }
0x1b58   :  { %v4227_v51 = vsel %vm104_vm1, %v8760_v26, 0.0 }
0x1b59   :  { %v4224_v25 = vsel %vm97_vm0, %v8752_v35, 0.0 }
0x1b5a   :  { %4225 = vadd.xlane.f32.xlu1 %v4224_v25  ;;  %v8874_v25 = vld [vmem:[%s9595_s1 + $0x91] ss:$0 sm:$0xff] }
0x1b5e   :  { %4222 = vadd.xlane.f32.xlu1 %v4221_v62 }
0x1b62   :  { %4228 = vadd.xlane.f32.xlu1 %v4227_v51 }
0x1be7   :  { %v4226_v41 = vpop.xlane.xlu1 %4225 }
0x1be8   :  { %v4231_v17 = vmul.f32 0.03125, %v4226_v41  ;;  %v8880_v41 = vld [vmem:[%s9595_s1 + $0x92] ss:$0 sm:$0xff] }
0x1bea   :  { %v8767_v28 = vsub.f32 %v8752_v35, %v4231_v17 }
0x1beb   :  { %v4223_v1 = vpop.xlane.xlu1 %4222 }
0x1bec   :  { %v4230_v12 = vmul.f32 0.03125, %v4223_v1  ;;  %v4237_v40 = vmul.f32 %v8767_v28, %v8767_v28 }
0x1bee   :  { %v8772_v32 = vsub.f32 %v8755_v50, %v4230_v12  ;;  %v4242_v43 = vsel %vm97_vm0, %v4237_v40, 0.0 }
0x1bef   :  { %4243 = vadd.xlane.f32.xlu1 %v4242_v43  ;;  %v4229_v15 = vpop.xlane.xlu1 %4228 }
0x1bf0   :  { %v4232_v54 = vmul.f32 0.03125, %v4229_v15  ;;  %v4236_v29 = vmul.f32 %v8772_v32, %v8772_v32 }
0x1bf2   :  { %v8778_v5 = vsub.f32 %v8760_v26, %v4232_v54  ;;  %v4239_v20 = vsel %vm97_vm0, %v4236_v29, 0.0  ;;  %v9679_v54 = vld [vmem:[#allocation12_spill] sm:$0xff] }
0x1bf3   :  { %4240 = vadd.xlane.f32.xlu0 %v4239_v20 }
0x1bf4   :  { %v4238_v0 = vmul.f32 %v8778_v5, %v8778_v5 }
0x1bf6   :  { %v4245_v21 = vsel %vm104_vm1, %v4238_v0, 0.0 }
0x1bf7   :  { %4246 = vadd.xlane.f32.xlu1 %v4245_v21  ;;  %v9680_v21 = vld [vmem:[#allocation11_spill] sm:$0xff] }
0x1c7c   :  { %v4244_v47 = vpop.xlane.xlu1 %4243 }
0x1c7d   :  { %v4249_v16 = vmul.f32 0.03125, %v4244_v47 }
0x1c7f   :  { %v4252_v48 = vadd.f32 1e-05, %v4249_v16 }
0x1c80   :  { %v4241_v33 = vpop.xlane.xlu0 %4240 }
0x1c81   :  { %7311 = vrsqrt.f32 %v4252_v48  ;;  %v4248_v22 = vmul.f32 0.03125, %v4241_v33 }
0x1c83   :  { %v4251_v53 = vadd.f32 1e-05, %v4248_v22 }
0x1c84   :  { %v4247_v58 = vpop.xlane.xlu1 %4246 }
0x1c85   :  { %7313 = vrsqrt.f32 %v4251_v53  ;;  %v4250_v51 = vmul.f32 0.03125, %v4247_v58 }
0x1c87   :  { %v4253_v43 = vadd.f32 1e-05, %v4250_v51 }
0x1c89   :  { %7315 = vrsqrt.f32 %v4253_v43 }
0x1c8b   :  { %v7312_v61 = vpop.eup %7311 }
0x1c8c   :  { %v4258_v62 = vmul.f32 %v7312_v61, %v8767_v28  ;;  %v8891_v28 = vld [vmem:[%s9595_s1 + $0xbd] sm:$0xff] }
0x1c8e   :  { %v4265_v17 = vmul.f32 %v8874_v25, %v4258_v62 }
0x1c8f   :  { %v7314_v1 = vpop.eup %7313 }
0x1c90   :  { %v8884_v12 = vadd.f32 %v8880_v41, %v4265_v17  ;;  %v4257_v40 = vmul.f32 %v7314_v1, %v8772_v32 }
0x1c92   :  { %v4264_v15 = vmul.f32 %v8874_v25, %v4257_v40  ;;  %v4406_v29 = vrot.slane %v8884_v12, %v9679_v54  ;;  %v8898_v0 = vrot.slane %v8884_v12, %v9677_v44  ;;  %v8902_v32 = vrot.slane %v8884_v12, %v9680_v21 }
0x1c93   :  { %v4421_v10 = vrot.slane %v8884_v12, %v9681_v45  ;;  %v4436_v34 = vrot.slane %v8884_v12, %v9682_v63  ;;  %v4451_v60 = vrot.slane %v8884_v12, %v9683_v4  ;;  %v4466_v37 = vrot.slane %v8884_v12, %v9684_v56 }
0x1c94   :  { %v4271_v20 = vadd.f32 %v8880_v41, %v4264_v15  ;;  %v4407_v27 = vmul.f32 %v4406_v29, %v8891_v28  ;;  %v8978_v52 = vmul.f32 %v4406_v29, %v8907_v36  ;;  %v4399_v33 = vmul.f32 %v8902_v32, %v8936_v7 }
0x1c95   :  { %v4422_v3 = vmul.f32 %v4421_v10, %v8907_v36  ;;  %v8991_v23 = vmul.f32 %v4421_v10, %v8919_v19  ;;  %v4437_v15 = vmul.f32 %v4436_v34, %v8919_v19  ;;  %v9024_v29 = vmul.f32 %v4436_v34, %v8941_v59 }
0x1c96   :  { %v8922_v8 = vrot.slane %v4271_v20, %v9677_v44  ;;  %v8925_v55 = vrot.slane %v4271_v20, %v9680_v21  ;;  %v8928_v31 = vrot.slane %v4271_v20, %v9679_v54  ;;  %v8931_v9 = vrot.slane %v4271_v20, %v9681_v45 }
0x1c97   :  { %v8944_v2 = vrot.slane %v4271_v20, %v9682_v63  ;;  %v8947_v30 = vrot.slane %v4271_v20, %v9683_v4  ;;  %v8950_v11 = vrot.slane %v4271_v20, %v9684_v56  ;;  %v8953_v6 = vrot.slane %v4271_v20, %v9685_v42  ;;  %v7316_v20 = vpop.eup %7315 }
0x1c98   :  { %v8967_v57 = vmul.f32 %v8925_v55, %v8907_v36  ;;  %v8971_v38 = vmul.f32 %v8928_v31, %v8919_v19  ;;  %v8975_v49 = vmul.f32 %v8931_v9, %v8941_v59  ;;  %v4279_v47 = vmul.f32 %v8922_v8, %v8891_v28 }
0x1c99   :  { %v8987_v14 = vmul.f32 %v8944_v2, %v8958_v46  ;;  %v9005_v48 = vmul.f32 %v8947_v30, %v8983_v24  ;;  %v9013_v58 = vmul.f32 %v8950_v11, %v8998_v39  ;;  %v9017_v61 = vmul.f32 %v8953_v6, %v8963_v13 }
0x1c9a   :  { %v4291_v16 = vrot.slane %v8967_v57, 1  ;;  %v9637_v22 = vrot.slane %v8971_v38, 2  ;;  %v9640_v53 = vrot.slane %v8975_v49, 3  ;;  %v4411_v17 = vrot.slane %v4407_v27, 1 }
0x1c9b   :  { %v4336_v51 = vrot.slane %v8987_v14, 4  ;;  %v9638_v1 = vrot.slane %v8978_v52, 1  ;;  %v4426_v40 = vrot.slane %v4422_v3, 2  ;;  %v9639_v43 = vrot.slane %v8991_v23, 2 }
0x1c9c   :  { %v4296_v62 = vadd.f32 %v4291_v16, %v4279_v47  ;;  %v4452_v27 = vmul.f32 %v4451_v60, %v8941_v59  ;;  %v9033_v4 = vmul.f32 %v4451_v60, %v8958_v46  ;;  %v4441_v34 = vrot.slane %v4437_v15, 3 }
0x1c9d   :  { %v4413_v63 = vsel %vm9686_vm10, %v4411_v17, %v9638_v1  ;;  %v4428_v57 = vsel %vm9687_vm5, %v4426_v40, %v9639_v43  ;;  %v4442_v3 = vrot.slane %v9024_v29, 3  ;;  %v4467_v17 = vmul.f32 %v4466_v37, %v8958_v46 }
0x1c9e   :  { %v4311_v10 = vadd.f32 %v9637_v22, %v4296_v62  ;;  %v4416_v56 = vadd.f32 %v4413_v63, %v4399_v33  ;;  %v4456_v62 = vrot.slane %v4452_v27, 4  ;;  %v4457_v22 = vrot.slane %v9033_v4, 4 }
0x1c9f   :  { %v4351_v1 = vrot.slane %v9005_v48, 5  ;;  %v9045_v33 = vmul.f32 %v4466_v37, %v8983_v24  ;;  %v4481_v40 = vrot.slane %v8884_v12, %v9685_v42  ;;  %v4471_v63 = vrot.slane %v4467_v17, 5 }
0x1ca0   :  { %v4326_v47 = vadd.f32 %v9640_v53, %v4311_v10  ;;  %v4431_v60 = vadd.f32 %v4428_v57, %v4416_v56  ;;  %v4443_v10 = vsel %vm9688_vm4, %v4441_v34, %v4442_v3  ;;  %v4259_v27 = vmul.f32 %v7316_v20, %v8778_v5 }
0x1ca1   :  { %v4472_v53 = vrot.slane %v9045_v33, 5  ;;  %v4482_v56 = vmul.f32 %v4481_v40, %v8983_v24  ;;  %v9058_v37 = vmul.f32 %v4481_v40, %v8998_v39  ;;  %v4458_v42 = vsel %vm445_vm7, %v4456_v62, %v4457_v22 }
0x1ca2   :  { %v4341_v15 = vadd.f32 %v4336_v51, %v4326_v47  ;;  %v4446_v43 = vadd.f32 %v4443_v10, %v4431_v60  ;;  %v4266_v57 = vmul.f32 %v8874_v25, %v4259_v27  ;;  %v4286_v5 = vmul.f32 %v8925_v55, %v8891_v28 }
0x1ca3   :  { %v4366_v20 = vrot.slane %v9013_v58, 6  ;;  %v4486_v47 = vrot.slane %v4482_v56, 6  ;;  %v4487_v17 = vrot.slane %v9058_v37, 6  ;;  %v4473_v60 = vsel %vm9689_vm6, %v4471_v63, %v4472_v53  ;;  %v7050_v37 = vld [vmem:[%s9600_s6 + $0x24c] ss:$16 sps:$4 sm:$0xff]  }
0x1ca4   :  { %v4356_v12 = vadd.f32 %v4351_v1, %v4341_v15  ;;  %v4461_v34 = vadd.f32 %v4458_v42, %v4446_v43  ;;  %v4273_v40 = vadd.f32 %v8880_v41, %v4266_v57  ;;  %v4290_v15 = vrot.slane %v4286_v5, 1 }
0x1ca5   :  { %v4301_v62 = vmul.f32 %v8928_v31, %v8907_v36  ;;  %v4278_v55 = vmul.f32 %v8922_v8, %v8936_v7  ;;  %v4316_v58 = vmul.f32 %v8931_v9, %v8919_v19  ;;  %v4331_v43 = vmul.f32 %v8944_v2, %v8941_v59  ;;  %v3020_v2 = vld [vmem:[%s9595_s1 + $0x105] sm:$0x1] }
0x1ca6   :  { %v4476_v25 = vadd.f32 %v4473_v60, %v4461_v34  ;;  %v4371_v10 = vadd.f32 %v4366_v20, %v4356_v12  ;;  %v4381_v27 = vrot.slane %v9017_v61, 7  ;;  %v4496_v63 = vrot.slane %v4273_v40, %v9677_v44 }
0x1ca7   :  { %v4292_v41 = vsel %vm9690_vm9, %v4290_v15, %v4291_v16  ;;  %v4488_v36 = vsel %vm229_vm3, %v4486_v47, %v4487_v17  ;;  %v4305_v56 = vrot.slane %v4301_v62, 2  ;;  %v4320_v8 = vrot.slane %v4316_v58, 3  ;;  %v3019_v62 = vld [vmem:[%s9595_s1 + $0xfd] sm:$0xff] }
0x1ca8   :  { %v4295_v31 = vadd.f32 %v4292_v41, %v4278_v55  ;;  %v4491_v7 = vadd.f32 %v4488_v36, %v4476_v25  ;;  %v4497_v19 = vmul.f32 %v4496_v63, %v8998_v39  ;;  %v4498_v9 = vmul.f32 %v4496_v63, %v8963_v13 }
0x1ca9   :  { %v4511_v59 = vrot.slane %v4273_v40, %v9680_v21  ;;  %v9691_v16 = vrot.slane %v8971_v38, 2  ;;  %v4335_v12 = vrot.slane %v4331_v43, 4  ;;  %v4346_v42 = vmul.f32 %v8947_v30, %v8958_v46 }
0x1caa   :  { %v4361_v57 = vmul.f32 %v8950_v11, %v8983_v24  ;;  %v4501_v5 = vrot.slane %v4497_v19, 7  ;;  %v4502_v34 = vrot.slane %v4498_v9, 7  ;;  %v4376_v47 = vmul.f32 %v8953_v6, %v8998_v39 }
0x1cab   :  { %v4307_v61 = vsel %vm9692_vm11, %v4305_v56, %v9691_v16  ;;  %v4386_v60 = vadd.f32 %v4381_v27, %v4371_v10  ;;  %v9693_v40 = vrot.slane %v8975_v49, 3  ;;  %v4350_v15 = vrot.slane %v4346_v42, 5  ;;  %v7056_v42 = vld [vmem:[%s9600_s6 + $0x26c] ss:$16 sps:$4 sm:$0xff]  }
0x1cac   :  { %v4310_v13 = vadd.f32 %v4307_v61, %v4295_v31  ;;  %v4392_v30 = vmul.f32 %v8898_v0, %v3020_v2  ;;  %v4503_v11 = vsel %vm9695_vm14, %v4501_v5, %v4502_v34  ;;  %v4400_v24 = vmul.f32 %v8902_v32, %v8891_v28  ;;  %v7062_v5 = vld [vmem:[%s9600_s6 + $0x28c] ss:$16 sps:$4 sm:$0xff]  }
0x1cad   :  { %v4322_v38 = vsel %vm9694_vm2, %v4320_v8, %v9693_v40  ;;  %v4506_v25 = vadd.f32 %v4503_v11, %v4491_v7  ;;  %v4512_v6 = vmul.f32 %v4511_v59, %v3019_v62  ;;  %v4337_v49 = vsel %vm445_vm7, %v4335_v12, %v4336_v51  ;;  %vm9699_vm7 = vmmov %vm9678_vm13  ;;  %v7072_v40 = vld [vmem:[%s9600_s6 + $0x2c8] ss:$16 sps:$4 sm:$0xff]   ;;  %v7092_v11 = vld [vmem:[%s9600_s6 + $0x32c] ss:$16 sps:$4 sm:$0xff]  }
0x1cae   :  { %v4325_v46 = vadd.f32 %v4322_v38, %v4310_v13  ;;  %v4365_v39 = vrot.slane %v4361_v57, 6  ;;  %v9696_v58 = vrot.slane %v8978_v52, 1  ;;  %v4380_v10 = vrot.slane %v4376_v47, 7  ;;  %v6104_v52 = vld [vmem:[%s9595_s1 + $0x93] ss:$0 sm:$0xff]  ;;  %vm9700_vm12 = vmmov %vm9699_vm7 }
0x1caf   :  { %v4514_v63 = vadd.f32 %v4512_v6, %v4506_v25  ;;  %v4352_v41 = vsel %vm9697_vm15, %v4350_v15, %v4351_v1  ;;  %v4394_v36 = vadd.f32 %v4392_v30, %v4386_v60  ;;  %v9698_v28 = vrot.slane %v8991_v23, 2  ;;  %v7054_v57 = vld [vmem:[%s9600_s6 + $0x268] ss:$16 sps:$4 sm:$0xff]   ;;  %v7068_v13 = vld [vmem:[%s9600_s6 + $0x2ac] ss:$16 sps:$4 sm:$0xff]  }
0x1cb0   :  { %v4340_v55 = vadd.f32 %v4337_v49, %v4325_v46  ;;  %v4417_v43 = vadd.f32 %v9696_v58, %v4400_v24  ;;  %v4367_v14 = vsel %vm229_vm3, %v4365_v39, %v4366_v20  ;;  %v4382_v48 = vsel %vm9699_vm7, %v4380_v10, %v4381_v27  ;;  %v7036_v27 = vld [vmem:[%s9600_s6 + $0x208] ss:$16 sps:$4 sm:$0xff]   ;;  %vm9701_vm3 = vmmov %vm9699_vm7  ;;  %v7074_v60 = vld [vmem:[%s9600_s6 + $0x2cc] ss:$16 sps:$4 sm:$0xff]  }
0x1cb1   :  { %v4518_v56 = vrot.slane %v4514_v63, 7  ;;  %v4391_v7 = vmul.f32 %v8898_v0, %v3019_v62  ;;  %v4513_v0 = vmul.f32 %v4511_v59, %v3020_v2  ;;  %v7048_v2 = vld [vmem:[%s9600_s6 + $0x248] ss:$16 sps:$4 sm:$0xff]   ;;  %v7080_v38 = vld [vmem:[%s9600_s6 + $0x2ec] ss:$16 sps:$4 sm:$0xff]  }
0x1cb2   :  { %v4355_v31 = vadd.f32 %v4352_v41, %v4340_v55  ;;  %v4432_v32 = vadd.f32 %v9698_v28, %v4417_v43  ;;  %v7066_v47 = vld [vmem:[%s9600_s6 + $0x2a8] ss:$16 sps:$4 sm:$0xff]   ;;  %v7086_v62 = vld [vmem:[%s9600_s6 + $0x30c] ss:$16 sps:$4 sm:$0xff]   ;;  %v7117_v10 = vld [vmem:[%s9600_s6 + $0x3c0] ss:$16 sps:$4 sm:$0xff]  }
0x1cb3   :  { %v4523_v1 = vsel %vm9700_vm12, %v4394_v36, %v4518_v56  ;;  %v7078_v15 = vld [vmem:[%s9600_s6 + $0x2e8] ss:$16 sps:$4 sm:$0xff]   ;;  %v7098_v24 = vld [vmem:[%s9600_s6 + $0x34c] ss:$16 sps:$4 sm:$0xff]   ;;  %v7119_v63 = vld [vmem:[%s9600_s6 + $0x3c4] ss:$16 sps:$4 sm:$0xff]  }
0x1cb4   :  { %v4370_v51 = vadd.f32 %v4367_v14, %v4355_v31  ;;  %v4447_v8 = vadd.f32 %v4442_v3, %v4432_v32  ;;  %v4529_v20 = vadd.f32 %v6104_v52, %v4523_v1  ;;  %v7084_v30 = vld [vmem:[%s9600_s6 + $0x308] ss:$16 sps:$4 sm:$0xff]   ;;  %v7104_v6 = vld [vmem:[%s9600_s6 + $0x36c] ss:$16 sps:$4 sm:$0xff]   ;;  %5064 = vmatprep.subr.bf16.mxu0 %v7119_v63  ;;  %v7123_v31 = vld [vmem:[%s9600_s6 + $0x3e0] ss:$16 sps:$4 sm:$0xff]  }
0x1cb5   :  { %v7090_v46 = vld [vmem:[%s9600_s6 + $0x328] ss:$16 sps:$4 sm:$0xff]   ;;  %v7110_v39 = vld [vmem:[%s9600_s6 + $0x38c] ss:$16 sps:$4 sm:$0xff]   ;;  %5065 = vmatpush1.bf16.msra.mxu0 %v7117_v10  ;;  %v7125_v28 = vld [vmem:[%s9600_s6 + $0x3e4] ss:$16 sps:$4 sm:$0xff]  }
0x1cb6   :  { %v4385_v19 = vadd.f32 %v4382_v48, %v4370_v51  ;;  %v4462_v23 = vadd.f32 %v4457_v22, %v4447_v8  ;;  %v7044_v22 = vld [vmem:[%s9600_s6 + $0x22c] ss:$16 sps:$4 sm:$0xff]   ;;  %v7096_v25 = vld [vmem:[%s9600_s6 + $0x348] ss:$16 sps:$4 sm:$0xff]   ;;  %5066 = vmatprep.subr.bf16.mxu0 %v7125_v28 }
0x1cb7   :  { %v7102_v49 = vld [vmem:[%s9600_s6 + $0x368] ss:$16 sps:$4 sm:$0xff]   ;;  %v7116_v58 = vld [vmem:[%s9600_s6 + $0x3ac] ss:$16 sps:$4 sm:$0xff]  }
0x1cb8   :  { %v4393_v9 = vadd.f32 %v4391_v7, %v4385_v19  ;;  %v4477_v29 = vadd.f32 %v4472_v53, %v4462_v23  ;;  %v7042_v53 = vld [vmem:[%s9600_s6 + $0x228] ss:$16 sps:$4 sm:$0xff]   ;;  %v7122_v36 = vld [vmem:[%s9600_s6 + $0x3cc] ss:$16 sps:$4 sm:$0xff]  }
0x1cb9   :  { %v7108_v55 = vld [vmem:[%s9600_s6 + $0x388] ss:$16 sps:$4 sm:$0xff]   ;;  %5067 = vmatpush1.bf16.msra.mxu0 %v7123_v31  ;;  %v3027_v14 = vld [vmem:[#allocation2 + $0x3] ss:$4 sm:$0x3] }
0x1cba   :  { %v4528_v3 = vadd.f32 %v6104_v52, %v4393_v9  ;;  %v4492_v16 = vadd.f32 %v4487_v17, %v4477_v29  ;;  %v7114_v43 = vld [vmem:[%s9600_s6 + $0x3a8] ss:$16 sps:$4 sm:$0xff]   ;;  %v4542_v51 = vrot.slane %v3027_v14, %v9677_v44 }
0x1cbb   :  { %v7120_v41 = vld [vmem:[%s9600_s6 + $0x3c8] ss:$16 sps:$4 sm:$0xff]  }
0x1cbc   :  { %v4531_v61 = vpack.c.bf16 %v4529_v20, %v4528_v3  ;;  %v4507_v12 = vadd.f32 %v4502_v34, %v4492_v16  ;;  %v7060_v34 = vld [vmem:[%s9600_s6 + $0x288] ss:$16 sps:$4 sm:$0xff]  }
0x1cbd   :  { %v7126_v32 = vld [vmem:[%s9600_s6 + $0x3e8] ss:$16 sps:$4 sm:$0xff]  }
0x1cbe   :  { %6109 = vmatmul.mubr.msk.bf16.vlgmr.msra.gmra.mrb[60].mxu1 %vm97_vm0, %v4531_v61  ;;  %v4515_v4 = vadd.f32 %v4513_v0, %v4507_v12  ;;  %v7157_v10 = vld [vmem:[%s9601_s7 + $0x178] sm:$0xff]   ;;  %v3025_v31 = vld [vmem:[#allocation2 + $0x2] ss:$4 sm:$0xf] }
0x1cbf   :  { %4617 = vmatprep.mubr.bf16.mxu1 %v9676_v18  ;;  %5088 = vmatpush1.bf16.msra.mxu1 %v7036_v27  ;;  %v7158_v63 = vld [vmem:[%s9601_s7 + $0x1f8] sm:$0xff]   ;;  %v9346_v28 = vrot.slane %v3025_v31, %v9677_v44 }
0x1cc0   :  { %v4519_v33 = vrot.slane %v4515_v4, 7  ;;  %5089 = vmatprep.subr.bf16.mxu1 %v7044_v22 }
0x1cc2   :  { %v4520_v17 = vsel %vm9701_vm3, %v4518_v56, %v4519_v33  ;;  %v7128_v56 = vld [vmem:[%s9600_s6 + $0x3ec] ss:$16 sps:$4 sm:$0xff]   ;;  %v7129_v33 = vld [vmem:[%s9601_s7 + $0x140] sm:$0xff]  }
0x1cc3   :  { %v4530_v59 = vadd.f32 %v6104_v52, %v4520_v17  ;;  %5090 = vmatpush1.bf16.msra.mxu1 %v7042_v53  ;;  %v4546_v52 = vrot.slane %v3027_v14, %v9680_v21  ;;  %v7131_v17 = vld [vmem:[%s9601_s7 + $0x100] sm:$0xff]   ;;  %6498 = vmatprep.subr.bf16.mxu0 %v7129_v33  ;;  %v9355_v14 = vrot.slane %v3025_v31, %v9681_v45 }
0x1cc4   :  { %5091 = vmatprep.subr.bf16.mxu1 %v7050_v37  ;;  %v7130_v37 = vld [vmem:[%s9601_s7 + $0x1c0] sm:$0xff]  }
0x1cc5   :  { %v4532_v18 = vpack.c.bf16 %v4530_v59, %v4530_v59  ;;  %v7132_v59 = vld [vmem:[%s9601_s7 + $0x180] sm:$0xff]  }
0x1cc7   :  { %6110 = vmatmul.mubr.msk.bf16.gmra.mrb[64].mxu1 %vm97_vm0, %v4532_v18  ;;  %v7134_v18 = vld [vmem:[%s9601_s7 + $0x1c8] sm:$0xff]  }
0x1cc8   :  { %5092 = vmatpush1.bf16.msra.mxu1 %v7048_v2  ;;  %v7133_v2 = vld [vmem:[%s9601_s7 + $0x148] sm:$0xff]  }
0x1cc9   :  { %5093 = vmatprep.subr.bf16.mxu1 %v7056_v42  ;;  %v7135_v42 = vld [vmem:[%s9601_s7 + $0x108] sm:$0xff]  }
0x1ccc   :  { %5094 = vmatpush1.bf16.msra.mxu1 %v7054_v57  ;;  %v7136_v57 = vld [vmem:[%s9601_s7 + $0x188] sm:$0xff]  }
0x1ccd   :  { %5095 = vmatprep.subr.bf16.mxu1 %v7062_v5  ;;  %v7137_v5 = vld [vmem:[%s9601_s7 + $0x150] sm:$0xff]  }
0x1cd0   :  { %5096 = vmatpush1.bf16.msra.mxu1 %v7060_v34  ;;  %v7138_v34 = vld [vmem:[%s9601_s7 + $0x1d0] sm:$0xff]  }
0x1cd1   :  { %5097 = vmatprep.subr.bf16.mxu1 %v7068_v13  ;;  %v7139_v13 = vld [vmem:[%s9601_s7 + $0x110] sm:$0xff]  }
0x1cd4   :  { %5098 = vmatpush1.bf16.msra.mxu1 %v7066_v47  ;;  %v7140_v47 = vld [vmem:[%s9601_s7 + $0x190] sm:$0xff]  }
0x1cd5   :  { %5099 = vmatprep.subr.bf16.mxu1 %v7074_v60  ;;  %v7141_v60 = vld [vmem:[%s9601_s7 + $0x158] sm:$0xff]  }
0x1cd8   :  { %5100 = vmatpush1.bf16.msra.mxu1 %v7072_v40  ;;  %v7142_v40 = vld [vmem:[%s9601_s7 + $0x1d8] sm:$0xff]  }
0x1cd9   :  { %5101 = vmatprep.subr.bf16.mxu1 %v7080_v38  ;;  %v7143_v38 = vld [vmem:[%s9601_s7 + $0x118] sm:$0xff]  }
0x1cdc   :  { %5102 = vmatpush1.bf16.msra.mxu1 %v7078_v15  ;;  %v7144_v15 = vld [vmem:[%s9601_s7 + $0x198] sm:$0xff]  }
0x1cdd   :  { %5103 = vmatprep.subr.bf16.mxu1 %v7086_v62  ;;  %v7145_v62 = vld [vmem:[%s9601_s7 + $0x160] sm:$0xff]  }
0x1ce0   :  { %5104 = vmatpush1.bf16.msra.mxu1 %v7084_v30  ;;  %v7146_v30 = vld [vmem:[%s9601_s7 + $0x1e0] sm:$0xff]  }
0x1ce1   :  { %5105 = vmatprep.subr.bf16.mxu1 %v7092_v11  ;;  %v7147_v11 = vld [vmem:[%s9601_s7 + $0x120] sm:$0xff]  }
0x1ce4   :  { %5106 = vmatpush1.bf16.msra.mxu1 %v7090_v46  ;;  %v7148_v46 = vld [vmem:[%s9601_s7 + $0x1a0] sm:$0xff]  }
0x1ce5   :  { %5107 = vmatprep.subr.bf16.mxu1 %v7098_v24  ;;  %v7149_v24 = vld [vmem:[%s9601_s7 + $0x168] sm:$0xff]  }
0x1ce8   :  { %5108 = vmatpush1.bf16.msra.mxu1 %v7096_v25  ;;  %v7150_v25 = vld [vmem:[%s9601_s7 + $0x1e8] sm:$0xff]  }
0x1ce9   :  { %5109 = vmatprep.subr.bf16.mxu1 %v7104_v6  ;;  %v7151_v6 = vld [vmem:[%s9601_s7 + $0x128] sm:$0xff]  }
0x1cec   :  { %5110 = vmatpush1.bf16.msra.mxu1 %v7102_v49  ;;  %v7152_v49 = vld [vmem:[%s9601_s7 + $0x1a8] sm:$0xff]  }
0x1ced   :  { %5111 = vmatprep.subr.bf16.mxu1 %v7110_v39  ;;  %v7153_v39 = vld [vmem:[%s9601_s7 + $0x170] sm:$0xff]  }
0x1cf0   :  { %5112 = vmatpush1.bf16.msra.mxu1 %v7108_v55  ;;  %v7154_v55 = vld [vmem:[%s9601_s7 + $0x1f0] sm:$0xff]  }
0x1cf1   :  { %5113 = vmatprep.subr.bf16.mxu1 %v7116_v58  ;;  %v7155_v58 = vld [vmem:[%s9601_s7 + $0x130] sm:$0xff]  }
0x1cf4   :  { %5114 = vmatpush1.bf16.msra.mxu1 %v7114_v43  ;;  %v7156_v43 = vld [vmem:[%s9601_s7 + $0x1b0] sm:$0xff]  }
0x1cf5   :  { %5115 = vmatprep.subr.bf16.mxu1 %v7122_v36  ;;  %v7160_v36 = vld [vmem:[%s9601_s7 + $0x1b8] sm:$0xff]  }
0x1cf8   :  { %5116 = vmatpush1.bf16.msra.mxu1 %v7120_v41  ;;  %v7159_v41 = vld [vmem:[%s9601_s7 + $0x138] sm:$0xff]  }
0x1cf9   :  { %5117 = vmatprep.subr.bf16.mxu1 %v7128_v56  ;;  %v9352_v56 = vrot.slane %v3025_v31, %v9680_v21 }
0x1cfc   :  { %5118 = vmatpush1.bf16.msra.mxu1 %v7126_v32  ;;  %v9349_v32 = vrot.slane %v3025_v31, %v9679_v54 }
0x1cfd   :  { %6526 = vmatprep.subr.bf16.mxu1 %v7130_v37 }
0x1d91   :  { %v4609_v8 = vpop.f32.mrb[60].mxu1 }
0x1d92   :  { %v4611_v48 = vpop.f32.mrb[61].mxu1  ;;  %v4610_v7 = vadd.f32 %v4609_v8, %v4542_v51 }
0x1d93   :  { %v4613_v1 = vpop.f32.mrb[62].mxu1  ;;  %v4612_v9 = vadd.f32 %v4611_v48, %v4546_v52 }
0x1d94   :  { %v4614_v19 = vadd.f32 %v4613_v1, %v4542_v51  ;;  %v4615_v23 = vpop.f32.mrb[63].mxu1 }
0x1d95   :  { %v4616_v20 = vadd.f32 %v4615_v23, %v4546_v52 }
0x1d96   :  { %v4626_v29 = vpack.c.bf16 %v4614_v19, %v4610_v7 }
0x1d97   :  { %v4627_v3 = vpack.c.bf16 %v4616_v20, %v4612_v9 }
0x1d99   :  { %5068 = vmatprep.mubr.bf16.mxu0 %v4627_v3  ;;  %5119 = vmatprep.mubr.bf16.mxu1 %v4627_v3 }
0x1d9a   :  { %v4619_v16 = vpop.f32.mrb[64].mxu1  ;;  %5069 = vmatmul.mubr.bf16.vlgmr.msra.gmra.mrb[56].mxu0 %v4626_v29  ;;  %5120 = vmatmul.mubr.bf16.vlgmr.msra.gmra.mrb[68].mxu1 %v4626_v29 }
0x1d9b   :  { %v4621_v27 = vpop.f32.mrb[65].mxu1  ;;  %v4620_v61 = vadd.f32 %v4619_v16, %v4542_v51  ;;  %6499 = vmatpush3.bf16.msra.mxu0 %v7131_v17  ;;  %6527 = vmatpush3.bf16.msra.mxu1 %v7132_v59 }
0x1d9c   :  { %v4622_v12 = vadd.f32 %v4621_v27, %v4546_v52  ;;  %v4623_v0 = vpop.f32.mrb[66].mxu1  ;;  %6500 = vmatprep.subr.bf16.mxu0 %v7133_v2  ;;  %6528 = vmatprep.subr.bf16.mxu1 %v7134_v18 }
0x1d9d   :  { %v4624_v22 = vpop.f32.mrb[67].mxu1  ;;  %v4628_v53 = vpack.c.bf16 %v4620_v61, %v4620_v61 }
0x1d9e   :  { %v4629_v4 = vpack.c.bf16 %v4622_v12, %v4622_v12 }
0x1d9f   :  { %6501 = vmatpush3.bf16.msra.mxu0 %v7135_v42  ;;  %6529 = vmatpush3.bf16.msra.mxu1 %v7136_v57 }
0x1da0   :  { %5078 = vmatprep.mubr.bf16.mxu0 %v4629_v4  ;;  %5129 = vmatprep.mubr.bf16.mxu1 %v4629_v4 }
0x1da1   :  { %6502 = vmatprep.subr.bf16.mxu0 %v7137_v5  ;;  %6530 = vmatprep.subr.bf16.mxu1 %v7138_v34 }
0x1da2   :  { %5079 = vmatmul.mubr.bf16.gmra.mrb[60].mxu0 %v4628_v53  ;;  %5130 = vmatmul.mubr.bf16.gmra.mrb[72].mxu1 %v4628_v53 }
0x1da3   :  { %6503 = vmatpush3.bf16.msra.mxu0 %v7139_v13  ;;  %6531 = vmatpush3.bf16.msra.mxu1 %v7140_v47 }
0x1da4   :  { %6504 = vmatprep.subr.bf16.mxu0 %v7141_v60  ;;  %6532 = vmatprep.subr.bf16.mxu1 %v7142_v40 }
0x1da7   :  { %6505 = vmatpush3.bf16.msra.mxu0 %v7143_v38  ;;  %6533 = vmatpush3.bf16.msra.mxu1 %v7144_v15 }
0x1da8   :  { %6506 = vmatprep.subr.bf16.mxu0 %v7145_v62  ;;  %6534 = vmatprep.subr.bf16.mxu1 %v7146_v30 }
0x1dab   :  { %6507 = vmatpush3.bf16.msra.mxu0 %v7147_v11  ;;  %6535 = vmatpush3.bf16.msra.mxu1 %v7148_v46 }
0x1dac   :  { %6508 = vmatprep.subr.bf16.mxu0 %v7149_v24  ;;  %6536 = vmatprep.subr.bf16.mxu1 %v7150_v25 }
0x1daf   :  { %6509 = vmatpush3.bf16.msra.mxu0 %v7151_v6  ;;  %6537 = vmatpush3.bf16.msra.mxu1 %v7152_v49 }
0x1db0   :  { %6510 = vmatprep.subr.bf16.mxu0 %v7153_v39  ;;  %6538 = vmatprep.subr.bf16.mxu1 %v7154_v55 }
0x1db3   :  { %6511 = vmatpush3.bf16.msra.mxu0 %v7155_v58  ;;  %6539 = vmatpush3.bf16.msra.mxu1 %v7156_v43 }
0x1db4   :  { %6512 = vmatprep.subr.bf16.mxu0 %v7157_v10  ;;  %6540 = vmatprep.subr.bf16.mxu1 %v7158_v63 }
0x1db7   :  { %6513 = vmatpush3.bf16.msra.mxu0 %v7159_v41  ;;  %6541 = vmatpush3.bf16.msra.mxu1 %v7160_v36 }
0x1e6d   :  { %v5070_v51 = vpop.f32.mrb[56].mxu0  ;;  %v5121_v8 = vpop.f32.mrb[68].mxu1 }
0x1e6e   :  { %v5071_v52 = vadd.f32 %v5070_v51, %v9346_v28  ;;  %v9359_v48 = vadd.f32 %v5121_v8, %v9349_v32  ;;  %v5072_v1 = vpop.f32.mrb[57].mxu0  ;;  %v5123_v7 = vpop.f32.mrb[69].mxu1 }
0x1e6f   :  { %v5073_v44 = vadd.f32 %v5072_v1, %v9352_v56  ;;  %v9363_v54 = vadd.f32 %v5123_v7, %v9355_v14  ;;  %v5074_v19 = vpop.f32.mrb[58].mxu0  ;;  %v5125_v21 = vpop.f32.mrb[70].mxu1 }
0x1e70   :  { %v9365_v23 = vmul.f32 0.70710677, %v5071_v52  ;;  %v9368_v45 = vmul.f32 0.70710677, %v9359_v48  ;;  %v5076_v33 = vpop.f32.mrb[59].mxu0  ;;  %v5127_v37 = vpop.f32.mrb[71].mxu1  ;;  %v5075_v18 = vadd.f32 %v5074_v19, %v9346_v28  ;;  %v9389_v5 = vadd.f32 %v5125_v21, %v9349_v32 }
0x1e71   :  { %v9370_v9 = vmul.f32 0.70710677, %v5073_v44  ;;  %v9373_v20 = vmul.f32 0.70710677, %v9363_v54  ;;  %v9394_v40 = vadd.f32 %v5076_v33, %v9352_v56  ;;  %v9401_v25 = vadd.f32 %v5127_v37, %v9355_v14 }
0x1e72   :  { %v5162_v29 = vand.u32 2147483647, %v9365_v23  ;;  %v5164_v3 = vand.u32 2147483647, %v9368_v45  ;;  %v9391_v60 = vmul.f32 0.70710677, %v5075_v18 }
0x1e73   :  { %v5163_v16 = vand.u32 2147483647, %v9370_v9  ;;  %v5165_v27 = vand.u32 2147483647, %v9373_v20  ;;  %v9397_v11 = vmul.f32 0.70710677, %v9389_v5 }
0x1e74   :  { %v5174_v61 = vmul.f32 0.3275911, %v5162_v29  ;;  %v5176_v12 = vmul.f32 0.3275911, %v5164_v3  ;;  %v5330_v62 = vsub.f32 0.0, %v5162_v29  ;;  %v5332_v30 = vsub.f32 0.0, %v5164_v3 }
0x1e75   :  { %v5175_v0 = vmul.f32 0.3275911, %v5163_v16  ;;  %v5177_v53 = vmul.f32 0.3275911, %v5165_v27  ;;  %v9379_v17 = vpop.f32.mrb[60].mxu0  ;;  %v9381_v59 = vpop.f32.mrb[72].mxu1 }
0x1e76   :  { %v5186_v22 = vadd.f32 1.0, %v5174_v61  ;;  %v5188_v4 = vadd.f32 1.0, %v5176_v12  ;;  %v9384_v42 = vpop.f32.mrb[61].mxu0  ;;  %v9386_v57 = vpop.f32.mrb[73].mxu1  ;;  %v5331_v46 = vsub.f32 0.0, %v5163_v16  ;;  %v5333_v6 = vsub.f32 0.0, %v5165_v27 }
0x1e77   :  { %v5187_v2 = vadd.f32 1.0, %v5175_v0  ;;  %v5084_v34 = vpop.f32.mrb[62].mxu0  ;;  %v5135_v13 = vpop.f32.mrb[74].mxu1  ;;  %v5189_v47 = vadd.f32 1.0, %v5177_v53  ;;  %v5166_v24 = vand.u32 2147483647, %v9391_v60  ;;  %v5342_v43 = vmul.f32 %v5330_v62, %v5162_v29 }
0x1e78   :  { %7317 = vrcp.f32 %v5186_v22  ;;  %v5085_v38 = vpop.f32.mrb[63].mxu0  ;;  %v5136_v15 = vpop.f32.mrb[75].mxu1  ;;  %v5168_v49 = vand.u32 2147483647, %v9397_v11  ;;  %v9405_v39 = vmul.f32 0.70710677, %v9394_v40  ;;  %v5344_v10 = vmul.f32 %v5332_v30, %v5164_v3 }
0x1e79   :  { %7319 = vrcp.f32 %v5188_v4  ;;  %v9407_v55 = vmul.f32 0.5, %v5071_v52  ;;  %v5178_v58 = vmul.f32 0.3275911, %v5166_v24  ;;  %v5343_v36 = vmul.f32 %v5331_v46, %v5163_v16 }
0x1e7a   :  { %7321 = vrcp.f32 %v5187_v2  ;;  %v5180_v63 = vmul.f32 0.3275911, %v5168_v49  ;;  %v5167_v41 = vand.u32 2147483647, %v9405_v39  ;;  %v5334_v51 = vsub.f32 0.0, %v5166_v24 }
0x1e7b   :  { %7323 = vrcp.f32 %v5189_v47  ;;  %v5190_v31 = vadd.f32 1.0, %v5178_v58  ;;  %v9411_v8 = vmul.f32 0.70710677, %v9401_v25  ;;  %v5345_v1 = vmul.f32 %v5333_v6, %v5165_v27 }
0x1e7c   :  { %v5192_v7 = vadd.f32 1.0, %v5180_v63  ;;  %v5336_v19 = vsub.f32 0.0, %v5168_v49  ;;  %v5179_v21 = vmul.f32 0.3275911, %v5167_v41  ;;  %v9416_v52 = vmul.f32 0.5, %v9359_v48 }
0x1e7d   :  { %v9418_v29 = vmul.f32 0.5, %v5073_v44  ;;  %7325 = vrcp.f32 %v5190_v31  ;;  %v5169_v3 = vand.u32 2147483647, %v9411_v8  ;;  %v5354_v0 = vmul.f32 1.442695, %v5342_v43 }
0x1e7e   :  { %7327 = vrcp.f32 %v5192_v7  ;;  %v5191_v27 = vadd.f32 1.0, %v5179_v21  ;;  %v5358_v4 = vmul.f32 1.442695, %v5344_v10  ;;  %v5346_v53 = vmul.f32 %v5334_v51, %v5166_v24 }
0x1e7f   :  { %v5181_v33 = vmul.f32 0.3275911, %v5169_v3  ;;  %v5356_v48 = vmul.f32 1.442695, %v5343_v36  ;;  %v5360_v2 = vmul.f32 1.442695, %v5345_v1  ;;  %v5348_v44 = vmul.f32 %v5336_v19, %v5168_v49 }
0x1e80   :  { %7329 = vrcp.f32 %v5191_v27  ;;  %v9429_v38 = vadd.f32 %v9379_v17, %v9346_v28  ;;  %v9433_v30 = vmul.f32 0.5, %v5075_v18  ;;  %v5362_v6 = vmul.f32 1.442695, %v5346_v53 }
0x1e81   :  { %v5193_v47 = vadd.f32 1.0, %v5181_v33  ;;  %7331 = vpow2.f32 %v5354_v0  ;;  %v5335_v49 = vsub.f32 0.0, %v5167_v41  ;;  %v5366_v17 = vmul.f32 1.442695, %v5348_v44 }
0x1e82   :  { %v9413_v61 = vpop.eup %7317  ;;  %7333 = vpow2.f32 %v5358_v4  ;;  %v9440_v63 = vmul.f32 0.70710677, %v9429_v38  ;;  %v5337_v19 = vsub.f32 0.0, %v5169_v3  ;;  %vm5402_vm8 = vcmp.ge.f32.partialorder %v9365_v23, 0.0 }
0x1e83   :  { %v9421_v16 = vpop.eup %7319  ;;  %v5222_v12 = vmul.f32 1.0614054, %v9413_v61  ;;  %7335 = vrcp.f32 %v5193_v47  ;;  %v5347_v7 = vmul.f32 %v5335_v49, %v5167_v41  ;;  %vm5404_vm13 = vcmp.ge.f32.partialorder %v9368_v45, 0.0 }
0x1e84   :  { %v5224_v22 = vmul.f32 1.0614054, %v9421_v16  ;;  %v9425_v34 = vpop.eup %7321  ;;  %7337 = vpow2.f32 %v5356_v48  ;;  %v9453_v33 = vand.u32 2147483647, %v9440_v63  ;;  %vm5403_vm10 = vcmp.ge.f32.partialorder %v9370_v9, 0.0 }
0x1e85   :  { %v5234_v37 = vadd.f32 -1.4531521, %v5222_v12  ;;  %v5223_v62 = vmul.f32 1.0614054, %v9425_v34  ;;  %v9435_v46 = vpop.eup %7323  ;;  %7339 = vpow2.f32 %v5360_v2  ;;  %vm5406_vm5 = vcmp.ge.f32.partialorder %v9391_v60, 0.0 }
0x1e86   :  { %v5236_v13 = vadd.f32 -1.4531521, %v5224_v22  ;;  %v5225_v10 = vmul.f32 1.0614054, %v9435_v46  ;;  %7341 = vpow2.f32 %v5362_v6  ;;  %vm5408_vm4 = vcmp.ge.f32.partialorder %v9397_v11, 0.0 }
0x1e87   :  { %v5246_v15 = vmul.f32 %v9413_v61, %v5234_v37  ;;  %v5235_v43 = vadd.f32 -1.4531521, %v5223_v62  ;;  %v9444_v51 = vpop.eup %7325  ;;  %7343 = vpow2.f32 %v5366_v17  ;;  %v5349_v62 = vmul.f32 %v5337_v19, %v5169_v3 }
0x1e88   :  { %v5248_v24 = vmul.f32 %v9421_v16, %v5236_v13  ;;  %v5237_v31 = vadd.f32 -1.4531521, %v5225_v10  ;;  %v9447_v21 = vpop.eup %7327  ;;  %v5226_v22 = vmul.f32 1.0614054, %v9444_v51  ;;  %vm5407_vm6 = vcmp.ge.f32.partialorder %v9405_v39, 0.0 }
0x1e89   :  { %v5258_v58 = vadd.f32 1.4214138, %v5246_v15  ;;  %v5247_v36 = vmul.f32 %v9425_v34, %v5235_v43  ;;  %v5228_v53 = vmul.f32 1.0614054, %v9447_v21  ;;  %v5364_v15 = vmul.f32 1.442695, %v5347_v7 }
0x1e8a   :  { %v5260_v28 = vadd.f32 1.4214138, %v5248_v24  ;;  %v5249_v27 = vmul.f32 %v9435_v46, %v5237_v31  ;;  %v5238_v2 = vadd.f32 -1.4531521, %v5226_v22  ;;  %v9457_v44 = vpop.eup %7329  ;;  %vm5405_vm9 = vcmp.ge.f32.partialorder %v9373_v20, 0.0 }
0x1e8b   :  { %v5270_v18 = vmul.f32 %v9413_v61, %v5258_v58  ;;  %v5259_v0 = vadd.f32 1.4214138, %v5247_v36  ;;  %v5240_v47 = vadd.f32 -1.4531521, %v5228_v53  ;;  %v7332_v24 = vpop.eup %7331  ;;  %v5182_v36 = vmul.f32 0.3275911, %v9453_v33 }
0x1e8c   :  { %v5272_v1 = vmul.f32 %v9421_v16, %v5260_v28  ;;  %v5261_v48 = vadd.f32 1.4214138, %v5249_v27  ;;  %v5250_v43 = vmul.f32 %v9444_v51, %v5238_v2  ;;  %v7334_v10 = vpop.eup %7333  ;;  %7345 = vpow2.f32 %v5364_v15 }
0x1e8d   :  { %v5282_v12 = vadd.f32 -0.28449672, %v5270_v18  ;;  %v5271_v41 = vmul.f32 %v9425_v34, %v5259_v0  ;;  %v5252_v17 = vmul.f32 %v9447_v21, %v5240_v47  ;;  %v5227_v18 = vmul.f32 1.0614054, %v9457_v44  ;;  %v9465_v31 = vpop.eup %7335 }
0x1e8e   :  { %v5284_v4 = vadd.f32 -0.28449672, %v5272_v1  ;;  %v5273_v58 = vmul.f32 %v9435_v46, %v5261_v48  ;;  %v5262_v19 = vadd.f32 1.4214138, %v5250_v43  ;;  %vm5409_vm11 = vcmp.ge.f32.partialorder %v9411_v8, 0.0 }
0x1e8f   :  { %v5294_v37 = vmul.f32 %v9413_v61, %v5282_v12  ;;  %v5283_v49 = vadd.f32 -0.28449672, %v5271_v41  ;;  %v7338_v12 = vpop.eup %7337  ;;  %v5264_v27 = vadd.f32 1.4214138, %v5252_v17  ;;  %v5239_v22 = vadd.f32 -1.4531521, %v5227_v18 }
0x1e90   :  { %v5296_v13 = vmul.f32 %v9421_v16, %v5284_v4  ;;  %v5285_v7 = vadd.f32 -0.28449672, %v5273_v58  ;;  %v5229_v4 = vmul.f32 1.0614054, %v9465_v31  ;;  %v7340_v53 = vpop.eup %7339  ;;  %vm5410_vm2 = vcmp.ge.f32.partialorder %v9440_v63, 0.0 }
0x1e91   :  { %v5306_v6 = vadd.f32 0.2548296, %v5294_v37  ;;  %v5295_v3 = vmul.f32 %v9425_v34, %v5283_v49  ;;  %v7342_v2 = vpop.eup %7341  ;;  %v5276_v47 = vmul.f32 %v9447_v21, %v5264_v27 }
0x1e92   :  { %v5308_v28 = vadd.f32 0.2548296, %v5296_v13  ;;  %v5297_v48 = vmul.f32 %v9435_v46, %v5285_v7  ;;  %v5241_v49 = vadd.f32 -1.4531521, %v5229_v4  ;;  %v7344_v17 = vpop.eup %7343 }
0x1e93   :  { %v5318_v1 = vmul.f32 %v9413_v61, %v5306_v6  ;;  %v5307_v41 = vadd.f32 0.2548296, %v5295_v3  ;;  %v5274_v61 = vmul.f32 %v9444_v51, %v5262_v19  ;;  %v5251_v6 = vmul.f32 %v9457_v44, %v5239_v22 }
0x1e94   :  { %v5320_v0 = vmul.f32 %v9421_v16, %v5308_v28  ;;  %v5309_v43 = vadd.f32 0.2548296, %v5297_v48  ;;  %v5368_v22 = vmul.f32 1.442695, %v5349_v62  ;;  %v5194_v48 = vadd.f32 1.0, %v5182_v36 }
0x1e95   :  { %v5378_v37 = vmul.f32 %v7332_v24, %v5318_v1  ;;  %v5319_v16 = vmul.f32 %v9425_v34, %v5307_v41  ;;  %v5286_v28 = vadd.f32 -0.28449672, %v5274_v61  ;;  %v5288_v24 = vadd.f32 -0.28449672, %v5276_v47 }
0x1e96   :  { %v5380_v13 = vmul.f32 %v7334_v10, %v5320_v0  ;;  %v5263_v18 = vadd.f32 1.4214138, %v5251_v6  ;;  %v5253_v1 = vmul.f32 %v9465_v31, %v5241_v49  ;;  %v5321_v4 = vmul.f32 %v9435_v46, %v5309_v43 }
0x1e97   :  { %v5390_v58 = vsub.f32 1.0, %v5378_v37  ;;  %v5379_v7 = vmul.f32 %v7338_v12, %v5319_v16  ;;  %v5298_v19 = vmul.f32 %v9444_v51, %v5286_v28  ;;  %v5300_v0 = vmul.f32 %v9447_v21, %v5288_v24  ;;  %v7346_v24 = vpop.eup %7345 }
0x1e98   :  { %v5392_v10 = vsub.f32 1.0, %v5380_v13  ;;  %v5275_v27 = vmul.f32 %v9457_v44, %v5263_v18  ;;  %v5265_v34 = vadd.f32 1.4214138, %v5253_v1  ;;  %v5144_v41 = vmul.f32 0.5, %v9389_v5 }
0x1e99   :  { %v5414_v3 = vsub.f32 0.0, %v5390_v58  ;;  %v5310_v37 = vadd.f32 0.2548296, %v5298_v19  ;;  %v5312_v15 = vadd.f32 0.2548296, %v5300_v0  ;;  %v9488_v61 = vadd.f32 %v9381_v59, %v9349_v32 }
0x1e9a   :  { %v5287_v12 = vadd.f32 -0.28449672, %v5275_v27  ;;  %v5416_v62 = vsub.f32 0.0, %v5392_v10  ;;  %v5391_v47 = vsub.f32 1.0, %v5379_v7  ;;  %v5277_v6 = vmul.f32 %v9465_v31, %v5265_v34 }
0x1e9b   :  { %v5426_v13 = vsel %vm5402_vm8, %v5390_v58, %v5414_v3  ;;  %v5322_v46 = vmul.f32 %v9444_v51, %v5310_v37  ;;  %v5324_v5 = vmul.f32 %v9447_v21, %v5312_v15  ;;  %7347 = vpow2.f32 %v5368_v22 }
0x1e9c   :  { %v5299_v36 = vmul.f32 %v9457_v44, %v5287_v12  ;;  %v5381_v49 = vmul.f32 %v7340_v53, %v5321_v4  ;;  %7349 = vrcp.f32 %v5194_v48  ;;  %v5438_v32 = vadd.f32 1.0, %v5426_v13 }
0x1e9d   :  { %v5382_v16 = vmul.f32 %v7342_v2, %v5322_v46  ;;  %v5384_v59 = vmul.f32 %v7344_v17, %v5324_v5  ;;  %v5289_v58 = vadd.f32 -0.28449672, %v5277_v6  ;;  %v5428_v43 = vsel %vm5404_vm13, %v5392_v10, %v5416_v62 }
0x1e9e   :  { %v5311_v23 = vadd.f32 0.2548296, %v5299_v36  ;;  %v5415_v51 = vsub.f32 0.0, %v5391_v47  ;;  %v9501_v21 = vmul.f32 0.70710677, %v9488_v61  ;;  %v5338_v17 = vsub.f32 0.0, %v9453_v33 }
0x1e9f   :  { %v5394_v28 = vsub.f32 1.0, %v5382_v16  ;;  %v5396_v53 = vsub.f32 1.0, %v5384_v59  ;;  %v9508_v18 = vadd.f32 %v9384_v42, %v9352_v56  ;;  %v5393_v45 = vsub.f32 1.0, %v5381_v49 }
0x1ea0   :  { %v5323_v2 = vmul.f32 %v9457_v44, %v5311_v23  ;;  %v5301_v3 = vmul.f32 %v9465_v31, %v5289_v58  ;;  %v9512_v10 = vand.u32 2147483647, %v9501_v21  ;;  %v5450_v7 = vmul.f32 %v5438_v32, %v9407_v55 }
0x1ea1   :  { %v5418_v1 = vsub.f32 0.0, %v5394_v28  ;;  %v5440_v19 = vadd.f32 1.0, %v5428_v43  ;;  %v5420_v0 = vsub.f32 0.0, %v5396_v53  ;;  %v5427_v44 = vsel %vm5403_vm10, %v5391_v47, %v5415_v51 }
0x1ea2   :  { %v5383_v27 = vmul.f32 %v7346_v24, %v5323_v2  ;;  %v5313_v56 = vadd.f32 0.2548296, %v5301_v3  ;;  %v5184_v42 = vmul.f32 0.3275911, %v9512_v10  ;;  %v9523_v48 = vmul.f32 0.70710677, %v9508_v18 }
0x1ea3   :  { %v5430_v34 = vsel %vm5406_vm5, %v5394_v28, %v5418_v1  ;;  %v5432_v4 = vsel %vm5408_vm4, %v5396_v53, %v5420_v0  ;;  %v5417_v55 = vsub.f32 0.0, %v5393_v45  ;;  %v5452_v60 = vmul.f32 %v5440_v19, %v9416_v52 }
0x1ea4   :  { %v5442_v22 = vadd.f32 1.0, %v5430_v34  ;;  %v5395_v37 = vsub.f32 1.0, %v5383_v27  ;;  %v5444_v15 = vadd.f32 1.0, %v5432_v4  ;;  %v5325_v12 = vmul.f32 %v9465_v31, %v5313_v56 }
0x1ea5   :  { %v5196_v9 = vadd.f32 1.0, %v5184_v42  ;;  %v7348_v13 = vpop.eup %7347  ;;  %v5171_v46 = vand.u32 2147483647, %v9523_v48  ;;  %v5439_v11 = vadd.f32 1.0, %v5427_v44  ;;  %v5143_v16 = vmul.f32 0.5, %v9394_v40 }
0x1ea6   :  { %v5454_v62 = vmul.f32 %v5442_v22, %v9433_v30  ;;  %v5419_v47 = vsub.f32 0.0, %v5395_v37  ;;  %v9529_v5 = vpop.eup %7349  ;;  %v5456_v36 = vmul.f32 %v5444_v15, %v5144_v41  ;;  %v5385_v6 = vmul.f32 %v7348_v13, %v5325_v12 }
0x1ea7   :  { %7351 = vrcp.f32 %v5196_v9  ;;  %v5183_v32 = vmul.f32 0.3275911, %v5171_v46  ;;  %v5429_v52 = vsel %vm5405_vm9, %v5393_v45, %v5417_v55  ;;  %v9538_v43 = vadd.f32 %v9386_v57, %v9355_v14 }
0x1ea8   :  { %v5462_v49 = vpack.c.bf16 %v5454_v62, %v5450_v7  ;;  %v5431_v31 = vsel %vm5407_vm6, %v5395_v37, %v5419_v47  ;;  %v5464_v30 = vpack.c.bf16 %v5456_v36, %v5452_v60  ;;  %v5397_v23 = vsub.f32 1.0, %v5385_v6 }
0x1ea9   :  { %v5443_v59 = vadd.f32 1.0, %v5431_v31  ;;  %v5195_v58 = vadd.f32 1.0, %v5183_v32  ;;  %v5230_v41 = vmul.f32 1.0614054, %v9529_v5  ;;  %v5451_v51 = vmul.f32 %v5439_v11, %v9418_v29 }
0x1eaa   :  { %v5421_v28 = vsub.f32 0.0, %v5397_v23  ;;  %v5350_v39 = vmul.f32 %v5338_v17, %v9453_v33  ;;  %v5441_v24 = vadd.f32 1.0, %v5429_v52  ;;  %v9545_v20 = vmul.f32 0.70710677, %v9538_v43 }
0x1eab   :  { %v5455_v40 = vmul.f32 %v5443_v59, %v5143_v16  ;;  %7353 = vrcp.f32 %v5195_v58  ;;  %v5242_v45 = vadd.f32 -1.4531521, %v5230_v41  ;;  %v5141_v14 = vmul.f32 0.5, %v9363_v54 }
0x1eac   :  { %v5433_v53 = vsel %vm5409_vm11, %v5397_v23, %v5421_v28  ;;  %v5145_v57 = vmul.f32 0.5, %v9401_v25  ;;  %v5173_v29 = vand.u32 2147483647, %v9545_v20  ;;  %v5370_v3 = vmul.f32 1.442695, %v5350_v39 }
0x1ead   :  { %v5463_v2 = vpack.c.bf16 %v5455_v40, %v5451_v51  ;;  %v5445_v1 = vadd.f32 1.0, %v5433_v53  ;;  %v5340_v33 = vsub.f32 0.0, %v9512_v10  ;;  %v5254_v8 = vmul.f32 %v9529_v5, %v5242_v45 }
0x1eae   :  { %v5453_v17 = vmul.f32 %v5441_v24, %v5141_v14  ;;  %v5185_v19 = vmul.f32 0.3275911, %v5173_v29  ;;  %v5339_v44 = vsub.f32 0.0, %v5171_v46  ;;  %7355 = vpow2.f32 %v5370_v3 }
0x1eaf   :  { %5763 = vmatprep.mubr.bf16.mxu0 %v5463_v2  ;;  %v5457_v7 = vmul.f32 %v5445_v1, %v5145_v57  ;;  %v5266_v27 = vadd.f32 1.4214138, %v5254_v8  ;;  %v5352_v25 = vmul.f32 %v5340_v33, %v9512_v10  ;;  %v5341_v36 = vsub.f32 0.0, %v5173_v29 }
0x1eb0   :  { %5764 = vmatmul.mubr.bf16.vlgmr.msra.gmra.mrb[64].mxu0 %v5462_v49  ;;  %v5197_v34 = vadd.f32 1.0, %v5185_v19  ;;  %v5351_v55 = vmul.f32 %v5339_v44, %v5171_v46  ;;  %vm5411_vm14 = vcmp.ge.f32.partialorder %v9523_v48, 0.0  ;;  %vm5412_vm15 = vcmp.ge.f32.partialorder %v9501_v21, 0.0 }
0x1eb1   :  { %v7352_v0 = vpop.eup %7351  ;;  %v5465_v54 = vpack.c.bf16 %v5457_v7, %v5453_v17  ;;  %v5278_v42 = vmul.f32 %v9529_v5, %v5266_v27  ;;  %v5374_v12 = vmul.f32 1.442695, %v5352_v25  ;;  %v5353_v46 = vmul.f32 %v5341_v36, %v5173_v29 }
0x1eb2   :  { %v5232_v56 = vmul.f32 1.0614054, %v7352_v0  ;;  %7357 = vrcp.f32 %v5197_v34  ;;  %v5372_v11 = vmul.f32 1.442695, %v5351_v55  ;;  %v5146_v25 = vmul.f32 0.5, %v9429_v38 }
0x1eb3   :  { %5811 = vmatprep.mubr.bf16.mxu1 %v5465_v54  ;;  %v5290_v4 = vadd.f32 -0.28449672, %v5278_v42  ;;  %7359 = vpow2.f32 %v5374_v12  ;;  %v5376_v28 = vmul.f32 1.442695, %v5353_v46  ;;  %vm5413_vm7 = vcmp.ge.f32.partialorder %v9545_v20, 0.0 }
0x1eb4   :  { %v5244_v22 = vadd.f32 -1.4531521, %v5232_v56  ;;  %5812 = vmatmul.mubr.bf16.vlgmr.msra.gmra.mrb[76].mxu1 %v5464_v30  ;;  %7361 = vpow2.f32 %v5372_v11  ;;  %v5148_v38 = vmul.f32 0.5, %v9488_v61  ;;  %v6303_v20 = vld [vmem:[%s9595_s1 + $0x94] ss:$0 sm:$0xff] }
0x1eb5   :  { %v7354_v37 = vpop.eup %7353  ;;  %v5302_v13 = vmul.f32 %v9529_v5, %v5290_v4  ;;  %7363 = vpow2.f32 %v5376_v28 }
0x1eb6   :  { %v5256_v15 = vmul.f32 %v7352_v0, %v5244_v22  ;;  %v5231_v9 = vmul.f32 1.0614054, %v7354_v37 }
0x1eb7   :  { %v5314_v47 = vadd.f32 0.2548296, %v5302_v13 }
0x1eb8   :  { %v5268_v60 = vadd.f32 1.4214138, %v5256_v15  ;;  %v5243_v62 = vadd.f32 -1.4531521, %v5231_v9  ;;  %v7356_v31 = vpop.eup %7355 }
0x1eb9   :  { %v5326_v49 = vmul.f32 %v9529_v5, %v5314_v47 }
0x1eba   :  { %v5280_v10 = vmul.f32 %v7352_v0, %v5268_v60  ;;  %v5255_v6 = vmul.f32 %v7354_v37, %v5243_v62 }
0x1ebb   :  { %v5386_v30 = vmul.f32 %v7356_v31, %v5326_v49 }
0x1ebc   :  { %v5292_v16 = vadd.f32 -0.28449672, %v5280_v10  ;;  %v5267_v32 = vadd.f32 1.4214138, %v5255_v6  ;;  %v7358_v52 = vpop.eup %7357 }
0x1ebd   :  { %v5233_v58 = vmul.f32 1.0614054, %v7358_v52  ;;  %v5398_v39 = vsub.f32 1.0, %v5386_v30  ;;  %v7360_v45 = vpop.eup %7359 }
0x1ebe   :  { %v5304_v59 = vmul.f32 %v7352_v0, %v5292_v16  ;;  %v5279_v23 = vmul.f32 %v7354_v37, %v5267_v32  ;;  %v7362_v33 = vpop.eup %7361 }
0x1ebf   :  { %v5245_v40 = vadd.f32 -1.4531521, %v5233_v58  ;;  %v5422_v57 = vsub.f32 0.0, %v5398_v39  ;;  %v7364_v4 = vpop.eup %7363 }
0x1ec0   :  { %v5316_v41 = vadd.f32 0.2548296, %v5304_v59  ;;  %v5291_v51 = vadd.f32 -0.28449672, %v5279_v23 }
0x1ec1   :  { %v5257_v2 = vmul.f32 %v7358_v52, %v5245_v40  ;;  %v5434_v7 = vsel %vm5410_vm2, %v5398_v39, %v5422_v57 }
0x1ec2   :  { %v5328_v24 = vmul.f32 %v7352_v0, %v5316_v41  ;;  %v5303_v53 = vmul.f32 %v7354_v37, %v5291_v51  ;;  %v5446_v54 = vadd.f32 1.0, %v5434_v7 }
0x1ec3   :  { %v5269_v14 = vadd.f32 1.4214138, %v5257_v2 }
0x1ec4   :  { %v5315_v5 = vadd.f32 0.2548296, %v5303_v53  ;;  %v5388_v1 = vmul.f32 %v7360_v45, %v5328_v24  ;;  %v5458_v15 = vmul.f32 %v5446_v54, %v5146_v25 }
0x1ec5   :  { %v5281_v29 = vmul.f32 %v7358_v52, %v5269_v14 }
0x1ec6   :  { %v5327_v3 = vmul.f32 %v7354_v37, %v5315_v5  ;;  %v5400_v19 = vsub.f32 1.0, %v5388_v1  ;;  %v5147_v37 = vmul.f32 0.5, %v9508_v18  ;;  %v5466_v47 = vpack.c.bf16 %v5458_v15, %v5458_v15 }
0x1ec7   :  { %v5293_v17 = vadd.f32 -0.28449672, %v5281_v29  ;;  %v5149_v18 = vmul.f32 0.5, %v9538_v43 }
0x1ec8   :  { %v5387_v8 = vmul.f32 %v7362_v33, %v5327_v3  ;;  %v5424_v56 = vsub.f32 0.0, %v5400_v19 }
0x1ec9   :  { %v5305_v44 = vmul.f32 %v7358_v52, %v5293_v17 }
0x1eca   :  { %v5399_v27 = vsub.f32 1.0, %v5387_v8  ;;  %v5436_v9 = vsel %vm5412_vm15, %v5400_v19, %v5424_v56 }
0x1ecb   :  { %v5317_v34 = vadd.f32 0.2548296, %v5305_v44  ;;  %v5448_v48 = vadd.f32 1.0, %v5436_v9 }
0x1ecc   :  { %v5423_v0 = vsub.f32 0.0, %v5399_v27 }
0x1ecd   :  { %v5329_v22 = vmul.f32 %v7358_v52, %v5317_v34  ;;  %v5460_v21 = vmul.f32 %v5448_v48, %v5148_v38 }
0x1ece   :  { %v5435_v42 = vsel %vm5411_vm14, %v5399_v27, %v5423_v0 }
0x1ecf   :  { %v5447_v63 = vadd.f32 1.0, %v5435_v42  ;;  %v5389_v55 = vmul.f32 %v7364_v4, %v5329_v22  ;;  %v5468_v49 = vpack.c.bf16 %v5460_v21, %v5460_v21 }
0x1ed1   :  { %v5459_v12 = vmul.f32 %v5447_v63, %v5147_v37  ;;  %v5401_v13 = vsub.f32 1.0, %v5389_v55 }
0x1ed3   :  { %v5467_v60 = vpack.c.bf16 %v5459_v12, %v5459_v12  ;;  %v5425_v62 = vsub.f32 0.0, %v5401_v13 }
0x1ed5   :  { %5771 = vmatprep.mubr.bf16.mxu0 %v5467_v60  ;;  %v5437_v11 = vsel %vm5413_vm7, %v5401_v13, %v5425_v62 }
0x1ed6   :  { %5772 = vmatmul.mubr.bf16.gmra.mrb[68].mxu0 %v5466_v47  ;;  %v5449_v36 = vadd.f32 1.0, %v5437_v11 }
0x1ed8   :  { %v5461_v10 = vmul.f32 %v5449_v36, %v5149_v18 }
0x1eda   :  { %v5469_v6 = vpack.c.bf16 %v5461_v10, %v5461_v10 }
0x1edc   :  { %5819 = vmatprep.mubr.bf16.mxu1 %v5469_v6 }
0x1edd   :  { %5820 = vmatmul.mubr.bf16.gmra.mrb[80].mxu1 %v5468_v49 }
0x1f83   :  { %v6514_v16 = vpop.f32.mrb[64].mxu0 }
0x1f84   :  { %v6515_v31 = vpop.f32.mrb[65].mxu0 }
0x1f85   :  { %v6516_v32 = vadd.f32 %v6515_v31, %v6514_v16  ;;  %v6517_v52 = vpop.f32.mrb[66].mxu0 }
0x1f86   :  { %v6518_v61 = vpop.f32.mrb[67].mxu0 }
0x1f87   :  { %v6519_v46 = vadd.f32 %v6518_v61, %v6517_v52  ;;  %v6542_v30 = vpop.f32.mrb[76].mxu1  ;;  %v5766_v59 = vadd.f32 %v6516_v32, %v6303_v20 }
0x1f88   :  { %v6543_v43 = vpop.f32.mrb[77].mxu1 }
0x1f89   :  { %v6544_v23 = vadd.f32 %v6543_v43, %v6542_v30  ;;  %v6545_v58 = vpop.f32.mrb[78].mxu1  ;;  %v5769_v41 = vadd.f32 %v6519_v46, %v6303_v20 }
0x1f8a   :  { %v6546_v51 = vpop.f32.mrb[79].mxu1 }
0x1f8b   :  { %v9567_v40 = vadd.f32 %v6544_v23, %v5766_v59  ;;  %v6547_v28 = vadd.f32 %v6546_v51, %v6545_v58 }
0x1f8d   :  { %v5830_v39 = vmul.f32 0.70710677, %v9567_v40  ;;  %v9570_v24 = vadd.f32 %v6547_v28, %v5769_v41  ;;  %v5827_v41 = vmul.f32 0.5, %v9567_v40 }
0x1f8f   :  { %v5833_v53 = vand.u32 2147483647, %v5830_v39  ;;  %v9573_v2 = vmul.f32 0.70710677, %v9570_v24  ;;  %vm5893_vm12 = vcmp.ge.f32.partialorder %v5830_v39, 0.0 }
0x1f91   :  { %v5836_v45 = vmul.f32 0.3275911, %v5833_v53  ;;  %v5834_v5 = vand.u32 2147483647, %v9573_v2  ;;  %v5875_v3 = vsub.f32 0.0, %v5833_v53  ;;  %vm5894_vm3 = vcmp.ge.f32.partialorder %v9573_v2, 0.0 }
0x1f93   :  { %v5839_v14 = vadd.f32 1.0, %v5836_v45  ;;  %v5837_v57 = vmul.f32 0.3275911, %v5834_v5  ;;  %v5876_v29 = vsub.f32 0.0, %v5834_v5  ;;  %v5878_v8 = vmul.f32 %v5875_v3, %v5833_v53 }
0x1f95   :  { %7365 = vrcp.f32 %v5839_v14  ;;  %v5840_v1 = vadd.f32 1.0, %v5837_v57  ;;  %v5879_v27 = vmul.f32 %v5876_v29, %v5834_v5  ;;  %v5881_v44 = vmul.f32 1.442695, %v5878_v8 }
0x1f96   :  { %v5828_v14 = vmul.f32 0.5, %v9570_v24 }
0x1f97   :  { %7367 = vrcp.f32 %v5840_v1  ;;  %v5883_v25 = vmul.f32 1.442695, %v5879_v27 }
0x1f98   :  { %7369 = vpow2.f32 %v5881_v44 }
0x1f99   :  { %7371 = vpow2.f32 %v5883_v25 }
0x1f9f   :  { %v7366_v33 = vpop.eup %7365 }
0x1fa0   :  { %v5848_v17 = vmul.f32 1.0614054, %v7366_v33 }
0x1fa1   :  { %v7368_v7 = vpop.eup %7367 }
0x1fa2   :  { %v5851_v19 = vadd.f32 -1.4531521, %v5848_v17  ;;  %v5849_v0 = vmul.f32 1.0614054, %v7368_v7  ;;  %v7370_v11 = vpop.eup %7369 }
0x1fa3   :  { %v7372_v32 = vpop.eup %7371 }
0x1fa4   :  { %v5854_v34 = vmul.f32 %v7366_v33, %v5851_v19  ;;  %v5852_v54 = vadd.f32 -1.4531521, %v5849_v0 }
0x1fa6   :  { %v5857_v56 = vadd.f32 1.4214138, %v5854_v34  ;;  %v5855_v42 = vmul.f32 %v7368_v7, %v5852_v54 }
0x1fa8   :  { %v5860_v22 = vmul.f32 %v7366_v33, %v5857_v56  ;;  %v5858_v4 = vadd.f32 1.4214138, %v5855_v42 }
0x1fa9   :  { %v6520_v37 = vpop.f32.mrb[68].mxu0 }
0x1faa   :  { %v5863_v63 = vadd.f32 -0.28449672, %v5860_v22  ;;  %v6521_v55 = vpop.f32.mrb[69].mxu0  ;;  %v5861_v15 = vmul.f32 %v7368_v7, %v5858_v4 }
0x1fab   :  { %v6522_v12 = vadd.f32 %v6521_v55, %v6520_v37  ;;  %v6523_v9 = vpop.f32.mrb[70].mxu0 }
0x1fac   :  { %v5866_v13 = vmul.f32 %v7366_v33, %v5863_v63  ;;  %v6524_v60 = vpop.f32.mrb[71].mxu0  ;;  %v5864_v62 = vadd.f32 -0.28449672, %v5861_v15 }
0x1fad   :  { %v5774_v21 = vadd.f32 %v6522_v12, %v6303_v20 }
0x1fae   :  { %v5869_v47 = vadd.f32 0.2548296, %v5866_v13  ;;  %v5867_v48 = vmul.f32 %v7368_v7, %v5864_v62 }
0x1fb0   :  { %v5872_v38 = vmul.f32 %v7366_v33, %v5869_v47  ;;  %v5870_v18 = vadd.f32 0.2548296, %v5867_v48  ;;  %v6548_v36 = vpop.f32.mrb[80].mxu1 }
0x1fb1   :  { %v6549_v6 = vpop.f32.mrb[81].mxu1 }
0x1fb2   :  { %v5887_v10 = vmul.f32 %v7370_v11, %v5872_v38  ;;  %v5873_v49 = vmul.f32 %v7368_v7, %v5870_v18  ;;  %v6550_v16 = vadd.f32 %v6549_v6, %v6548_v36  ;;  %v6551_v31 = vpop.f32.mrb[82].mxu1 }
0x1fb3   :  { %v6552_v61 = vpop.f32.mrb[83].mxu1 }
0x1fb4   :  { %v5890_v52 = vsub.f32 1.0, %v5887_v10  ;;  %v5888_v46 = vmul.f32 %v7372_v32, %v5873_v49  ;;  %v5822_v30 = vadd.f32 %v6550_v16, %v5774_v21 }
0x1fb6   :  { %v5896_v59 = vsub.f32 0.0, %v5890_v52  ;;  %v5891_v43 = vsub.f32 1.0, %v5888_v46  ;;  %v5832_v23 = vmul.f32 0.70710677, %v5822_v30  ;;  %v5829_v22 = vmul.f32 0.5, %v5822_v30 }
0x1fb8   :  { %v5899_v58 = vsel %vm5893_vm12, %v5890_v52, %v5896_v59  ;;  %v5897_v28 = vsub.f32 0.0, %v5891_v43  ;;  %v5835_v20 = vand.u32 2147483647, %v5832_v23  ;;  %vm5895_vm8 = vcmp.ge.f32.partialorder %v5832_v23, 0.0 }
0x1fb9   :  { %v5902_v51 = vadd.f32 1.0, %v5899_v58 }
0x1fba   :  { %v5900_v45 = vsel %vm5894_vm3, %v5891_v43, %v5897_v28  ;;  %v5838_v5 = vmul.f32 0.3275911, %v5835_v20  ;;  %v5877_v2 = vsub.f32 0.0, %v5835_v20 }
0x1fbb   :  { %v5905_v53 = vmul.f32 %v5902_v51, %v5827_v41  ;;  %v5903_v57 = vadd.f32 1.0, %v5900_v45 }
0x1fbc   :  { %v5841_v3 = vadd.f32 1.0, %v5838_v5  ;;  %v5880_v29 = vmul.f32 %v5877_v2, %v5835_v20 }
0x1fbd   :  { %v5908_v1 = vadd.f32 %v5905_v53, %v8755_v50  ;;  %v5906_v39 = vmul.f32 %v5903_v57, %v5828_v14 }
0x1fbe   :  { %7373 = vrcp.f32 %v5841_v3  ;;  %v5885_v8 = vmul.f32 1.442695, %v5880_v29 }
0x1fbf   :  { %5911 = vst.msk [vmem:[%s9602_s8] sm:$0xff] %vm97_vm0, %v5908_v1  ;;  %v5909_v40 = vadd.f32 %v5906_v39, %v8752_v35 }
0x1fc0   :  { %7375 = vpow2.f32 %v5885_v8 }
0x1fc1   :  { %5912 = vst.msk [vmem:[%s9602_s8 + $0x8] sm:$0xff] %vm97_vm0, %v5909_v40 }
0x1fc8   :  { %v7374_v24 = vpop.eup %7373 }
0x1fc9   :  { %v5850_v33 = vmul.f32 1.0614054, %v7374_v24 }
0x1fca   :  { %v7376_v35 = vpop.eup %7375 }
0x1fcb   :  { %v5853_v50 = vadd.f32 -1.4531521, %v5850_v33 }
0x1fcd   :  { %v5856_v17 = vmul.f32 %v7374_v24, %v5853_v50 }
0x1fcf   :  { %v5859_v7 = vadd.f32 1.4214138, %v5856_v17 }
0x1fd1   :  { %v5862_v19 = vmul.f32 %v7374_v24, %v5859_v7 }
0x1fd3   :  { %v5865_v27 = vadd.f32 -0.28449672, %v5862_v19 }
0x1fd5   :  { %v5868_v44 = vmul.f32 %v7374_v24, %v5865_v27 }
0x1fd7   :  { %v5871_v0 = vadd.f32 0.2548296, %v5868_v44 }
0x1fd9   :  { %v5874_v34 = vmul.f32 %v7374_v24, %v5871_v0 }
0x1fdb   :  { %v5889_v54 = vmul.f32 %v7376_v35, %v5874_v34 }
0x1fdd   :  { %v5892_v56 = vsub.f32 1.0, %v5889_v54 }
0x1fdf   :  { %v5898_v25 = vsub.f32 0.0, %v5892_v56 }
0x1fe1   :  { %v5901_v42 = vsel %vm5895_vm8, %v5892_v56, %v5898_v25 }
0x1fe2   :  { %v5904_v4 = vadd.f32 1.0, %v5901_v42 }
0x1fe4   :  { %v5907_v37 = vmul.f32 %v5904_v4, %v5829_v22 }
0x1fe6   :  { %v5910_v63 = vadd.f32 %v5907_v37, %v8760_v26 }
0x1fe8   :  { %5913 = vst.msk [vmem:[%s9602_s8 + $0x10] sm:$0x3] %vm104_vm1, %v5910_v63 }
0x1fe9   :  { %5918 = vsyncpa [#allocation3], 1 }
0x1fea   :  { %5919 = vsyncpa [#allocation5], 1 }

</bundles_post_ra>
